<compile_context>
chip_gen: v7x
topology: tpu7x:2x2x1
jax: 0.10.0
libtpu: 0.0.40
codegen_flags: <defaults>
</compile_context>

<pallas_src>
import math
import jax
import jax.numpy as jnp
from jax.experimental import pallas as pl
from jax.experimental.pallas import tpu as pltpu

# ---------------- small config (consistent with MiniMindConfig structure) ----
HIDDEN = 256          # hidden_size
N_HEADS = 4           # num_attention_heads
N_KV_HEADS = 2        # num_key_value_heads
N_LAYERS = 2          # num_hidden_layers
VOCAB = 512           # vocab_size
MAX_POS = 64          # max_position_embeddings (small for the demo)
ROPE_THETA = 1e6
RMS_EPS = 1e-5
HEAD_DIM = HIDDEN // N_HEADS
N_REP = N_HEADS // N_KV_HEADS
_inter = int(HIDDEN * 8 / 3)
INTER = 64 * ((_inter + 64 - 1) // 64)   # = 704 for HIDDEN=256
SCALE = 1.0 / math.sqrt(HEAD_DIM)

BATCH = 2
SEQ = 16
M_TOKENS = BATCH * SEQ            # batch folded into matmul M dimension


def _rms_norm(x, w):
    """RMSNorm in f32: x * rsqrt(mean(x^2)+eps) * w ; w broadcasts as (1, H)."""
    ms = jnp.mean(x * x, axis=-1, keepdims=True)
    return x * jax.lax.rsqrt(ms + RMS_EPS) * w


# ---------------- fused Pallas kernel ----------------------------------------
def fused_kernel(bias_ref, x_ref, ln1_ref, wq_ref, wk_ref, wv_ref, wo_ref,
                 ln2_ref, wg_ref, wu_ref, wd_ref, fnorm_ref, out_ref):
    """Single invocation (no grid).  All weights are whole-array VMEM-resident;
    the layer loop is unrolled in-kernel; the residual stream (B*S, H) is
    carried as a value."""
    x = x_ref[...]            # (M, H) f32 residual stream, M = B*S
    bias = bias_ref[...]      # (M, M) f32 block-diagonal causal additive mask

    for l in range(N_LAYERS):                      # unrolled layer loop
        # ---- input_layernorm (RMSNorm, f32) ----
        hn_b = _rms_norm(x, ln1_ref[l]).astype(jnp.bfloat16)      # (M, H) bf16

        # ---- q / k / v projections (bf16 MXU, f32 acc); cast once per layer ----
        q = jnp.dot(hn_b, wq_ref[l],
                    preferred_element_type=jnp.float32).astype(jnp.bfloat16)
        k = jnp.dot(hn_b, wk_ref[l],
                    preferred_element_type=jnp.float32).astype(jnp.bfloat16)
        v = jnp.dot(hn_b, wv_ref[l],
                    preferred_element_type=jnp.float32).astype(jnp.bfloat16)

        # ---- causal GQA attention; kv-group slices shared by reference
        #      (no repeat_kv materialization, no concatenate) ----
        wo_l = wo_ref[l]                                          # (NH*HD, H) bf16
        attn = jnp.zeros((M_TOKENS, HIDDEN), jnp.float32)
        for h in range(N_HEADS):
            g = h // N_REP                                        # kv group
            qh = q[:, h * HEAD_DIM:(h + 1) * HEAD_DIM]            # (M, HD) bf16
            kh = k[:, g * HEAD_DIM:(g + 1) * HEAD_DIM]            # (M, HD) bf16
            vh = v[:, g * HEAD_DIM:(g + 1) * HEAD_DIM]            # (M, HD) bf16
            s = jnp.einsum('qd,kd->qk', qh, kh,
                           preferred_element_type=jnp.float32)    # (M, M) f32
            s = s * SCALE + bias
            mx = jnp.max(s, axis=-1, keepdims=True)
            e = jnp.exp(s - mx)
            p = e * pl.reciprocal(jnp.sum(e, axis=-1, keepdims=True), approx=True)
            ho = jnp.dot(p.astype(jnp.bfloat16), vh,
                         preferred_element_type=jnp.float32)      # (M, HD) f32
            # project through this head's static Wo row-slice and accumulate:
            # equivalent to concat(heads) @ Wo, but with no lane concat.
            attn = attn + jnp.dot(ho.astype(jnp.bfloat16),
                                  wo_l[h * HEAD_DIM:(h + 1) * HEAD_DIM, :],
                                  preferred_element_type=jnp.float32)

        h1 = x + attn                                             # residual (f32)

        # ---- post_attention_layernorm + SwiGLU FFN ----
        h2_b = _rms_norm(h1, ln2_ref[l]).astype(jnp.bfloat16)
        gate = jnp.dot(h2_b, wg_ref[l], preferred_element_type=jnp.float32)
        up = jnp.dot(h2_b, wu_ref[l], preferred_element_type=jnp.float32)
        act = (gate * jax.nn.sigmoid(gate)) * up                  # SiLU * up, f32
        down = jnp.dot(act.astype(jnp.bfloat16), wd_ref[l],
                       preferred_element_type=jnp.float32)        # (M, H) f32

        x = h1 + down                                             # residual (f32)

    # ---- final RMSNorm, single lane-dense store ----
    out_ref[...] = _rms_norm(x, fnorm_ref[...])


# ---------------- wrapper ------------------------------------------------------
def minimind_forward(input_ids, params, freqs):
    """Mirrors MiniMindModel.forward with past_key_values=None, use_cache=False."""
    B, S = input_ids.shape
    M = B * S
    # embedding lookup (gather) is glue in plain JAX; dropout=0.0 -> identity
    hidden_states = params['embed'][input_ids].reshape(M, HIDDEN)   # (B*S, H) f32
    # position_embeddings buffers (computed but unused in this _pe variant)
    _pos = (freqs[0][:S], freqs[1][:S])

    # block-diagonal causal additive bias for the batch-folded layout, built once
    row = jnp.arange(M, dtype=jnp.int32)
    same_batch = (row[:, None] // S) == (row[None, :] // S)
    causal = (row[None, :] % S) <= (row[:, None] % S)
    bias = jnp.where(same_batch & causal,
                     jnp.float32(0.0), jnp.float32(-1e30))          # (M, M) f32

    vmem_specs = [pl.BlockSpec(memory_space=pltpu.MemorySpace.VMEM)
                  for _ in range(12)]

    out = pl.pallas_call(
        fused_kernel,
        out_shape=jax.ShapeDtypeStruct((M, HIDDEN), jnp.float32),
        in_specs=vmem_specs,
        out_specs=pl.BlockSpec(memory_space=pltpu.MemorySpace.VMEM),
    )(bias, hidden_states,
      params['ln1'], params['wq'], params['wk'], params['wv'], params['wo'],
      params['ln2'], params['wg'], params['wu'], params['wd'],
      params['norm_w'])

    out = out.reshape(B, S, HIDDEN)
    presents = [None] * N_LAYERS                       # use_cache=False
    aux_loss = jnp.float32(0.0)                        # use_moe=False
    return out, presents, aux_loss


# ---------------- params / buffers --------------------------------------------
def precompute_freqs_cis(dim, end, theta):
    freqs = 1.0 / theta ** (jnp.arange(0, dim, 2)[: dim // 2].astype(jnp.float32) / dim)
    t = jnp.arange(end, dtype=jnp.float32)
    freqs = jnp.outer(t, freqs)
    freqs_cos = jnp.concatenate([jnp.cos(freqs), jnp.cos(freqs)], axis=-1)
    freqs_sin = jnp.concatenate([jnp.sin(freqs), jnp.sin(freqs)], axis=-1)
    return freqs_cos, freqs_sin


def init_params(key):
    keys = jax.random.split(key, 8)
    scale = 0.02

    def w(k, shape):
        # nn.Linear(in,out) weight is (out,in); store transposed (in,out), bf16 for MXU
        return (scale * jax.random.normal(k, shape, jnp.float32)).astype(jnp.bfloat16)

    return {
        'embed': scale * jax.random.normal(keys[0], (VOCAB, HIDDEN), jnp.float32),
        'norm_w': jnp.ones((1, HIDDEN), jnp.float32),
        'ln1': jnp.ones((N_LAYERS, 1, HIDDEN), jnp.float32),
        'ln2': jnp.ones((N_LAYERS, 1, HIDDEN), jnp.float32),
        'wq': w(keys[1], (N_LAYERS, HIDDEN, N_HEADS * HEAD_DIM)),
        'wk': w(keys[2], (N_LAYERS, HIDDEN, N_KV_HEADS * HEAD_DIM)),
        'wv': w(keys[3], (N_LAYERS, HIDDEN, N_KV_HEADS * HEAD_DIM)),
        'wo': w(keys[4], (N_LAYERS, N_HEADS * HEAD_DIM, HIDDEN)),
        'wg': w(keys[5], (N_LAYERS, HIDDEN, INTER)),
        'wu': w(keys[6], (N_LAYERS, HIDDEN, INTER)),
        'wd': w(keys[7], (N_LAYERS, INTER, HIDDEN)),
    }


if __name__ == "__main__":
    key = jax.random.PRNGKey(0)
    pkey, dkey = jax.random.split(key)
    params = init_params(pkey)
    freqs = precompute_freqs_cis(HEAD_DIM, MAX_POS, ROPE_THETA)

    input_ids = jax.random.randint(dkey, (BATCH, SEQ), 0, VOCAB, dtype=jnp.int32)

    hidden_states, presents, aux_loss = minimind_forward(input_ids, params, freqs)
    hidden_states = jax.block_until_ready(hidden_states)
    assert hidden_states.shape == (BATCH, SEQ, HIDDEN)
    assert jnp.all(jnp.isfinite(hidden_states))
    print("KERNEL_OK")
</pallas_src>

<mosaic_0001>
module attributes {stable_mosaic.version = 11 : i64} {
  func.func @fused_kernel(%arg0: memref<32x32xf32, #tpu.memory_space<vmem>>, %arg1: memref<32x256xf32, #tpu.memory_space<vmem>>, %arg2: memref<2x1x256xf32, #tpu.memory_space<vmem>>, %arg3: memref<2x256x256xbf16, #tpu.memory_space<vmem>>, %arg4: memref<2x256x128xbf16, #tpu.memory_space<vmem>>, %arg5: memref<2x256x128xbf16, #tpu.memory_space<vmem>>, %arg6: memref<2x256x256xbf16, #tpu.memory_space<vmem>>, %arg7: memref<2x1x256xf32, #tpu.memory_space<vmem>>, %arg8: memref<2x256x704xbf16, #tpu.memory_space<vmem>>, %arg9: memref<2x256x704xbf16, #tpu.memory_space<vmem>>, %arg10: memref<2x704x256xbf16, #tpu.memory_space<vmem>>, %arg11: memref<1x256xf32, #tpu.memory_space<vmem>>, %arg12: memref<32x256xf32, #tpu.memory_space<vmem>>) attributes {dimension_semantics = [], scalar_prefetch = 0 : i64, scratch_operands = 0 : i64, tpu.core_type = #tpu.core_type<tc>} {
    %c0 = arith.constant 0 : index
    %c0_0 = arith.constant 0 : index
    %0 = vector.load %arg1[%c0, %c0_0] : memref<32x256xf32, #tpu.memory_space<vmem>>, vector<32x256xf32>
    %c0_1 = arith.constant 0 : index
    %c0_2 = arith.constant 0 : index
    %1 = vector.load %arg0[%c0_1, %c0_2] : memref<32x32xf32, #tpu.memory_space<vmem>>, vector<32x32xf32>
    %c0_3 = arith.constant 0 : index
    %c0_4 = arith.constant 0 : index
    %c0_5 = arith.constant 0 : index
    %2 = vector.load %arg2[%c0_3, %c0_4, %c0_5] : memref<2x1x256xf32, #tpu.memory_space<vmem>>, vector<1x1x256xf32>
    %3 = vector.shape_cast %2 : vector<1x1x256xf32> to vector<1x256xf32>
    %4 = arith.mulf %0, %0 : vector<32x256xf32>
    %cst = arith.constant dense<0.000000e+00> : vector<32xf32>
    %5 = vector.multi_reduction <add>, %4, %cst [1] : vector<32x256xf32> to vector<32xf32>
    %6 = vector.shape_cast %5 : vector<32xf32> to vector<32x1xf32>
    %cst_6 = arith.constant 2.560000e+02 : f32
    %7 = vector.broadcast %cst_6 : f32 to vector<32x1xf32>
    %8 = arith.divf %6, %7 : vector<32x1xf32>
    %cst_7 = arith.constant 9.99999974E-6 : f32
    %9 = vector.broadcast %cst_7 : f32 to vector<32x1xf32>
    %10 = arith.addf %8, %9 : vector<32x1xf32>
    %11 = math.rsqrt %10 : vector<32x1xf32>
    %12 = vector.broadcast %11 : vector<32x1xf32> to vector<32x256xf32>
    %13 = arith.mulf %0, %12 : vector<32x256xf32>
    %14 = vector.broadcast %3 : vector<1x256xf32> to vector<32x256xf32>
    %15 = arith.mulf %13, %14 : vector<32x256xf32>
    %16 = arith.truncf %15 : vector<32x256xf32> to vector<32x256xbf16>
    %c0_8 = arith.constant 0 : index
    %c0_9 = arith.constant 0 : index
    %c0_10 = arith.constant 0 : index
    %17 = vector.load %arg3[%c0_8, %c0_9, %c0_10] : memref<2x256x256xbf16, #tpu.memory_space<vmem>>, vector<1x256x256xbf16>
    %18 = vector.shape_cast %17 : vector<1x256x256xbf16> to vector<256x256xbf16>
    %cst_11 = arith.constant dense<0.000000e+00> : vector<32x256xf32>
    %19 = tpu.matmul %16, %18, %cst_11 {dimension_numbers = #tpu.dot_dimension_numbers<[1], [0], [0], [1], [0, 0, 1, 1], [], []>} : vector<32x256xbf16>, vector<256x256xbf16>, vector<32x256xf32> -> vector<32x256xf32>
    %20 = arith.truncf %19 : vector<32x256xf32> to vector<32x256xbf16>
    %c0_12 = arith.constant 0 : index
    %c0_13 = arith.constant 0 : index
    %c0_14 = arith.constant 0 : index
    %21 = vector.load %arg4[%c0_12, %c0_13, %c0_14] : memref<2x256x128xbf16, #tpu.memory_space<vmem>>, vector<1x256x128xbf16>
    %22 = vector.shape_cast %21 : vector<1x256x128xbf16> to vector<256x128xbf16>
    %cst_15 = arith.constant dense<0.000000e+00> : vector<32x128xf32>
    %23 = tpu.matmul %16, %22, %cst_15 {dimension_numbers = #tpu.dot_dimension_numbers<[1], [0], [0], [1], [0, 0, 1, 1], [], []>} : vector<32x256xbf16>, vector<256x128xbf16>, vector<32x128xf32> -> vector<32x128xf32>
    %24 = arith.truncf %23 : vector<32x128xf32> to vector<32x128xbf16>
    %c0_16 = arith.constant 0 : index
    %c0_17 = arith.constant 0 : index
    %c0_18 = arith.constant 0 : index
    %25 = vector.load %arg5[%c0_16, %c0_17, %c0_18] : memref<2x256x128xbf16, #tpu.memory_space<vmem>>, vector<1x256x128xbf16>
    %26 = vector.shape_cast %25 : vector<1x256x128xbf16> to vector<256x128xbf16>
    %cst_19 = arith.constant dense<0.000000e+00> : vector<32x128xf32>
    %27 = tpu.matmul %16, %26, %cst_19 {dimension_numbers = #tpu.dot_dimension_numbers<[1], [0], [0], [1], [0, 0, 1, 1], [], []>} : vector<32x256xbf16>, vector<256x128xbf16>, vector<32x128xf32> -> vector<32x128xf32>
    %28 = arith.truncf %27 : vector<32x128xf32> to vector<32x128xbf16>
    %c0_20 = arith.constant 0 : index
    %c0_21 = arith.constant 0 : index
    %c0_22 = arith.constant 0 : index
    %29 = vector.load %arg6[%c0_20, %c0_21, %c0_22] : memref<2x256x256xbf16, #tpu.memory_space<vmem>>, vector<1x256x256xbf16>
    %30 = vector.shape_cast %29 : vector<1x256x256xbf16> to vector<256x256xbf16>
    %cst_23 = arith.constant 0.000000e+00 : f32
    %31 = vector.broadcast %cst_23 : f32 to vector<32x256xf32>
    %32 = vector.extract_strided_slice %20 {offsets = [0, 0], sizes = [32, 64], strides = [1, 1]} : vector<32x256xbf16> to vector<32x64xbf16>
    %33 = vector.extract_strided_slice %24 {offsets = [0, 0], sizes = [32, 64], strides = [1, 1]} : vector<32x128xbf16> to vector<32x64xbf16>
    %34 = vector.extract_strided_slice %28 {offsets = [0, 0], sizes = [32, 64], strides = [1, 1]} : vector<32x128xbf16> to vector<32x64xbf16>
    "tpu.trace_start"() <{level = 10 : i32, message = "qd,kd->qk"}> : () -> ()
    %cst_24 = arith.constant dense<0.000000e+00> : vector<32x32xf32>
    %35 = tpu.matmul %32, %33, %cst_24 {dimension_numbers = #tpu.dot_dimension_numbers<[1], [1], [0], [0], [0, 0, 1, 0], [], []>} : vector<32x64xbf16>, vector<32x64xbf16>, vector<32x32xf32> -> vector<32x32xf32>
    "tpu.trace_stop"() : () -> ()
    %cst_25 = arith.constant 1.250000e-01 : f32
    %36 = vector.broadcast %cst_25 : f32 to vector<32x32xf32>
    %37 = arith.mulf %35, %36 : vector<32x32xf32>
    %38 = arith.addf %37, %1 : vector<32x32xf32>
    %cst_26 = arith.constant dense<0xFF800000> : vector<32xf32>
    %39 = vector.multi_reduction <maximumf>, %38, %cst_26 [1] : vector<32x32xf32> to vector<32xf32>
    %40 = vector.shape_cast %39 : vector<32xf32> to vector<32x1xf32>
    %41 = vector.broadcast %40 : vector<32x1xf32> to vector<32x32xf32>
    %42 = arith.subf %38, %41 : vector<32x32xf32>
    %43 = math.exp %42 : vector<32x32xf32>
    %cst_27 = arith.constant dense<0.000000e+00> : vector<32xf32>
    %44 = vector.multi_reduction <add>, %43, %cst_27 [1] : vector<32x32xf32> to vector<32xf32>
    %45 = vector.shape_cast %44 : vector<32xf32> to vector<32x1xf32>
    %46 = tpu.reciprocal %45 {approx = true} : vector<32x1xf32> -> vector<32x1xf32>
    %47 = vector.broadcast %46 : vector<32x1xf32> to vector<32x32xf32>
    %48 = arith.mulf %43, %47 : vector<32x32xf32>
    %49 = arith.truncf %48 : vector<32x32xf32> to vector<32x32xbf16>
    %cst_28 = arith.constant dense<0.000000e+00> : vector<32x64xf32>
    %50 = tpu.matmul %49, %34, %cst_28 {dimension_numbers = #tpu.dot_dimension_numbers<[1], [0], [0], [1], [0, 0, 1, 1], [], []>} : vector<32x32xbf16>, vector<32x64xbf16>, vector<32x64xf32> -> vector<32x64xf32>
    %51 = arith.truncf %50 : vector<32x64xf32> to vector<32x64xbf16>
    %52 = vector.extract_strided_slice %30 {offsets = [0, 0], sizes = [64, 256], strides = [1, 1]} : vector<256x256xbf16> to vector<64x256xbf16>
    %cst_29 = arith.constant dense<0.000000e+00> : vector<32x256xf32>
    %53 = tpu.matmul %51, %52, %cst_29 {dimension_numbers = #tpu.dot_dimension_numbers<[1], [0], [0], [1], [0, 0, 1, 1], [], []>} : vector<32x64xbf16>, vector<64x256xbf16>, vector<32x256xf32> -> vector<32x256xf32>
    %54 = arith.addf %31, %53 : vector<32x256xf32>
    %55 = vector.extract_strided_slice %20 {offsets = [0, 64], sizes = [32, 64], strides = [1, 1]} : vector<32x256xbf16> to vector<32x64xbf16>
    %56 = vector.extract_strided_slice %24 {offsets = [0, 0], sizes = [32, 64], strides = [1, 1]} : vector<32x128xbf16> to vector<32x64xbf16>
    %57 = vector.extract_strided_slice %28 {offsets = [0, 0], sizes = [32, 64], strides = [1, 1]} : vector<32x128xbf16> to vector<32x64xbf16>
    "tpu.trace_start"() <{level = 10 : i32, message = "qd,kd->qk"}> : () -> ()
    %cst_30 = arith.constant dense<0.000000e+00> : vector<32x32xf32>
    %58 = tpu.matmul %55, %56, %cst_30 {dimension_numbers = #tpu.dot_dimension_numbers<[1], [1], [0], [0], [0, 0, 1, 0], [], []>} : vector<32x64xbf16>, vector<32x64xbf16>, vector<32x32xf32> -> vector<32x32xf32>
    "tpu.trace_stop"() : () -> ()
    %cst_31 = arith.constant 1.250000e-01 : f32
    %59 = vector.broadcast %cst_31 : f32 to vector<32x32xf32>
    %60 = arith.mulf %58, %59 : vector<32x32xf32>
    %61 = arith.addf %60, %1 : vector<32x32xf32>
    %cst_32 = arith.constant dense<0xFF800000> : vector<32xf32>
    %62 = vector.multi_reduction <maximumf>, %61, %cst_32 [1] : vector<32x32xf32> to vector<32xf32>
    %63 = vector.shape_cast %62 : vector<32xf32> to vector<32x1xf32>
    %64 = vector.broadcast %63 : vector<32x1xf32> to vector<32x32xf32>
    %65 = arith.subf %61, %64 : vector<32x32xf32>
    %66 = math.exp %65 : vector<32x32xf32>
    %cst_33 = arith.constant dense<0.000000e+00> : vector<32xf32>
    %67 = vector.multi_reduction <add>, %66, %cst_33 [1] : vector<32x32xf32> to vector<32xf32>
    %68 = vector.shape_cast %67 : vector<32xf32> to vector<32x1xf32>
    %69 = tpu.reciprocal %68 {approx = true} : vector<32x1xf32> -> vector<32x1xf32>
    %70 = vector.broadcast %69 : vector<32x1xf32> to vector<32x32xf32>
    %71 = arith.mulf %66, %70 : vector<32x32xf32>
    %72 = arith.truncf %71 : vector<32x32xf32> to vector<32x32xbf16>
    %cst_34 = arith.constant dense<0.000000e+00> : vector<32x64xf32>
    %73 = tpu.matmul %72, %57, %cst_34 {dimension_numbers = #tpu.dot_dimension_numbers<[1], [0], [0], [1], [0, 0, 1, 1], [], []>} : vector<32x32xbf16>, vector<32x64xbf16>, vector<32x64xf32> -> vector<32x64xf32>
    %74 = arith.truncf %73 : vector<32x64xf32> to vector<32x64xbf16>
    %75 = vector.extract_strided_slice %30 {offsets = [64, 0], sizes = [64, 256], strides = [1, 1]} : vector<256x256xbf16> to vector<64x256xbf16>
    %cst_35 = arith.constant dense<0.000000e+00> : vector<32x256xf32>
    %76 = tpu.matmul %74, %75, %cst_35 {dimension_numbers = #tpu.dot_dimension_numbers<[1], [0], [0], [1], [0, 0, 1, 1], [], []>} : vector<32x64xbf16>, vector<64x256xbf16>, vector<32x256xf32> -> vector<32x256xf32>
    %77 = arith.addf %54, %76 : vector<32x256xf32>
    %78 = vector.extract_strided_slice %20 {offsets = [0, 128], sizes = [32, 64], strides = [1, 1]} : vector<32x256xbf16> to vector<32x64xbf16>
    %79 = vector.extract_strided_slice %24 {offsets = [0, 64], sizes = [32, 64], strides = [1, 1]} : vector<32x128xbf16> to vector<32x64xbf16>
    %80 = vector.extract_strided_slice %28 {offsets = [0, 64], sizes = [32, 64], strides = [1, 1]} : vector<32x128xbf16> to vector<32x64xbf16>
    "tpu.trace_start"() <{level = 10 : i32, message = "qd,kd->qk"}> : () -> ()
    %cst_36 = arith.constant dense<0.000000e+00> : vector<32x32xf32>
    %81 = tpu.matmul %78, %79, %cst_36 {dimension_numbers = #tpu.dot_dimension_numbers<[1], [1], [0], [0], [0, 0, 1, 0], [], []>} : vector<32x64xbf16>, vector<32x64xbf16>, vector<32x32xf32> -> vector<32x32xf32>
    "tpu.trace_stop"() : () -> ()
    %cst_37 = arith.constant 1.250000e-01 : f32
    %82 = vector.broadcast %cst_37 : f32 to vector<32x32xf32>
    %83 = arith.mulf %81, %82 : vector<32x32xf32>
    %84 = arith.addf %83, %1 : vector<32x32xf32>
    %cst_38 = arith.constant dense<0xFF800000> : vector<32xf32>
    %85 = vector.multi_reduction <maximumf>, %84, %cst_38 [1] : vector<32x32xf32> to vector<32xf32>
    %86 = vector.shape_cast %85 : vector<32xf32> to vector<32x1xf32>
    %87 = vector.broadcast %86 : vector<32x1xf32> to vector<32x32xf32>
    %88 = arith.subf %84, %87 : vector<32x32xf32>
    %89 = math.exp %88 : vector<32x32xf32>
    %cst_39 = arith.constant dense<0.000000e+00> : vector<32xf32>
    %90 = vector.multi_reduction <add>, %89, %cst_39 [1] : vector<32x32xf32> to vector<32xf32>
    %91 = vector.shape_cast %90 : vector<32xf32> to vector<32x1xf32>
    %92 = tpu.reciprocal %91 {approx = true} : vector<32x1xf32> -> vector<32x1xf32>
    %93 = vector.broadcast %92 : vector<32x1xf32> to vector<32x32xf32>
    %94 = arith.mulf %89, %93 : vector<32x32xf32>
    %95 = arith.truncf %94 : vector<32x32xf32> to vector<32x32xbf16>
    %cst_40 = arith.constant dense<0.000000e+00> : vector<32x64xf32>
    %96 = tpu.matmul %95, %80, %cst_40 {dimension_numbers = #tpu.dot_dimension_numbers<[1], [0], [0], [1], [0, 0, 1, 1], [], []>} : vector<32x32xbf16>, vector<32x64xbf16>, vector<32x64xf32> -> vector<32x64xf32>
    %97 = arith.truncf %96 : vector<32x64xf32> to vector<32x64xbf16>
    %98 = vector.extract_strided_slice %30 {offsets = [128, 0], sizes = [64, 256], strides = [1, 1]} : vector<256x256xbf16> to vector<64x256xbf16>
    %cst_41 = arith.constant dense<0.000000e+00> : vector<32x256xf32>
    %99 = tpu.matmul %97, %98, %cst_41 {dimension_numbers = #tpu.dot_dimension_numbers<[1], [0], [0], [1], [0, 0, 1, 1], [], []>} : vector<32x64xbf16>, vector<64x256xbf16>, vector<32x256xf32> -> vector<32x256xf32>
    %100 = arith.addf %77, %99 : vector<32x256xf32>
    %101 = vector.extract_strided_slice %20 {offsets = [0, 192], sizes = [32, 64], strides = [1, 1]} : vector<32x256xbf16> to vector<32x64xbf16>
    %102 = vector.extract_strided_slice %24 {offsets = [0, 64], sizes = [32, 64], strides = [1, 1]} : vector<32x128xbf16> to vector<32x64xbf16>
    %103 = vector.extract_strided_slice %28 {offsets = [0, 64], sizes = [32, 64], strides = [1, 1]} : vector<32x128xbf16> to vector<32x64xbf16>
    "tpu.trace_start"() <{level = 10 : i32, message = "qd,kd->qk"}> : () -> ()
    %cst_42 = arith.constant dense<0.000000e+00> : vector<32x32xf32>
    %104 = tpu.matmul %101, %102, %cst_42 {dimension_numbers = #tpu.dot_dimension_numbers<[1], [1], [0], [0], [0, 0, 1, 0], [], []>} : vector<32x64xbf16>, vector<32x64xbf16>, vector<32x32xf32> -> vector<32x32xf32>
    "tpu.trace_stop"() : () -> ()
    %cst_43 = arith.constant 1.250000e-01 : f32
    %105 = vector.broadcast %cst_43 : f32 to vector<32x32xf32>
    %106 = arith.mulf %104, %105 : vector<32x32xf32>
    %107 = arith.addf %106, %1 : vector<32x32xf32>
    %cst_44 = arith.constant dense<0xFF800000> : vector<32xf32>
    %108 = vector.multi_reduction <maximumf>, %107, %cst_44 [1] : vector<32x32xf32> to vector<32xf32>
    %109 = vector.shape_cast %108 : vector<32xf32> to vector<32x1xf32>
    %110 = vector.broadcast %109 : vector<32x1xf32> to vector<32x32xf32>
    %111 = arith.subf %107, %110 : vector<32x32xf32>
    %112 = math.exp %111 : vector<32x32xf32>
    %cst_45 = arith.constant dense<0.000000e+00> : vector<32xf32>
    %113 = vector.multi_reduction <add>, %112, %cst_45 [1] : vector<32x32xf32> to vector<32xf32>
    %114 = vector.shape_cast %113 : vector<32xf32> to vector<32x1xf32>
    %115 = tpu.reciprocal %114 {approx = true} : vector<32x1xf32> -> vector<32x1xf32>
    %116 = vector.broadcast %115 : vector<32x1xf32> to vector<32x32xf32>
    %117 = arith.mulf %112, %116 : vector<32x32xf32>
    %118 = arith.truncf %117 : vector<32x32xf32> to vector<32x32xbf16>
    %cst_46 = arith.constant dense<0.000000e+00> : vector<32x64xf32>
    %119 = tpu.matmul %118, %103, %cst_46 {dimension_numbers = #tpu.dot_dimension_numbers<[1], [0], [0], [1], [0, 0, 1, 1], [], []>} : vector<32x32xbf16>, vector<32x64xbf16>, vector<32x64xf32> -> vector<32x64xf32>
    %120 = arith.truncf %119 : vector<32x64xf32> to vector<32x64xbf16>
    %121 = vector.extract_strided_slice %30 {offsets = [192, 0], sizes = [64, 256], strides = [1, 1]} : vector<256x256xbf16> to vector<64x256xbf16>
    %cst_47 = arith.constant dense<0.000000e+00> : vector<32x256xf32>
    %122 = tpu.matmul %120, %121, %cst_47 {dimension_numbers = #tpu.dot_dimension_numbers<[1], [0], [0], [1], [0, 0, 1, 1], [], []>} : vector<32x64xbf16>, vector<64x256xbf16>, vector<32x256xf32> -> vector<32x256xf32>
    %123 = arith.addf %100, %122 : vector<32x256xf32>
    %124 = arith.addf %0, %123 : vector<32x256xf32>
    %c0_48 = arith.constant 0 : index
    %c0_49 = arith.constant 0 : index
    %c0_50 = arith.constant 0 : index
    %125 = vector.load %arg7[%c0_48, %c0_49, %c0_50] : memref<2x1x256xf32, #tpu.memory_space<vmem>>, vector<1x1x256xf32>
    %126 = vector.shape_cast %125 : vector<1x1x256xf32> to vector<1x256xf32>
    %127 = arith.mulf %124, %124 : vector<32x256xf32>
    %cst_51 = arith.constant dense<0.000000e+00> : vector<32xf32>
    %128 = vector.multi_reduction <add>, %127, %cst_51 [1] : vector<32x256xf32> to vector<32xf32>
    %129 = vector.shape_cast %128 : vector<32xf32> to vector<32x1xf32>
    %cst_52 = arith.constant 2.560000e+02 : f32
    %130 = vector.broadcast %cst_52 : f32 to vector<32x1xf32>
    %131 = arith.divf %129, %130 : vector<32x1xf32>
    %cst_53 = arith.constant 9.99999974E-6 : f32
    %132 = vector.broadcast %cst_53 : f32 to vector<32x1xf32>
    %133 = arith.addf %131, %132 : vector<32x1xf32>
    %134 = math.rsqrt %133 : vector<32x1xf32>
    %135 = vector.broadcast %134 : vector<32x1xf32> to vector<32x256xf32>
    %136 = arith.mulf %124, %135 : vector<32x256xf32>
    %137 = vector.broadcast %126 : vector<1x256xf32> to vector<32x256xf32>
    %138 = arith.mulf %136, %137 : vector<32x256xf32>
    %139 = arith.truncf %138 : vector<32x256xf32> to vector<32x256xbf16>
    %c0_54 = arith.constant 0 : index
    %c0_55 = arith.constant 0 : index
    %c0_56 = arith.constant 0 : index
    %140 = vector.load %arg8[%c0_54, %c0_55, %c0_56] : memref<2x256x704xbf16, #tpu.memory_space<vmem>>, vector<1x256x704xbf16>
    %141 = vector.shape_cast %140 : vector<1x256x704xbf16> to vector<256x704xbf16>
    %cst_57 = arith.constant dense<0.000000e+00> : vector<32x704xf32>
    %142 = tpu.matmul %139, %141, %cst_57 {dimension_numbers = #tpu.dot_dimension_numbers<[1], [0], [0], [1], [0, 0, 1, 1], [], []>} : vector<32x256xbf16>, vector<256x704xbf16>, vector<32x704xf32> -> vector<32x704xf32>
    %c0_58 = arith.constant 0 : index
    %c0_59 = arith.constant 0 : index
    %c0_60 = arith.constant 0 : index
    %143 = vector.load %arg9[%c0_58, %c0_59, %c0_60] : memref<2x256x704xbf16, #tpu.memory_space<vmem>>, vector<1x256x704xbf16>
    %144 = vector.shape_cast %143 : vector<1x256x704xbf16> to vector<256x704xbf16>
    %cst_61 = arith.constant dense<0.000000e+00> : vector<32x704xf32>
    %145 = tpu.matmul %139, %144, %cst_61 {dimension_numbers = #tpu.dot_dimension_numbers<[1], [0], [0], [1], [0, 0, 1, 1], [], []>} : vector<32x256xbf16>, vector<256x704xbf16>, vector<32x704xf32> -> vector<32x704xf32>
    %146 = arith.negf %142 : vector<32x704xf32>
    %147 = math.exp %146 : vector<32x704xf32>
    %cst_62 = arith.constant 1.000000e+00 : f32
    %148 = vector.broadcast %cst_62 : f32 to vector<32x704xf32>
    %149 = arith.addf %148, %147 : vector<32x704xf32>
    %150 = arith.divf %148, %149 : vector<32x704xf32>
    %151 = arith.mulf %142, %150 : vector<32x704xf32>
    %152 = arith.mulf %151, %145 : vector<32x704xf32>
    %153 = arith.truncf %152 : vector<32x704xf32> to vector<32x704xbf16>
    %c0_63 = arith.constant 0 : index
    %c0_64 = arith.constant 0 : index
    %c0_65 = arith.constant 0 : index
    %154 = vector.load %arg10[%c0_63, %c0_64, %c0_65] : memref<2x704x256xbf16, #tpu.memory_space<vmem>>, vector<1x704x256xbf16>
    %155 = vector.shape_cast %154 : vector<1x704x256xbf16> to vector<704x256xbf16>
    %cst_66 = arith.constant dense<0.000000e+00> : vector<32x256xf32>
    %156 = tpu.matmul %153, %155, %cst_66 {dimension_numbers = #tpu.dot_dimension_numbers<[1], [0], [0], [1], [0, 0, 1, 1], [], []>} : vector<32x704xbf16>, vector<704x256xbf16>, vector<32x256xf32> -> vector<32x256xf32>
    %157 = arith.addf %124, %156 : vector<32x256xf32>
    %c1 = arith.constant 1 : index
    %c0_67 = arith.constant 0 : index
    %c0_68 = arith.constant 0 : index
    %158 = vector.load %arg2[%c1, %c0_67, %c0_68] : memref<2x1x256xf32, #tpu.memory_space<vmem>>, vector<1x1x256xf32>
    %159 = vector.shape_cast %158 : vector<1x1x256xf32> to vector<1x256xf32>
    %160 = arith.mulf %157, %157 : vector<32x256xf32>
    %cst_69 = arith.constant dense<0.000000e+00> : vector<32xf32>
    %161 = vector.multi_reduction <add>, %160, %cst_69 [1] : vector<32x256xf32> to vector<32xf32>
    %162 = vector.shape_cast %161 : vector<32xf32> to vector<32x1xf32>
    %cst_70 = arith.constant 2.560000e+02 : f32
    %163 = vector.broadcast %cst_70 : f32 to vector<32x1xf32>
    %164 = arith.divf %162, %163 : vector<32x1xf32>
    %cst_71 = arith.constant 9.99999974E-6 : f32
    %165 = vector.broadcast %cst_71 : f32 to vector<32x1xf32>
    %166 = arith.addf %164, %165 : vector<32x1xf32>
    %167 = math.rsqrt %166 : vector<32x1xf32>
    %168 = vector.broadcast %167 : vector<32x1xf32> to vector<32x256xf32>
    %169 = arith.mulf %157, %168 : vector<32x256xf32>
    %170 = vector.broadcast %159 : vector<1x256xf32> to vector<32x256xf32>
    %171 = arith.mulf %169, %170 : vector<32x256xf32>
    %172 = arith.truncf %171 : vector<32x256xf32> to vector<32x256xbf16>
    %c1_72 = arith.constant 1 : index
    %c0_73 = arith.constant 0 : index
    %c0_74 = arith.constant 0 : index
    %173 = vector.load %arg3[%c1_72, %c0_73, %c0_74] : memref<2x256x256xbf16, #tpu.memory_space<vmem>>, vector<1x256x256xbf16>
    %174 = vector.shape_cast %173 : vector<1x256x256xbf16> to vector<256x256xbf16>
    %cst_75 = arith.constant dense<0.000000e+00> : vector<32x256xf32>
    %175 = tpu.matmul %172, %174, %cst_75 {dimension_numbers = #tpu.dot_dimension_numbers<[1], [0], [0], [1], [0, 0, 1, 1], [], []>} : vector<32x256xbf16>, vector<256x256xbf16>, vector<32x256xf32> -> vector<32x256xf32>
    %176 = arith.truncf %175 : vector<32x256xf32> to vector<32x256xbf16>
    %c1_76 = arith.constant 1 : index
    %c0_77 = arith.constant 0 : index
    %c0_78 = arith.constant 0 : index
    %177 = vector.load %arg4[%c1_76, %c0_77, %c0_78] : memref<2x256x128xbf16, #tpu.memory_space<vmem>>, vector<1x256x128xbf16>
    %178 = vector.shape_cast %177 : vector<1x256x128xbf16> to vector<256x128xbf16>
    %cst_79 = arith.constant dense<0.000000e+00> : vector<32x128xf32>
    %179 = tpu.matmul %172, %178, %cst_79 {dimension_numbers = #tpu.dot_dimension_numbers<[1], [0], [0], [1], [0, 0, 1, 1], [], []>} : vector<32x256xbf16>, vector<256x128xbf16>, vector<32x128xf32> -> vector<32x128xf32>
    %180 = arith.truncf %179 : vector<32x128xf32> to vector<32x128xbf16>
    %c1_80 = arith.constant 1 : index
    %c0_81 = arith.constant 0 : index
    %c0_82 = arith.constant 0 : index
    %181 = vector.load %arg5[%c1_80, %c0_81, %c0_82] : memref<2x256x128xbf16, #tpu.memory_space<vmem>>, vector<1x256x128xbf16>
    %182 = vector.shape_cast %181 : vector<1x256x128xbf16> to vector<256x128xbf16>
    %cst_83 = arith.constant dense<0.000000e+00> : vector<32x128xf32>
    %183 = tpu.matmul %172, %182, %cst_83 {dimension_numbers = #tpu.dot_dimension_numbers<[1], [0], [0], [1], [0, 0, 1, 1], [], []>} : vector<32x256xbf16>, vector<256x128xbf16>, vector<32x128xf32> -> vector<32x128xf32>
    %184 = arith.truncf %183 : vector<32x128xf32> to vector<32x128xbf16>
    %c1_84 = arith.constant 1 : index
    %c0_85 = arith.constant 0 : index
    %c0_86 = arith.constant 0 : index
    %185 = vector.load %arg6[%c1_84, %c0_85, %c0_86] : memref<2x256x256xbf16, #tpu.memory_space<vmem>>, vector<1x256x256xbf16>
    %186 = vector.shape_cast %185 : vector<1x256x256xbf16> to vector<256x256xbf16>
    %cst_87 = arith.constant 0.000000e+00 : f32
    %187 = vector.broadcast %cst_87 : f32 to vector<32x256xf32>
    %188 = vector.extract_strided_slice %176 {offsets = [0, 0], sizes = [32, 64], strides = [1, 1]} : vector<32x256xbf16> to vector<32x64xbf16>
    %189 = vector.extract_strided_slice %180 {offsets = [0, 0], sizes = [32, 64], strides = [1, 1]} : vector<32x128xbf16> to vector<32x64xbf16>
    %190 = vector.extract_strided_slice %184 {offsets = [0, 0], sizes = [32, 64], strides = [1, 1]} : vector<32x128xbf16> to vector<32x64xbf16>
    "tpu.trace_start"() <{level = 10 : i32, message = "qd,kd->qk"}> : () -> ()
    %cst_88 = arith.constant dense<0.000000e+00> : vector<32x32xf32>
    %191 = tpu.matmul %188, %189, %cst_88 {dimension_numbers = #tpu.dot_dimension_numbers<[1], [1], [0], [0], [0, 0, 1, 0], [], []>} : vector<32x64xbf16>, vector<32x64xbf16>, vector<32x32xf32> -> vector<32x32xf32>
    "tpu.trace_stop"() : () -> ()
    %cst_89 = arith.constant 1.250000e-01 : f32
    %192 = vector.broadcast %cst_89 : f32 to vector<32x32xf32>
    %193 = arith.mulf %191, %192 : vector<32x32xf32>
    %194 = arith.addf %193, %1 : vector<32x32xf32>
    %cst_90 = arith.constant dense<0xFF800000> : vector<32xf32>
    %195 = vector.multi_reduction <maximumf>, %194, %cst_90 [1] : vector<32x32xf32> to vector<32xf32>
    %196 = vector.shape_cast %195 : vector<32xf32> to vector<32x1xf32>
    %197 = vector.broadcast %196 : vector<32x1xf32> to vector<32x32xf32>
    %198 = arith.subf %194, %197 : vector<32x32xf32>
    %199 = math.exp %198 : vector<32x32xf32>
    %cst_91 = arith.constant dense<0.000000e+00> : vector<32xf32>
    %200 = vector.multi_reduction <add>, %199, %cst_91 [1] : vector<32x32xf32> to vector<32xf32>
    %201 = vector.shape_cast %200 : vector<32xf32> to vector<32x1xf32>
    %202 = tpu.reciprocal %201 {approx = true} : vector<32x1xf32> -> vector<32x1xf32>
    %203 = vector.broadcast %202 : vector<32x1xf32> to vector<32x32xf32>
    %204 = arith.mulf %199, %203 : vector<32x32xf32>
    %205 = arith.truncf %204 : vector<32x32xf32> to vector<32x32xbf16>
    %cst_92 = arith.constant dense<0.000000e+00> : vector<32x64xf32>
    %206 = tpu.matmul %205, %190, %cst_92 {dimension_numbers = #tpu.dot_dimension_numbers<[1], [0], [0], [1], [0, 0, 1, 1], [], []>} : vector<32x32xbf16>, vector<32x64xbf16>, vector<32x64xf32> -> vector<32x64xf32>
    %207 = arith.truncf %206 : vector<32x64xf32> to vector<32x64xbf16>
    %208 = vector.extract_strided_slice %186 {offsets = [0, 0], sizes = [64, 256], strides = [1, 1]} : vector<256x256xbf16> to vector<64x256xbf16>
    %cst_93 = arith.constant dense<0.000000e+00> : vector<32x256xf32>
    %209 = tpu.matmul %207, %208, %cst_93 {dimension_numbers = #tpu.dot_dimension_numbers<[1], [0], [0], [1], [0, 0, 1, 1], [], []>} : vector<32x64xbf16>, vector<64x256xbf16>, vector<32x256xf32> -> vector<32x256xf32>
    %210 = arith.addf %187, %209 : vector<32x256xf32>
    %211 = vector.extract_strided_slice %176 {offsets = [0, 64], sizes = [32, 64], strides = [1, 1]} : vector<32x256xbf16> to vector<32x64xbf16>
    %212 = vector.extract_strided_slice %180 {offsets = [0, 0], sizes = [32, 64], strides = [1, 1]} : vector<32x128xbf16> to vector<32x64xbf16>
    %213 = vector.extract_strided_slice %184 {offsets = [0, 0], sizes = [32, 64], strides = [1, 1]} : vector<32x128xbf16> to vector<32x64xbf16>
    "tpu.trace_start"() <{level = 10 : i32, message = "qd,kd->qk"}> : () -> ()
    %cst_94 = arith.constant dense<0.000000e+00> : vector<32x32xf32>
    %214 = tpu.matmul %211, %212, %cst_94 {dimension_numbers = #tpu.dot_dimension_numbers<[1], [1], [0], [0], [0, 0, 1, 0], [], []>} : vector<32x64xbf16>, vector<32x64xbf16>, vector<32x32xf32> -> vector<32x32xf32>
    "tpu.trace_stop"() : () -> ()
    %cst_95 = arith.constant 1.250000e-01 : f32
    %215 = vector.broadcast %cst_95 : f32 to vector<32x32xf32>
    %216 = arith.mulf %214, %215 : vector<32x32xf32>
    %217 = arith.addf %216, %1 : vector<32x32xf32>
    %cst_96 = arith.constant dense<0xFF800000> : vector<32xf32>
    %218 = vector.multi_reduction <maximumf>, %217, %cst_96 [1] : vector<32x32xf32> to vector<32xf32>
    %219 = vector.shape_cast %218 : vector<32xf32> to vector<32x1xf32>
    %220 = vector.broadcast %219 : vector<32x1xf32> to vector<32x32xf32>
    %221 = arith.subf %217, %220 : vector<32x32xf32>
    %222 = math.exp %221 : vector<32x32xf32>
    %cst_97 = arith.constant dense<0.000000e+00> : vector<32xf32>
    %223 = vector.multi_reduction <add>, %222, %cst_97 [1] : vector<32x32xf32> to vector<32xf32>
    %224 = vector.shape_cast %223 : vector<32xf32> to vector<32x1xf32>
    %225 = tpu.reciprocal %224 {approx = true} : vector<32x1xf32> -> vector<32x1xf32>
    %226 = vector.broadcast %225 : vector<32x1xf32> to vector<32x32xf32>
    %227 = arith.mulf %222, %226 : vector<32x32xf32>
    %228 = arith.truncf %227 : vector<32x32xf32> to vector<32x32xbf16>
    %cst_98 = arith.constant dense<0.000000e+00> : vector<32x64xf32>
    %229 = tpu.matmul %228, %213, %cst_98 {dimension_numbers = #tpu.dot_dimension_numbers<[1], [0], [0], [1], [0, 0, 1, 1], [], []>} : vector<32x32xbf16>, vector<32x64xbf16>, vector<32x64xf32> -> vector<32x64xf32>
    %230 = arith.truncf %229 : vector<32x64xf32> to vector<32x64xbf16>
    %231 = vector.extract_strided_slice %186 {offsets = [64, 0], sizes = [64, 256], strides = [1, 1]} : vector<256x256xbf16> to vector<64x256xbf16>
    %cst_99 = arith.constant dense<0.000000e+00> : vector<32x256xf32>
    %232 = tpu.matmul %230, %231, %cst_99 {dimension_numbers = #tpu.dot_dimension_numbers<[1], [0], [0], [1], [0, 0, 1, 1], [], []>} : vector<32x64xbf16>, vector<64x256xbf16>, vector<32x256xf32> -> vector<32x256xf32>
    %233 = arith.addf %210, %232 : vector<32x256xf32>
    %234 = vector.extract_strided_slice %176 {offsets = [0, 128], sizes = [32, 64], strides = [1, 1]} : vector<32x256xbf16> to vector<32x64xbf16>
    %235 = vector.extract_strided_slice %180 {offsets = [0, 64], sizes = [32, 64], strides = [1, 1]} : vector<32x128xbf16> to vector<32x64xbf16>
    %236 = vector.extract_strided_slice %184 {offsets = [0, 64], sizes = [32, 64], strides = [1, 1]} : vector<32x128xbf16> to vector<32x64xbf16>
    "tpu.trace_start"() <{level = 10 : i32, message = "qd,kd->qk"}> : () -> ()
    %cst_100 = arith.constant dense<0.000000e+00> : vector<32x32xf32>
    %237 = tpu.matmul %234, %235, %cst_100 {dimension_numbers = #tpu.dot_dimension_numbers<[1], [1], [0], [0], [0, 0, 1, 0], [], []>} : vector<32x64xbf16>, vector<32x64xbf16>, vector<32x32xf32> -> vector<32x32xf32>
    "tpu.trace_stop"() : () -> ()
    %cst_101 = arith.constant 1.250000e-01 : f32
    %238 = vector.broadcast %cst_101 : f32 to vector<32x32xf32>
    %239 = arith.mulf %237, %238 : vector<32x32xf32>
    %240 = arith.addf %239, %1 : vector<32x32xf32>
    %cst_102 = arith.constant dense<0xFF800000> : vector<32xf32>
    %241 = vector.multi_reduction <maximumf>, %240, %cst_102 [1] : vector<32x32xf32> to vector<32xf32>
    %242 = vector.shape_cast %241 : vector<32xf32> to vector<32x1xf32>
    %243 = vector.broadcast %242 : vector<32x1xf32> to vector<32x32xf32>
    %244 = arith.subf %240, %243 : vector<32x32xf32>
    %245 = math.exp %244 : vector<32x32xf32>
    %cst_103 = arith.constant dense<0.000000e+00> : vector<32xf32>
    %246 = vector.multi_reduction <add>, %245, %cst_103 [1] : vector<32x32xf32> to vector<32xf32>
    %247 = vector.shape_cast %246 : vector<32xf32> to vector<32x1xf32>
    %248 = tpu.reciprocal %247 {approx = true} : vector<32x1xf32> -> vector<32x1xf32>
    %249 = vector.broadcast %248 : vector<32x1xf32> to vector<32x32xf32>
    %250 = arith.mulf %245, %249 : vector<32x32xf32>
    %251 = arith.truncf %250 : vector<32x32xf32> to vector<32x32xbf16>
    %cst_104 = arith.constant dense<0.000000e+00> : vector<32x64xf32>
    %252 = tpu.matmul %251, %236, %cst_104 {dimension_numbers = #tpu.dot_dimension_numbers<[1], [0], [0], [1], [0, 0, 1, 1], [], []>} : vector<32x32xbf16>, vector<32x64xbf16>, vector<32x64xf32> -> vector<32x64xf32>
    %253 = arith.truncf %252 : vector<32x64xf32> to vector<32x64xbf16>
    %254 = vector.extract_strided_slice %186 {offsets = [128, 0], sizes = [64, 256], strides = [1, 1]} : vector<256x256xbf16> to vector<64x256xbf16>
    %cst_105 = arith.constant dense<0.000000e+00> : vector<32x256xf32>
    %255 = tpu.matmul %253, %254, %cst_105 {dimension_numbers = #tpu.dot_dimension_numbers<[1], [0], [0], [1], [0, 0, 1, 1], [], []>} : vector<32x64xbf16>, vector<64x256xbf16>, vector<32x256xf32> -> vector<32x256xf32>
    %256 = arith.addf %233, %255 : vector<32x256xf32>
    %257 = vector.extract_strided_slice %176 {offsets = [0, 192], sizes = [32, 64], strides = [1, 1]} : vector<32x256xbf16> to vector<32x64xbf16>
    %258 = vector.extract_strided_slice %180 {offsets = [0, 64], sizes = [32, 64], strides = [1, 1]} : vector<32x128xbf16> to vector<32x64xbf16>
    %259 = vector.extract_strided_slice %184 {offsets = [0, 64], sizes = [32, 64], strides = [1, 1]} : vector<32x128xbf16> to vector<32x64xbf16>
    "tpu.trace_start"() <{level = 10 : i32, message = "qd,kd->qk"}> : () -> ()
    %cst_106 = arith.constant dense<0.000000e+00> : vector<32x32xf32>
    %260 = tpu.matmul %257, %258, %cst_106 {dimension_numbers = #tpu.dot_dimension_numbers<[1], [1], [0], [0], [0, 0, 1, 0], [], []>} : vector<32x64xbf16>, vector<32x64xbf16>, vector<32x32xf32> -> vector<32x32xf32>
    "tpu.trace_stop"() : () -> ()
    %cst_107 = arith.constant 1.250000e-01 : f32
    %261 = vector.broadcast %cst_107 : f32 to vector<32x32xf32>
    %262 = arith.mulf %260, %261 : vector<32x32xf32>
    %263 = arith.addf %262, %1 : vector<32x32xf32>
    %cst_108 = arith.constant dense<0xFF800000> : vector<32xf32>
    %264 = vector.multi_reduction <maximumf>, %263, %cst_108 [1] : vector<32x32xf32> to vector<32xf32>
    %265 = vector.shape_cast %264 : vector<32xf32> to vector<32x1xf32>
    %266 = vector.broadcast %265 : vector<32x1xf32> to vector<32x32xf32>
    %267 = arith.subf %263, %266 : vector<32x32xf32>
    %268 = math.exp %267 : vector<32x32xf32>
    %cst_109 = arith.constant dense<0.000000e+00> : vector<32xf32>
    %269 = vector.multi_reduction <add>, %268, %cst_109 [1] : vector<32x32xf32> to vector<32xf32>
    %270 = vector.shape_cast %269 : vector<32xf32> to vector<32x1xf32>
    %271 = tpu.reciprocal %270 {approx = true} : vector<32x1xf32> -> vector<32x1xf32>
    %272 = vector.broadcast %271 : vector<32x1xf32> to vector<32x32xf32>
    %273 = arith.mulf %268, %272 : vector<32x32xf32>
    %274 = arith.truncf %273 : vector<32x32xf32> to vector<32x32xbf16>
    %cst_110 = arith.constant dense<0.000000e+00> : vector<32x64xf32>
    %275 = tpu.matmul %274, %259, %cst_110 {dimension_numbers = #tpu.dot_dimension_numbers<[1], [0], [0], [1], [0, 0, 1, 1], [], []>} : vector<32x32xbf16>, vector<32x64xbf16>, vector<32x64xf32> -> vector<32x64xf32>
    %276 = arith.truncf %275 : vector<32x64xf32> to vector<32x64xbf16>
    %277 = vector.extract_strided_slice %186 {offsets = [192, 0], sizes = [64, 256], strides = [1, 1]} : vector<256x256xbf16> to vector<64x256xbf16>
    %cst_111 = arith.constant dense<0.000000e+00> : vector<32x256xf32>
    %278 = tpu.matmul %276, %277, %cst_111 {dimension_numbers = #tpu.dot_dimension_numbers<[1], [0], [0], [1], [0, 0, 1, 1], [], []>} : vector<32x64xbf16>, vector<64x256xbf16>, vector<32x256xf32> -> vector<32x256xf32>
    %279 = arith.addf %256, %278 : vector<32x256xf32>
    %280 = arith.addf %157, %279 : vector<32x256xf32>
    %c1_112 = arith.constant 1 : index
    %c0_113 = arith.constant 0 : index
    %c0_114 = arith.constant 0 : index
    %281 = vector.load %arg7[%c1_112, %c0_113, %c0_114] : memref<2x1x256xf32, #tpu.memory_space<vmem>>, vector<1x1x256xf32>
    %282 = vector.shape_cast %281 : vector<1x1x256xf32> to vector<1x256xf32>
    %283 = arith.mulf %280, %280 : vector<32x256xf32>
    %cst_115 = arith.constant dense<0.000000e+00> : vector<32xf32>
    %284 = vector.multi_reduction <add>, %283, %cst_115 [1] : vector<32x256xf32> to vector<32xf32>
    %285 = vector.shape_cast %284 : vector<32xf32> to vector<32x1xf32>
    %cst_116 = arith.constant 2.560000e+02 : f32
    %286 = vector.broadcast %cst_116 : f32 to vector<32x1xf32>
    %287 = arith.divf %285, %286 : vector<32x1xf32>
    %cst_117 = arith.constant 9.99999974E-6 : f32
    %288 = vector.broadcast %cst_117 : f32 to vector<32x1xf32>
    %289 = arith.addf %287, %288 : vector<32x1xf32>
    %290 = math.rsqrt %289 : vector<32x1xf32>
    %291 = vector.broadcast %290 : vector<32x1xf32> to vector<32x256xf32>
    %292 = arith.mulf %280, %291 : vector<32x256xf32>
    %293 = vector.broadcast %282 : vector<1x256xf32> to vector<32x256xf32>
    %294 = arith.mulf %292, %293 : vector<32x256xf32>
    %295 = arith.truncf %294 : vector<32x256xf32> to vector<32x256xbf16>
    %c1_118 = arith.constant 1 : index
    %c0_119 = arith.constant 0 : index
    %c0_120 = arith.constant 0 : index
    %296 = vector.load %arg8[%c1_118, %c0_119, %c0_120] : memref<2x256x704xbf16, #tpu.memory_space<vmem>>, vector<1x256x704xbf16>
    %297 = vector.shape_cast %296 : vector<1x256x704xbf16> to vector<256x704xbf16>
    %cst_121 = arith.constant dense<0.000000e+00> : vector<32x704xf32>
    %298 = tpu.matmul %295, %297, %cst_121 {dimension_numbers = #tpu.dot_dimension_numbers<[1], [0], [0], [1], [0, 0, 1, 1], [], []>} : vector<32x256xbf16>, vector<256x704xbf16>, vector<32x704xf32> -> vector<32x704xf32>
    %c1_122 = arith.constant 1 : index
    %c0_123 = arith.constant 0 : index
    %c0_124 = arith.constant 0 : index
    %299 = vector.load %arg9[%c1_122, %c0_123, %c0_124] : memref<2x256x704xbf16, #tpu.memory_space<vmem>>, vector<1x256x704xbf16>
    %300 = vector.shape_cast %299 : vector<1x256x704xbf16> to vector<256x704xbf16>
    %cst_125 = arith.constant dense<0.000000e+00> : vector<32x704xf32>
    %301 = tpu.matmul %295, %300, %cst_125 {dimension_numbers = #tpu.dot_dimension_numbers<[1], [0], [0], [1], [0, 0, 1, 1], [], []>} : vector<32x256xbf16>, vector<256x704xbf16>, vector<32x704xf32> -> vector<32x704xf32>
    %302 = arith.negf %298 : vector<32x704xf32>
    %303 = math.exp %302 : vector<32x704xf32>
    %cst_126 = arith.constant 1.000000e+00 : f32
    %304 = vector.broadcast %cst_126 : f32 to vector<32x704xf32>
    %305 = arith.addf %304, %303 : vector<32x704xf32>
    %306 = arith.divf %304, %305 : vector<32x704xf32>
    %307 = arith.mulf %298, %306 : vector<32x704xf32>
    %308 = arith.mulf %307, %301 : vector<32x704xf32>
    %309 = arith.truncf %308 : vector<32x704xf32> to vector<32x704xbf16>
    %c1_127 = arith.constant 1 : index
    %c0_128 = arith.constant 0 : index
    %c0_129 = arith.constant 0 : index
    %310 = vector.load %arg10[%c1_127, %c0_128, %c0_129] : memref<2x704x256xbf16, #tpu.memory_space<vmem>>, vector<1x704x256xbf16>
    %311 = vector.shape_cast %310 : vector<1x704x256xbf16> to vector<704x256xbf16>
    %cst_130 = arith.constant dense<0.000000e+00> : vector<32x256xf32>
    %312 = tpu.matmul %309, %311, %cst_130 {dimension_numbers = #tpu.dot_dimension_numbers<[1], [0], [0], [1], [0, 0, 1, 1], [], []>} : vector<32x704xbf16>, vector<704x256xbf16>, vector<32x256xf32> -> vector<32x256xf32>
    %313 = arith.addf %280, %312 : vector<32x256xf32>
    %c0_131 = arith.constant 0 : index
    %c0_132 = arith.constant 0 : index
    %314 = vector.load %arg11[%c0_131, %c0_132] : memref<1x256xf32, #tpu.memory_space<vmem>>, vector<1x256xf32>
    %315 = arith.mulf %313, %313 : vector<32x256xf32>
    %cst_133 = arith.constant dense<0.000000e+00> : vector<32xf32>
    %316 = vector.multi_reduction <add>, %315, %cst_133 [1] : vector<32x256xf32> to vector<32xf32>
    %317 = vector.shape_cast %316 : vector<32xf32> to vector<32x1xf32>
    %cst_134 = arith.constant 2.560000e+02 : f32
    %318 = vector.broadcast %cst_134 : f32 to vector<32x1xf32>
    %319 = arith.divf %317, %318 : vector<32x1xf32>
    %cst_135 = arith.constant 9.99999974E-6 : f32
    %320 = vector.broadcast %cst_135 : f32 to vector<32x1xf32>
    %321 = arith.addf %319, %320 : vector<32x1xf32>
    %322 = math.rsqrt %321 : vector<32x1xf32>
    %323 = vector.broadcast %322 : vector<32x1xf32> to vector<32x256xf32>
    %324 = arith.mulf %313, %323 : vector<32x256xf32>
    %325 = vector.broadcast %314 : vector<1x256xf32> to vector<32x256xf32>
    %326 = arith.mulf %324, %325 : vector<32x256xf32>
    %c0_136 = arith.constant 0 : index
    %c0_137 = arith.constant 0 : index
    %327 = vector.load %arg12[%c0_136, %c0_137] : memref<32x256xf32, #tpu.memory_space<vmem>>, vector<32x256xf32>
    tpu.vector_store %arg12[%c0_136, %c0_137], %326 {strides = array<i32>} : memref<32x256xf32, #tpu.memory_space<vmem>>, vector<32x256xf32>,
    return
  }
}

</mosaic_0001>

<bundles_post_ra>
// kernel: tpu_custom_call.1
= control target key start
LH: loop header
LB: loop body
LE: loop exit
PB: predicated region body
PF: predicated region fallthrough
CT: control target
= control target key end

     0   :  { %s15182_s0 = inlined_call_operand.vmem [shape: f32[32,32], index: 0, kind: input, shape index: {}]   ;;  %s15183_s1 = inlined_call_operand.vmem [shape: f32[32,256], index: 1, kind: input, shape index: {}]   ;;  %s15184_s2 = inlined_call_operand.vmem [shape: f32[2,1,256], index: 2, kind: input, shape index: {}]   ;;  %s15185_s3 = inlined_call_operand.vmem [shape: bf16[2,256,256], index: 3, kind: input, shape index: {}]   ;;  %s15186_s4 = inlined_call_operand.vmem [shape: bf16[2,256,128], index: 4, kind: input, shape index: {}]   ;;  %s15187_s5 = inlined_call_operand.vmem [shape: bf16[2,256,128], index: 5, kind: input, shape index: {}]   ;;  %s15188_s6 = inlined_call_operand.vmem [shape: bf16[2,256,256], index: 6, kind: input, shape index: {}]   ;;  %s15189_s7 = inlined_call_operand.vmem [shape: f32[2,1,256], index: 7, kind: input, shape index: {}]   ;;  %s15190_s8 = inlined_call_operand.vmem [shape: bf16[2,256,704], index: 8, kind: input, shape index: {}]   ;;  %s15191_s9 = inlined_call_operand.vmem [shape: bf16[2,256,704], index: 9, kind: input, shape index: {}]   ;;  %s15192_s10 = inlined_call_operand.vmem [shape: bf16[2,704,256], index: 10, kind: input, shape index: {}]   ;;  %s15193_s11 = inlined_call_operand.vmem [shape: f32[1,256], index: 11, kind: input, shape index: {}]   ;;  %s15194_s12 = inlined_call_operand.hbm [shape: f32[32,256], index: 12, kind: output, shape index: {}]  }
   0x1   :  { %v43_v0 = vld [vmem:[%s15183_s1] sm:$0xff]  ;;  %v44_v1 = vld [vmem:[%s15183_s1 + $0x8] sm:$0xff]  ;;  %v45_v7 = vld [vmem:[%s15183_s1 + $0x10] sm:$0xff] }
   0x2   :  { %v47_v2 = vld [vmem:[%s15183_s1 + $0x20] sm:$0xff]  ;;  %v56_v3 = vmul.f32 %v43_v0, %v43_v0  ;;  %v57_v4 = vmul.f32 %v44_v1, %v44_v1  ;;  %v48_v5 = vld [vmem:[%s15183_s1 + $0x28] sm:$0xff]  ;;  %v46_v8 = vld [vmem:[%s15183_s1 + $0x18] sm:$0xff]  ;;  %v58_v10 = vmul.f32 %v45_v7, %v45_v7 }
   0x3   :  { %v60_v6 = vmul.f32 %v47_v2, %v47_v2  ;;  %v61_v9 = vmul.f32 %v48_v5, %v48_v5  ;;  %v59_v11 = vmul.f32 %v46_v8, %v46_v8  ;;  %v49_v12 = vld [vmem:[%s15183_s1 + $0x30] sm:$0xff]  ;;  %v50_v13 = vld [vmem:[%s15183_s1 + $0x38] sm:$0xff]  ;;  %v10346_v17 = vld [vmem:[%s15185_s3 + $0x4] ss:$8 sps:$4 sm:$0xff]  }
   0x4   :  { %v64_v14 = vadd.f32 %v57_v4, %v56_v3  ;;  %v62_v15 = vmul.f32 %v49_v12, %v49_v12  ;;  %v63_v16 = vmul.f32 %v50_v13, %v50_v13  ;;  %v10348_v18 = vld [vmem:[%s15185_s3] ss:$8 sps:$4 sm:$0xff]   ;;  %v10349_v20 = vld [vmem:[%s15185_s3 + $0x14] ss:$8 sps:$4 sm:$0xff]   ;;  %312 = vmatprep.subr.bf16.mxu0 %v10346_v17  ;;  %v10351_v23 = vld [vmem:[%s15185_s3 + $0x10] ss:$8 sps:$4 sm:$0xff]  }
   0x5   :  { %v70_v19 = vadd.f32 %v61_v9, %v60_v6  ;;  %v67_v21 = vadd.f32 %v59_v11, %v58_v10  ;;  %313 = vmatpush1.bf16.msra.mxu0 %v10348_v18  ;;  %v10352_v24 = vld [vmem:[%s15185_s3 + $0x24] ss:$8 sps:$4 sm:$0xff]   ;;  %v10354_v25 = vld [vmem:[%s15185_s3 + $0x20] ss:$8 sps:$4 sm:$0xff]   ;;  %v10355_v26 = vld [vmem:[%s15185_s3 + $0x34] ss:$8 sps:$4 sm:$0xff]  }
   0x6   :  { %65 = vadd.xlane.f32.xlu0 %v64_v14  ;;  %v73_v22 = vadd.f32 %v63_v16, %v62_v15  ;;  %314 = vmatprep.subr.bf16.mxu0 %v10349_v20  ;;  %v10357_v27 = vld [vmem:[%s15185_s3 + $0x30] ss:$8 sps:$4 sm:$0xff]   ;;  %v10370_v28 = vld [vmem:[%s15186_s4 + $0x40] sm:$0xff]   ;;  %v10375_v31 = vld [vmem:[%s15186_s4 + $0x48] sm:$0xff]   ;;  %v98_v15 = vlaneseq }
   0x7   :  { %71 = vadd.xlane.f32.xlu1 %v70_v19  ;;  %v10358_v29 = vld [vmem:[%s15185_s3 + $0x44] ss:$8 sps:$4 sm:$0xff]   ;;  %9941 = vmatprep.subr.bf16.mxu1 %v10370_v28  ;;  %v10360_v32 = vld [vmem:[%s15185_s3 + $0x40] ss:$8 sps:$4 sm:$0xff]   ;;  %v10361_v33 = vld [vmem:[%s15185_s3 + $0x54] ss:$8 sps:$4 sm:$0xff]  }
   0x8   :  { %v10373_v30 = vld [vmem:[%s15186_s4] sm:$0xff]   ;;  %v10378_v34 = vld [vmem:[%s15186_s4 + $0x8] sm:$0xff]   ;;  %v10380_v35 = vld [vmem:[%s15186_s4 + $0x50] sm:$0xff]   ;;  %v99_v18 = vshrl.u32 %v98_v15, 7 }
   0x9   :  { %315 = vmatpush1.bf16.msra.mxu0 %v10351_v23  ;;  %9942 = vmatpush3.bf16.msra.mxu1 %v10373_v30  ;;  %v10363_v36 = vld [vmem:[%s15185_s3 + $0x50] ss:$8 sps:$4 sm:$0xff]   ;;  %v10364_v38 = vld [vmem:[%s15185_s3 + $0x64] ss:$8 sps:$4 sm:$0xff]   ;;  %v10366_v40 = vld [vmem:[%s15185_s3 + $0x60] ss:$8 sps:$4 sm:$0xff]  }
   0xa   :  { %68 = vadd.xlane.f32.xlu0 %v67_v21  ;;  %316 = vmatprep.subr.bf16.mxu0 %v10352_v24  ;;  %v10383_v37 = vld [vmem:[%s15186_s4 + $0x10] sm:$0xff]   ;;  %v10385_v39 = vld [vmem:[%s15186_s4 + $0x58] sm:$0xff]   ;;  %v10390_v43 = vld [vmem:[%s15186_s4 + $0x60] sm:$0xff]   ;;  %v12090_v20 = vsub.s32 1, %v99_v18  ;;  %v12092_v21 = vsub.s32 0, %v99_v18 }
   0xb   :  { %74 = vadd.xlane.f32.xlu1 %v73_v22  ;;  %9943 = vmatprep.subr.bf16.mxu1 %v10375_v31  ;;  %v10367_v41 = vld [vmem:[%s15185_s3 + $0x74] ss:$8 sps:$4 sm:$0xff]   ;;  %v10369_v44 = vld [vmem:[%s15185_s3 + $0x70] ss:$8 sps:$4 sm:$0xff]   ;;  %v10371_v45 = vld [vmem:[%s15185_s3 + $0x84] ss:$8 sps:$4 sm:$0xff]  }
   0xc   :  { %v10388_v42 = vld [vmem:[%s15186_s4 + $0x18] sm:$0xff]   ;;  %v10393_v46 = vld [vmem:[%s15186_s4 + $0x20] sm:$0xff]   ;;  %v10395_v47 = vld [vmem:[%s15186_s4 + $0x68] sm:$0xff]  }
   0xd   :  { %317 = vmatpush1.bf16.msra.mxu0 %v10354_v25  ;;  %9944 = vmatpush3.bf16.msra.mxu1 %v10378_v34  ;;  %v10374_v48 = vld [vmem:[%s15185_s3 + $0x80] ss:$8 sps:$4 sm:$0xff]   ;;  %v10376_v49 = vld [vmem:[%s15185_s3 + $0x94] ss:$8 sps:$4 sm:$0xff]   ;;  %v10379_v52 = vld [vmem:[%s15185_s3 + $0x90] ss:$8 sps:$4 sm:$0xff]  }
   0xe   :  { %318 = vmatprep.subr.bf16.mxu0 %v10355_v26  ;;  %9945 = vmatprep.subr.bf16.mxu1 %v10380_v35  ;;  %v10398_v50 = vld [vmem:[%s15186_s4 + $0x28] sm:$0xff]   ;;  %v10400_v51 = vld [vmem:[%s15186_s4 + $0x70] sm:$0xff]   ;;  %v10405_v55 = vld [vmem:[%s15186_s4 + $0x78] sm:$0xff]  }
   0xf   :  { %v10403_v53 = vld [vmem:[%s15186_s4 + $0x30] sm:$0xff]   ;;  %v10381_v54 = vld [vmem:[%s15185_s3 + $0xa4] ss:$8 sps:$4 sm:$0xff]   ;;  %v10384_v56 = vld [vmem:[%s15185_s3 + $0xa0] ss:$8 sps:$4 sm:$0xff]  }
  0x10   :  { %v10386_v57 = vld [vmem:[%s15185_s3 + $0xb4] ss:$8 sps:$4 sm:$0xff]   ;;  %v10410_v59 = vld [vmem:[%s15187_s5 + $0x40] sm:$0xff]   ;;  %v10389_v60 = vld [vmem:[%s15185_s3 + $0xb0] ss:$8 sps:$4 sm:$0xff]  }
  0x11   :  { %319 = vmatpush1.bf16.msra.mxu0 %v10357_v27  ;;  %9946 = vmatpush3.bf16.msra.mxu1 %v10383_v37  ;;  %v10408_v58 = vld [vmem:[%s15186_s4 + $0x38] sm:$0xff]   ;;  %v10391_v61 = vld [vmem:[%s15185_s3 + $0xc4] ss:$8 sps:$4 sm:$0xff]   ;;  %v10394_v62 = vld [vmem:[%s15185_s3 + $0xc0] ss:$8 sps:$4 sm:$0xff]  }
  0x12   :  { %320 = vmatprep.subr.bf16.mxu0 %v10358_v29  ;;  %9947 = vmatprep.subr.bf16.mxu1 %v10385_v39  ;;  %v10396_v63 = vld [vmem:[%s15185_s3 + $0xd4] ss:$8 sps:$4 sm:$0xff]   ;;  %v10399_v0 = vld [vmem:[%s15185_s3 + $0xd0] ss:$8 sps:$4 sm:$0xff]   ;;  %v10401_v1 = vld [vmem:[%s15185_s3 + $0xe4] ss:$8 sps:$4 sm:$0xff]  }
  0x13   :  { %v10404_v2 = vld [vmem:[%s15185_s3 + $0xe0] ss:$8 sps:$4 sm:$0xff]   ;;  %v10406_v3 = vld [vmem:[%s15185_s3 + $0xf4] ss:$8 sps:$4 sm:$0xff]   ;;  %v10409_v4 = vld [vmem:[%s15185_s3 + $0xf0] ss:$8 sps:$4 sm:$0xff]  }
  0x14   :  { %v55_v19 = vld [vmem:[%s15184_s2] sm:$0x3]  ;;  %v11802_v24 = vld [vmem:[%s15183_s1 + $0x28] sm:$0xff]  ;;  %v11805_v34 = vld [vmem:[%s15183_s1 + $0x18] sm:$0xff] }
  0x15   :  { %321 = vmatpush1.bf16.msra.mxu0 %v10360_v32  ;;  %9948 = vmatpush3.bf16.msra.mxu1 %v10388_v42  ;;  %v11803_v26 = vld [vmem:[%s15183_s1 + $0x8] sm:$0xff]  ;;  %v105_v28 = vrot.slane %v55_v19, %v12090_v20  ;;  %v11804_v29 = vld [vmem:[%s15183_s1] sm:$0xff]  ;;  %v101_v31 = vrot.slane %v55_v19, %v12092_v21 }
  0x16   :  { %322 = vmatprep.subr.bf16.mxu0 %v10361_v33  ;;  %9949 = vmatprep.subr.bf16.mxu1 %v10390_v43 }
  0x19   :  { %323 = vmatpush1.bf16.msra.mxu0 %v10363_v36  ;;  %9950 = vmatpush3.bf16.msra.mxu1 %v10393_v46  ;;  %v11806_v36 = vld [vmem:[%s15183_s1 + $0x10] sm:$0xff] }
  0x1a   :  { %324 = vmatprep.subr.bf16.mxu0 %v10364_v38  ;;  %9951 = vmatprep.subr.bf16.mxu1 %v10395_v47  ;;  %v11807_v38 = vld [vmem:[%s15183_s1 + $0x38] sm:$0xff]  ;;  %v10412_v47 = vld [vmem:[%s15187_s5 + $0x48] sm:$0xff]  }
  0x1d   :  { %325 = vmatpush1.bf16.msra.mxu0 %v10366_v40  ;;  %9952 = vmatpush3.bf16.msra.mxu1 %v10398_v50 }
  0x1e   :  { %326 = vmatprep.subr.bf16.mxu0 %v10367_v41  ;;  %9953 = vmatprep.subr.bf16.mxu1 %v10400_v51  ;;  %v11808_v51 = vld [vmem:[%s15183_s1 + $0x20] sm:$0xff] }
  0x21   :  { %327 = vmatpush1.bf16.msra.mxu0 %v10369_v44  ;;  %9954 = vmatpush3.bf16.msra.mxu1 %v10403_v53  ;;  %v11809_v53 = vld [vmem:[%s15183_s1 + $0x30] sm:$0xff] }
  0x22   :  { %328 = vmatprep.subr.bf16.mxu0 %v10371_v45  ;;  %9955 = vmatprep.subr.bf16.mxu1 %v10405_v55  ;;  %v10411_v45 = vld [vmem:[%s15187_s5] sm:$0xff]   ;;  %v10413_v55 = vld [vmem:[%s15187_s5 + $0x8] sm:$0xff]  }
  0x25   :  { %329 = vmatpush1.bf16.msra.mxu0 %v10374_v48  ;;  %9956 = vmatpush3.bf16.msra.mxu1 %v10408_v58 }
  0x26   :  { %330 = vmatprep.subr.bf16.mxu0 %v10376_v49  ;;  %9969 = vmatprep.subr.bf16.mxu1 %v10410_v59  ;;  %v10415_v59 = vld [vmem:[%s15187_s5 + $0x10] sm:$0xff]  }
  0x29   :  { %331 = vmatpush1.bf16.msra.mxu0 %v10379_v52 }
  0x2a   :  { %332 = vmatprep.subr.bf16.mxu0 %v10381_v54 }
  0x2d   :  { %333 = vmatpush1.bf16.msra.mxu0 %v10384_v56  ;;  %v10414_v56 = vld [vmem:[%s15187_s5 + $0x50] sm:$0xff]  }
  0x2e   :  { %334 = vmatprep.subr.bf16.mxu0 %v10386_v57 }
  0x31   :  { %335 = vmatpush1.bf16.msra.mxu0 %v10389_v60  ;;  %v10416_v60 = vld [vmem:[%s15187_s5 + $0x58] sm:$0xff]  }
  0x32   :  { %336 = vmatprep.subr.bf16.mxu0 %v10391_v61 }
  0x35   :  { %337 = vmatpush1.bf16.msra.mxu0 %v10394_v62  ;;  %v10417_v62 = vld [vmem:[%s15187_s5 + $0x18] sm:$0xff]  }
  0x36   :  { %338 = vmatprep.subr.bf16.mxu0 %v10396_v63  ;;  %v10418_v63 = vld [vmem:[%s15187_s5 + $0x60] sm:$0xff]  }
  0x39   :  { %339 = vmatpush1.bf16.msra.mxu0 %v10399_v0  ;;  %v10419_v0 = vld [vmem:[%s15187_s5 + $0x20] sm:$0xff]  }
  0x3a   :  { %340 = vmatprep.subr.bf16.mxu0 %v10401_v1  ;;  %v10420_v1 = vld [vmem:[%s15187_s5 + $0x68] sm:$0xff]  }
  0x3d   :  { %341 = vmatpush1.bf16.msra.mxu0 %v10404_v2  ;;  %v10421_v2 = vld [vmem:[%s15187_s5 + $0x28] sm:$0xff]  }
  0x3e   :  { %342 = vmatprep.subr.bf16.mxu0 %v10406_v3  ;;  %v10422_v3 = vld [vmem:[%s15187_s5 + $0x70] sm:$0xff]  }
  0x41   :  { %343 = vmatpush1.bf16.msra.mxu0 %v10409_v4  ;;  %v10423_v4 = vld [vmem:[%s15187_s5 + $0x30] sm:$0xff]  }
  0x93   :  { %v66_v5 = vpop.xlane.xlu0 %65 }
  0x94   :  { %v77_v6 = vmul.f32 0.00390625, %v66_v5  ;;  %v72_v7 = vpop.xlane.xlu1 %71  ;;  %v10424_v5 = vld [vmem:[%s15187_s5 + $0x78] sm:$0xff]  }
  0x95   :  { %v79_v8 = vmul.f32 0.00390625, %v72_v7 }
  0x96   :  { %v81_v9 = vadd.f32 1e-05, %v77_v6  ;;  %v10425_v6 = vld [vmem:[%s15187_s5 + $0x38] sm:$0xff]  }
  0x97   :  { %v83_v10 = vadd.f32 1e-05, %v79_v8  ;;  %v69_v11 = vpop.xlane.xlu0 %68 }
  0x98   :  { %11442 = vrsqrt.f32 %v81_v9  ;;  %v78_v12 = vmul.f32 0.00390625, %v69_v11  ;;  %v75_v13 = vpop.xlane.xlu1 %74 }
  0x99   :  { %11444 = vrsqrt.f32 %v83_v10  ;;  %v80_v14 = vmul.f32 0.00390625, %v75_v13 }
  0x9a   :  { %v82_v16 = vadd.f32 1e-05, %v78_v12 }
  0x9b   :  { %v84_v17 = vadd.f32 1e-05, %v80_v14 }
  0x9c   :  { %11446 = vrsqrt.f32 %v82_v16 }
  0x9d   :  { %11448 = vrsqrt.f32 %v84_v17 }
  0xa2   :  { %v11443_v22 = vpop.eup %11442 }
  0xa3   :  { %v11445_v23 = vpop.eup %11444  ;;  %v90_v27 = vmul.f32 %v11803_v26, %v11443_v22  ;;  %v89_v30 = vmul.f32 %v11804_v29, %v11443_v22 }
  0xa4   :  { %v94_v25 = vmul.f32 %v11802_v24, %v11445_v23  ;;  %v93_v52 = vmul.f32 %v11808_v51, %v11445_v23 }
  0xa5   :  { %v109_v41 = vmul.f32 %v105_v28, %v90_v27  ;;  %v108_v43 = vmul.f32 %v101_v31, %v89_v30 }
  0xa6   :  { %v11447_v32 = vpop.eup %11446  ;;  %v113_v40 = vmul.f32 %v105_v28, %v94_v25  ;;  %v112_v57 = vmul.f32 %v101_v31, %v93_v52 }
  0xa7   :  { %v11449_v33 = vpop.eup %11448  ;;  %v92_v35 = vmul.f32 %v11805_v34, %v11447_v32  ;;  %v91_v37 = vmul.f32 %v11806_v36, %v11447_v32 }
  0xa8   :  { %v96_v39 = vmul.f32 %v11807_v38, %v11449_v33  ;;  %v95_v54 = vmul.f32 %v11809_v53, %v11449_v33 }
  0xa9   :  { %v111_v42 = vmul.f32 %v105_v28, %v92_v35  ;;  %v110_v44 = vmul.f32 %v101_v31, %v91_v37 }
  0xaa   :  { %v115_v46 = vmul.f32 %v105_v28, %v96_v39  ;;  %v114_v58 = vmul.f32 %v101_v31, %v95_v54 }
  0xab   :  { %v117_v48 = vpack.c.bf16 %v111_v42, %v109_v41  ;;  %v116_v49 = vpack.c.bf16 %v110_v44, %v108_v43 }
  0xac   :  { %v119_v50 = vpack.c.bf16 %v115_v46, %v113_v40  ;;  %v118_v61 = vpack.c.bf16 %v114_v58, %v112_v57 }
  0xad   :  { %344 = vmatprep.mubr.bf16.mxu0 %v117_v48  ;;  %529 = vmatprep.mubr.bf16.mxu1 %v117_v48 }
  0xae   :  { %345 = vmatmul.mubr.bf16.vlgmr.msra.gmra.mrb[0].mxu0 %v116_v49  ;;  %530 = vmatmul.mubr.bf16.vlgmr.msra.gmra.mrb[0].mxu1 %v116_v49 }
  0xaf   :  { %9970 = vmatpush3.bf16.msra.mxu1 %v10411_v45  ;;  %354 = vmatprep.mubr.bf16.mxu0 %v119_v50 }
  0xb0   :  { %537 = vmatprep.mubr.bf16.mxu1 %v119_v50  ;;  %9971 = vmatprep.subr.bf16.mxu1 %v10412_v47 }
  0xb3   :  { %9972 = vmatpush3.bf16.msra.mxu1 %v10413_v55 }
  0xb4   :  { %9973 = vmatprep.subr.bf16.mxu1 %v10414_v56 }
  0xb6   :  { %355 = vmatmul.mubr.bf16.gmra.mrb[4].mxu0 %v118_v61  ;;  %538 = vmatmul.mubr.bf16.gmra.mrb[4].mxu1 %v118_v61 }
  0xb7   :  { %9974 = vmatpush3.bf16.msra.mxu1 %v10415_v59  ;;  %708 = vmatprep.mubr.bf16.mxu1 %v117_v48 }
  0xb8   :  { %9975 = vmatprep.subr.bf16.mxu1 %v10416_v60 }
  0xbb   :  { %9976 = vmatpush3.bf16.msra.mxu1 %v10417_v62 }
  0xbc   :  { %9977 = vmatprep.subr.bf16.mxu1 %v10418_v63 }
  0xbf   :  { %9978 = vmatpush3.bf16.msra.mxu1 %v10419_v0 }
  0xc0   :  { %9979 = vmatprep.subr.bf16.mxu1 %v10420_v1 }
  0xc3   :  { %9980 = vmatpush3.bf16.msra.mxu1 %v10421_v2 }
  0xc4   :  { %9981 = vmatprep.subr.bf16.mxu1 %v10422_v3 }
  0xc7   :  { %9982 = vmatpush3.bf16.msra.mxu1 %v10423_v4 }
  0xc8   :  { %9983 = vmatprep.subr.bf16.mxu1 %v10424_v5 }
  0xcb   :  { %9984 = vmatpush3.bf16.msra.mxu1 %v10425_v6 }
  0xce   :  { %709 = vmatmul.mubr.bf16.vlgmr.msra.gmra.mrb[8].mxu1 %v116_v49 }
  0xcf   :  { %716 = vmatprep.mubr.bf16.mxu1 %v119_v50 }
  0xd6   :  { %717 = vmatmul.mubr.bf16.gmra.mrb[12].mxu1 %v118_v61 }
  0xd7   :  { %17 = vsyncpa [#allocation3], 0  ;;  %vm759_vm0 = vcmask 523264   ;;  %s11846_s21 = smov 64   ;;  %v12203_v55 = vld [vmem:[%s15182_s0] sm:$0xff]  ;;  %vm829_vm1 = vcmask 261120  }
  0xd8   :  { %v12208_v60 = vld [vmem:[%s15182_s0 + $0x8] sm:$0xff]  ;;  %v12213_v61 = vld [vmem:[%s15182_s0 + $0x18] sm:$0xff]  ;;  %v12219_v1 = vld [vmem:[%s15182_s0 + $0x10] sm:$0xff] }
 0x181   :  { %v346_v7 = vpop.f32.mrb[0].mxu0  ;;  %v9957_v8 = vpop.f32.mrb[0].mxu1 }
 0x182   :  { %v348_v9 = vpop.f32.mrb[1].mxu0  ;;  %v9958_v10 = vpop.f32.mrb[1].mxu1 }
 0x183   :  { %v9959_v11 = vadd.f32 %v9958_v10, %v9957_v8  ;;  %v350_v12 = vpop.f32.mrb[2].mxu0  ;;  %v9960_v13 = vpop.f32.mrb[2].mxu1 }
 0x184   :  { %v365_v14 = vpack.c.bf16 %v350_v12, %v346_v7  ;;  %v352_v15 = vpop.f32.mrb[3].mxu0  ;;  %v9961_v16 = vpop.f32.mrb[3].mxu1 }
 0x185   :  { %v12165_v17 = vpack.c.bf16 %v352_v15, %v348_v9  ;;  %v9962_v18 = vadd.f32 %v9961_v16, %v9960_v13 }
 0x186   :  { %935 = vrot.lane.b32.xlu0 %v365_v14, %s11846_s21  ;;  %10121 = vmatprep.mubr.msk.bf16.mxu0 %vm759_vm0, %v365_v14 }
 0x187   :  { %v12169_v19 = vpack.c.bf16 %v9962_v18, %v9959_v11 }
 0x189   :  { %v356_v22 = vpop.f32.mrb[4].mxu0  ;;  %v9963_v23 = vpop.f32.mrb[4].mxu1  ;;  %10325 = vmatprep.subr.msk.bf16.mxu0 %vm759_vm0, %v12169_v19  ;;  %v767_v24 = vsel %vm759_vm0, %v12169_v19, 0 }
 0x18a   :  { %v358_v25 = vpop.f32.mrb[5].mxu0  ;;  %v9964_v26 = vpop.f32.mrb[5].mxu1  ;;  %10118 = vmatpush3.bf16.xpose.msra.mxu0 %v767_v24 }
 0x18b   :  { %v9965_v27 = vadd.f32 %v9964_v26, %v9963_v23  ;;  %v360_v28 = vpop.f32.mrb[6].mxu0  ;;  %v9966_v29 = vpop.f32.mrb[6].mxu1 }
 0x18c   :  { %v367_v30 = vpack.c.bf16 %v360_v28, %v356_v22  ;;  %v362_v31 = vpop.f32.mrb[7].mxu0  ;;  %v9967_v32 = vpop.f32.mrb[7].mxu1 }
 0x18d   :  { %v12175_v33 = vpack.c.bf16 %v362_v31, %v358_v25  ;;  %v9968_v34 = vadd.f32 %v9967_v32, %v9966_v29 }
 0x18e   :  { %937 = vrot.lane.b32.xlu1 %v367_v30, %s11846_s21 }
 0x18f   :  { %v12178_v35 = vpack.c.bf16 %v9968_v34, %v9965_v27 }
 0x191   :  { %10326 = vmatprep.subr.msk.bf16.mxu0 %vm759_vm0, %v12178_v35  ;;  %v770_v36 = vsel %vm759_vm0, %v12178_v35, 0 }
 0x192   :  { %10120 = vmatpush3.bf16.xpose.msra.mxu0 %v770_v36 }
 0x193   :  { %10327 = vmatprep.subr.msk.bf16.mxu0 %vm759_vm0, %v12169_v19 }
 0x199   :  { %10122 = vmatmul.mubr.msk.bf16.vlgmr.msra.gmra.mrb[8].mxu0 %vm759_vm0, %v367_v30 }
 0x19a   :  { %10134 = vmatpush3.bf16.xpose.msra.mxu0 %v767_v24 }
 0x19b   :  { %10328 = vmatprep.subr.msk.bf16.mxu0 %vm759_vm0, %v12178_v35 }
 0x1a1   :  { %v9985_v37 = vpop.f32.mrb[8].mxu1 }
 0x1a2   :  { %v9986_v38 = vpop.f32.mrb[9].mxu1  ;;  %10136 = vmatpush3.bf16.xpose.msra.mxu0 %v770_v36 }
 0x1a3   :  { %v9987_v39 = vadd.f32 %v9986_v38, %v9985_v37  ;;  %v9988_v40 = vpop.f32.mrb[10].mxu1 }
 0x1a4   :  { %v9989_v41 = vpop.f32.mrb[11].mxu1 }
 0x1a5   :  { %v9990_v42 = vadd.f32 %v9989_v41, %v9988_v40 }
 0x1a7   :  { %v12189_v43 = vpack.c.bf16 %v9990_v42, %v9987_v39 }
 0x1a9   :  { %v9991_v44 = vpop.f32.mrb[12].mxu1  ;;  %10125 = vmatprep.subr.bf16.mxu1 %v12189_v43 }
 0x1aa   :  { %v9992_v45 = vpop.f32.mrb[13].mxu1  ;;  %10126 = vmatpush3.bf16.msra.mxu1 %v12189_v43 }
 0x1ab   :  { %v9993_v46 = vadd.f32 %v9992_v45, %v9991_v44  ;;  %v9994_v47 = vpop.f32.mrb[14].mxu1 }
 0x1ac   :  { %v9995_v48 = vpop.f32.mrb[15].mxu1 }
 0x1ad   :  { %v9996_v49 = vadd.f32 %v9995_v48, %v9994_v47 }
 0x1af   :  { %v12193_v50 = vpack.c.bf16 %v9996_v49, %v9993_v46 }
 0x1b1   :  { %10127 = vmatprep.subr.bf16.mxu1 %v12193_v50 }
 0x1b2   :  { %10128 = vmatpush3.bf16.msra.mxu1 %v12193_v50 }
 0x1b3   :  { %10141 = vmatprep.subr.bf16.mxu1 %v12189_v43 }
 0x1f8   :  { %v936_v51 = vpop.permute.xlu0 %935 }
 0x1f9   :  { %10137 = vmatprep.mubr.msk.bf16.mxu0 %vm759_vm0, %v936_v51 }
 0x200   :  { %v938_v52 = vpop.permute.xlu1 %937 }
 0x201   :  { %10138 = vmatmul.mubr.msk.bf16.vlgmr.msra.gmra.mrb[12].mxu0 %vm759_vm0, %v938_v52 }
 0x26c   :  { %v10123_v53 = vpop.f32.mrb[8].mxu0 }
 0x26d   :  { %v806_v54 = vpop.f32.mrb[9].mxu0  ;;  %v823_v62 = vmul.f32 0.125, %v10123_v53  ;;  %v10426_v53 = vld [vmem:[%s15188_s6 + $0x40] ss:$8 sps:$4 sm:$0xff]  }
 0x26e   :  { %v821_v56 = vmul.f32 0.125, %v806_v54  ;;  %v10124_v57 = vpop.f32.mrb[10].mxu0  ;;  %v10428_v54 = vld [vmem:[%s15188_s6 + $0x44] ss:$8 sps:$4 sm:$0xff]  }
 0x26f   :  { %v824_v58 = vmul.f32 0.125, %v10124_v57  ;;  %v809_v59 = vpop.f32.mrb[11].mxu0  ;;  %v827_v6 = vadd.f32 %v823_v62, %v12219_v1  ;;  %1151 = vmatprep.subr.bf16.mxu0 %v10428_v54  ;;  %v10429_v57 = vld [vmem:[%s15188_s6 + $0x50] ss:$8 sps:$4 sm:$0xff]  }
 0x270   :  { %v822_v63 = vmul.f32 0.125, %v809_v59  ;;  %v825_v0 = vadd.f32 %v821_v56, %v12203_v55  ;;  %v10431_v56 = vld [vmem:[%s15188_s6 + $0x54] ss:$8 sps:$4 sm:$0xff]   ;;  %1152 = vmatpush1.bf16.msra.mxu0 %v10426_v53 }
 0x271   :  { %v828_v4 = vadd.f32 %v824_v58, %v12213_v61  ;;  %v836_v8 = vsel %vm829_vm1, %v827_v6, -inf  ;;  %1153 = vmatprep.subr.bf16.mxu0 %v10431_v56 }
 0x272   :  { %v830_v2 = vsel %vm829_vm1, %v825_v0, -inf  ;;  %v826_v3 = vadd.f32 %v822_v63, %v12208_v60 }
 0x273   :  { %831 = vmax.xlane.f32.xlu1 %v830_v2  ;;  %v839_v7 = vsel %vm829_vm1, %v828_v4, -inf }
 0x274   :  { %v833_v5 = vsel %vm829_vm1, %v826_v3, -inf  ;;  %1154 = vmatpush1.bf16.msra.mxu0 %v10429_v57 }
 0x275   :  { %834 = vmax.xlane.f32.xlu0 %v833_v5 }
 0x277   :  { %840 = vmax.xlane.f32.xlu1 %v839_v7 }
 0x279   :  { %837 = vmax.xlane.f32.xlu0 %v836_v8 }
 0x2d4   :  { %v10139_v9 = vpop.f32.mrb[12].mxu0 }
 0x2d5   :  { %v979_v10 = vpop.f32.mrb[13].mxu0  ;;  %v996_v11 = vmul.f32 0.125, %v10139_v9 }
 0x2d6   :  { %v994_v12 = vmul.f32 0.125, %v979_v10  ;;  %v10140_v13 = vpop.f32.mrb[14].mxu0 }
 0x2d7   :  { %v982_v14 = vpop.f32.mrb[15].mxu0  ;;  %v997_v15 = vmul.f32 0.125, %v10140_v13  ;;  %v1000_v24 = vadd.f32 %v996_v11, %v12219_v1 }
 0x2d8   :  { %v995_v16 = vmul.f32 0.125, %v982_v14  ;;  %v998_v18 = vadd.f32 %v994_v12, %v12203_v55 }
 0x2d9   :  { %v1001_v26 = vadd.f32 %v997_v15, %v12213_v61  ;;  %v1008_v27 = vsel %vm829_vm1, %v1000_v24, -inf }
 0x2da   :  { %v1002_v22 = vsel %vm829_vm1, %v998_v18, -inf  ;;  %v999_v23 = vadd.f32 %v995_v16, %v12208_v60 }
 0x2db   :  { %1003 = vmax.xlane.f32.xlu0 %v1002_v22  ;;  %v1011_v28 = vsel %vm829_vm1, %v1001_v26, -inf  ;;  %v10434_v22 = vld [vmem:[%s15188_s6 + $0x64] ss:$8 sps:$4 sm:$0xff]  }
 0x2dc   :  { %v1005_v25 = vsel %vm829_vm1, %v999_v23, -inf  ;;  %1155 = vmatprep.subr.bf16.mxu0 %v10434_v22 }
 0x2dd   :  { %1006 = vmax.xlane.f32.xlu1 %v1005_v25 }
 0x2df   :  { %1009 = vmax.xlane.f32.xlu0 %v1008_v27 }
 0x2e1   :  { %1012 = vmax.xlane.f32.xlu1 %v1011_v28 }
 0x300   :  { %v832_v29 = vpop.xlane.xlu1 %831 }
 0x301   :  { %v842_v30 = vsub.f32 %v825_v0, %v832_v29 }
 0x302   :  { %v835_v31 = vpop.xlane.xlu0 %834 }
 0x303   :  { %v846_v32 = vmul.f32 1.442695, %v842_v30  ;;  %v843_v34 = vsub.f32 %v826_v3, %v835_v31 }
 0x304   :  { %v841_v36 = vpop.xlane.xlu1 %840 }
 0x305   :  { %11450 = vpow2.f32 %v846_v32  ;;  %v848_v37 = vmul.f32 1.442695, %v843_v34  ;;  %v845_v38 = vsub.f32 %v828_v4, %v841_v36 }
 0x306   :  { %v838_v39 = vpop.xlane.xlu0 %837 }
 0x307   :  { %11452 = vpow2.f32 %v848_v37  ;;  %v852_v40 = vmul.f32 1.442695, %v845_v38  ;;  %v844_v41 = vsub.f32 %v827_v6, %v838_v39  ;;  %v10440_v39 = vld [vmem:[%s15188_s6 + $0x4] ss:$8 sps:$4 sm:$0xff]  }
 0x309   :  { %11454 = vpow2.f32 %v852_v40  ;;  %v850_v42 = vmul.f32 1.442695, %v844_v41 }
 0x30b   :  { %11456 = vpow2.f32 %v850_v42 }
 0x30f   :  { %v12236_v44 = vpop.eup %11450 }
 0x310   :  { %v854_v45 = vsel %vm829_vm1, %v12236_v44, 0.0 }
 0x311   :  { %v12240_v46 = vpop.eup %11452  ;;  %855 = vadd.xlane.f32.xlu0 %v854_v45  ;;  %v11847_v45 = vmov 0  }
 0x312   :  { %v857_v47 = vsel %vm829_vm1, %v12240_v46, 0.0  ;;  %1183 = vmatprep.mubr.bf16.mxu0 %v11847_v45 }
 0x313   :  { %v12244_v48 = vpop.eup %11454  ;;  %858 = vadd.xlane.f32.xlu1 %v857_v47 }
 0x314   :  { %v863_v51 = vsel %vm829_vm1, %v12244_v48, 0.0 }
 0x315   :  { %v12246_v49 = vpop.eup %11456 }
 0x316   :  { %v860_v52 = vsel %vm829_vm1, %v12246_v49, 0.0 }
 0x317   :  { %864 = vadd.xlane.f32.xlu1 %v863_v51  ;;  %861 = vadd.xlane.f32.xlu0 %v860_v52 }
 0x368   :  { %v1004_v58 = vpop.xlane.xlu0 %1003 }
 0x369   :  { %v1014_v59 = vsub.f32 %v998_v18, %v1004_v58  ;;  %v10432_v18 = vld [vmem:[%s15188_s6 + $0x60] ss:$8 sps:$4 sm:$0xff]  }
 0x36a   :  { %v1007_v62 = vpop.xlane.xlu1 %1006  ;;  %1156 = vmatpush1.bf16.msra.mxu0 %v10432_v18  ;;  %v10438_v58 = vld [vmem:[%s15188_s6] ss:$8 sps:$4 sm:$0xff]  }
 0x36b   :  { %v1018_v63 = vmul.f32 1.442695, %v1014_v59  ;;  %v1015_v0 = vsub.f32 %v999_v23, %v1007_v62  ;;  %v10437_v23 = vld [vmem:[%s15188_s6 + $0x74] ss:$8 sps:$4 sm:$0xff]  }
 0x36c   :  { %v1010_v2 = vpop.xlane.xlu0 %1009  ;;  %1157 = vmatprep.subr.bf16.mxu0 %v10437_v23  ;;  %v10443_v62 = vld [vmem:[%s15188_s6 + $0x14] ss:$8 sps:$4 sm:$0xff]  }
 0x36d   :  { %11458 = vpow2.f32 %v1018_v63  ;;  %v1020_v3 = vmul.f32 1.442695, %v1015_v0  ;;  %v1016_v4 = vsub.f32 %v1000_v24, %v1010_v2  ;;  %v10435_v24 = vld [vmem:[%s15188_s6 + $0x70] ss:$8 sps:$4 sm:$0xff]   ;;  %v10446_v0 = vld [vmem:[%s15188_s6 + $0x24] ss:$8 sps:$4 sm:$0xff]  }
 0x36e   :  { %v1013_v5 = vpop.xlane.xlu1 %1012  ;;  %1158 = vmatpush1.bf16.msra.mxu0 %v10435_v24  ;;  %v10441_v63 = vld [vmem:[%s15188_s6 + $0x10] ss:$8 sps:$4 sm:$0xff]   ;;  %v10444_v2 = vld [vmem:[%s15188_s6 + $0x20] ss:$8 sps:$4 sm:$0xff]  }
 0x36f   :  { %11460 = vpow2.f32 %v1020_v3  ;;  %v1022_v6 = vmul.f32 1.442695, %v1016_v4  ;;  %v1017_v7 = vsub.f32 %v1001_v26, %v1013_v5  ;;  %v10449_v3 = vld [vmem:[%s15188_s6 + $0x34] ss:$8 sps:$4 sm:$0xff]   ;;  %v10447_v4 = vld [vmem:[%s15188_s6 + $0x30] ss:$8 sps:$4 sm:$0xff]  }
 0x371   :  { %11462 = vpow2.f32 %v1022_v6  ;;  %v1024_v8 = vmul.f32 1.442695, %v1017_v7 }
 0x373   :  { %11464 = vpow2.f32 %v1024_v8 }
 0x377   :  { %v11459_v9 = vpop.eup %11458 }
 0x378   :  { %v1026_v10 = vsel %vm829_vm1, %v11459_v9, 0.0 }
 0x379   :  { %v11461_v11 = vpop.eup %11460  ;;  %1027 = vadd.xlane.f32.xlu0 %v1026_v10 }
 0x37a   :  { %v1029_v12 = vsel %vm829_vm1, %v11461_v11, 0.0 }
 0x37b   :  { %v11463_v13 = vpop.eup %11462  ;;  %1030 = vadd.xlane.f32.xlu1 %v1029_v12 }
 0x37c   :  { %v1032_v14 = vsel %vm829_vm1, %v11463_v13, 0.0 }
 0x37d   :  { %v11465_v15 = vpop.eup %11464  ;;  %1033 = vadd.xlane.f32.xlu0 %v1032_v14 }
 0x37e   :  { %v1035_v16 = vsel %vm829_vm1, %v11465_v15, 0.0 }
 0x37f   :  { %1036 = vadd.xlane.f32.xlu1 %v1035_v16 }
 0x390   :  { %1307 = vrot.lane.b32.xlu1 %v12178_v35, %s11846_s21 }
 0x393   :  { %1305 = vrot.lane.b32.xlu0 %v12169_v19, %s11846_s21 }
 0x39e   :  { %v856_v25 = vpop.xlane.xlu0 %855 }
 0x39f   :  { %11466 = vrcp.f32 %v856_v25 }
 0x3a0   :  { %v859_v26 = vpop.xlane.xlu1 %858 }
 0x3a1   :  { %11468 = vrcp.f32 %v859_v26 }
 0x3a4   :  { %v865_v27 = vpop.xlane.xlu1 %864  ;;  %v862_v28 = vpop.xlane.xlu0 %861 }
 0x3a5   :  { %11470 = vrcp.f32 %v865_v27 }
 0x3a6   :  { %11472 = vrcp.f32 %v862_v28 }
 0x3a9   :  { %v11467_v29 = vpop.eup %11466 }
 0x3aa   :  { %v870_v31 = vmul.f32 %v11467_v29, %v12236_v44 }
 0x3ab   :  { %v11469_v30 = vpop.eup %11468 }
 0x3ac   :  { %v871_v32 = vmul.f32 %v11469_v30, %v12240_v46 }
 0x3ae   :  { %v874_v34 = vpack.c.bf16 %v871_v32, %v870_v31 }
 0x3af   :  { %v11471_v35 = vpop.eup %11470 }
 0x3b0   :  { %v11473_v36 = vpop.eup %11472  ;;  %v873_v37 = vmul.f32 %v11471_v35, %v12244_v48  ;;  %10129 = vmatprep.mubr.msk.bf16.mxu1 %vm829_vm1, %v874_v34 }
 0x3b1   :  { %v872_v19 = vmul.f32 %v11473_v36, %v12246_v49 }
 0x3b3   :  { %v875_v38 = vpack.c.bf16 %v873_v37, %v872_v19 }
 0x3b5   :  { %10130 = vmatmul.mubr.msk.bf16.vlgmr.msra.gmra.mrb[16].mxu1 %vm829_vm1, %v875_v38 }
 0x3b6   :  { %10142 = vmatpush3.bf16.msra.mxu1 %v12189_v43 }
 0x3b7   :  { %10143 = vmatprep.subr.bf16.mxu1 %v12193_v50 }
 0x3ba   :  { %10144 = vmatpush3.bf16.msra.mxu1 %v12193_v50 }
 0x3bb   :  { %1250 = vmatprep.subr.bf16.mxu1 %v10440_v39 }
 0x406   :  { %v1028_v40 = vpop.xlane.xlu0 %1027 }
 0x407   :  { %11474 = vrcp.f32 %v1028_v40 }
 0x408   :  { %v1031_v41 = vpop.xlane.xlu1 %1030 }
 0x409   :  { %11476 = vrcp.f32 %v1031_v41 }
 0x40a   :  { %v1034_v42 = vpop.xlane.xlu0 %1033 }
 0x40b   :  { %11478 = vrcp.f32 %v1034_v42 }
 0x40c   :  { %v1037_v44 = vpop.xlane.xlu1 %1036 }
 0x40d   :  { %11480 = vrcp.f32 %v1037_v44 }
 0x40e   :  { %v12297_v46 = vpop.permute.xlu0 %1305 }
 0x40f   :  { %10329 = vmatprep.subr.msk.bf16.mxu0 %vm759_vm0, %v12297_v46  ;;  %v12332_v18 = vsel %vm759_vm0, %v12297_v46, 0 }
 0x410   :  { %v12334_v22 = vpop.permute.xlu1 %1307 }
 0x411   :  { %v11475_v47 = vpop.eup %11474  ;;  %v12343_v23 = vsel %vm759_vm0, %v12334_v22, 0 }
 0x412   :  { %v1042_v49 = vmul.f32 %v11475_v47, %v11459_v9 }
 0x413   :  { %v11477_v48 = vpop.eup %11476 }
 0x414   :  { %v1043_v51 = vmul.f32 %v11477_v48, %v11461_v11 }
 0x415   :  { %v11479_v52 = vpop.eup %11478 }
 0x416   :  { %v1046_v53 = vpack.c.bf16 %v1043_v51, %v1042_v49  ;;  %v1044_v56 = vmul.f32 %v11479_v52, %v11463_v13 }
 0x417   :  { %v11481_v54 = vpop.eup %11480 }
 0x418   :  { %v1045_v57 = vmul.f32 %v11481_v54, %v11465_v15  ;;  %10145 = vmatprep.mubr.msk.bf16.mxu1 %vm829_vm1, %v1046_v53 }
 0x41a   :  { %v1047_v59 = vpack.c.bf16 %v1045_v57, %v1044_v56 }
 0x41c   :  { %10146 = vmatmul.mubr.msk.bf16.vlgmr.msra.gmra.mrb[20].mxu1 %vm829_vm1, %v1047_v59 }
 0x41d   :  { %1251 = vmatpush1.bf16.msra.mxu1 %v10438_v58  ;;  %1282 = vmatprep.mubr.bf16.mxu1 %v11847_v45 }
 0x41e   :  { %1252 = vmatprep.subr.bf16.mxu1 %v10443_v62 }
 0x421   :  { %1253 = vmatpush1.bf16.msra.mxu1 %v10441_v63 }
 0x422   :  { %1254 = vmatprep.subr.bf16.mxu1 %v10446_v0 }
 0x425   :  { %1255 = vmatpush1.bf16.msra.mxu1 %v10444_v2 }
 0x426   :  { %1256 = vmatprep.subr.bf16.mxu1 %v10449_v3 }
 0x429   :  { %1257 = vmatpush1.bf16.msra.mxu1 %v10447_v4 }
 0x488   :  { %v10131_v5 = vpop.f32.mrb[16].mxu1 }
 0x489   :  { %v916_v6 = vpop.f32.mrb[17].mxu1 }
 0x48a   :  { %v10132_v7 = vpop.f32.mrb[18].mxu1 }
 0x48b   :  { %v932_v8 = vpack.c.bf16 %v10132_v7, %v10131_v5  ;;  %v919_v9 = vpop.f32.mrb[19].mxu1 }
 0x48c   :  { %v931_v10 = vpack.c.bf16 %v919_v9, %v916_v6 }
 0x48e   :  { %8769 = vmatmul.mubr.msk.bf16.vlgmr.msra.gmra.mrb[24].mxu1 %vm759_vm0, %v931_v10 }
 0x48f   :  { %1292 = vmatprep.mubr.bf16.mxu1 %v11847_v45 }
 0x496   :  { %8770 = vmatmul.mubr.msk.bf16.gmra.mrb[28].mxu1 %vm759_vm0, %v932_v8 }
 0x497   :  { %1567 = vmatprep.mubr.bf16.mxu1 %v11847_v45 }
 0x4ef   :  { %v10147_v11 = vpop.f32.mrb[20].mxu1 }
 0x4f0   :  { %v1088_v12 = vpop.f32.mrb[21].mxu1 }
 0x4f1   :  { %v10148_v13 = vpop.f32.mrb[22].mxu1 }
 0x4f2   :  { %v1104_v14 = vpack.c.bf16 %v10148_v13, %v10147_v11  ;;  %v1091_v15 = vpop.f32.mrb[23].mxu1  ;;  %v10452_v13 = vld [vmem:[%s15188_s6 + $0x84] ss:$8 sps:$4 sm:$0xff]  }
 0x4f3   :  { %v1103_v16 = vpack.c.bf16 %v1091_v15, %v1088_v12  ;;  %v10450_v12 = vld [vmem:[%s15188_s6 + $0x80] ss:$8 sps:$4 sm:$0xff]   ;;  %1535 = vmatprep.subr.bf16.mxu1 %v10452_v13 }
 0x4f4   :  { %1536 = vmatpush1.bf16.msra.mxu1 %v10450_v12 }
 0x4f5   :  { %8759 = vmatmul.mubr.msk.bf16.vlgmr.msra.gmra.mrb[16].mxu0 %vm759_vm0, %v1103_v16 }
 0x4f6   :  { %10150 = vmatpush3.bf16.xpose.msra.mxu0 %v12332_v18  ;;  %1193 = vmatprep.mubr.bf16.mxu0 %v11847_v45 }
 0x4f7   :  { %10330 = vmatprep.subr.msk.bf16.mxu0 %vm759_vm0, %v12334_v22 }
 0x4fd   :  { %8760 = vmatmul.mubr.msk.bf16.gmra.mrb[20].mxu0 %vm759_vm0, %v1104_v14 }
 0x4fe   :  { %10152 = vmatpush3.bf16.xpose.msra.mxu0 %v12343_v23  ;;  %10153 = vmatprep.mubr.msk.bf16.mxu0 %vm759_vm0, %v12165_v17 }
 0x505   :  { %10154 = vmatmul.mubr.msk.bf16.vlgmr.msra.gmra.mrb[24].mxu0 %vm759_vm0, %v12175_v33 }
 0x5c8   :  { %v12350_v24 = vpop.f32.mrb[16].mxu0 }
 0x5c9   :  { %v12352_v25 = vpop.f32.mrb[17].mxu0 }
 0x5ca   :  { %v12354_v26 = vpop.f32.mrb[18].mxu0 }
 0x5cb   :  { %v12356_v27 = vpop.f32.mrb[19].mxu0 }
 0x5d0   :  { %v12358_v28 = vpop.f32.mrb[20].mxu0 }
 0x5d1   :  { %v12360_v29 = vpop.f32.mrb[21].mxu0 }
 0x5d2   :  { %v12362_v30 = vpop.f32.mrb[22].mxu0 }
 0x5d3   :  { %v12364_v31 = vpop.f32.mrb[23].mxu0 }
 0x5d8   :  { %v10155_v32 = vpop.f32.mrb[24].mxu0 }
 0x5d9   :  { %v1355_v34 = vpop.f32.mrb[25].mxu0  ;;  %v1372_v38 = vmul.f32 0.125, %v10155_v32 }
 0x5da   :  { %v1370_v35 = vmul.f32 0.125, %v1355_v34  ;;  %v10156_v36 = vpop.f32.mrb[26].mxu0 }
 0x5db   :  { %v1373_v37 = vmul.f32 0.125, %v10156_v36  ;;  %v1358_v19 = vpop.f32.mrb[27].mxu0  ;;  %v1376_v48 = vadd.f32 %v1372_v38, %v12219_v1 }
 0x5dc   :  { %v1371_v39 = vmul.f32 0.125, %v1358_v19  ;;  %v1374_v40 = vadd.f32 %v1370_v35, %v12203_v55 }
 0x5dd   :  { %v1377_v44 = vadd.f32 %v1373_v37, %v12213_v61  ;;  %v1384_v51 = vsel %vm829_vm1, %v1376_v48, -inf }
 0x5de   :  { %v1378_v41 = vsel %vm829_vm1, %v1374_v40, -inf  ;;  %v1375_v42 = vadd.f32 %v1371_v39, %v12208_v60 }
 0x5df   :  { %1379 = vmax.xlane.f32.xlu1 %v1378_v41  ;;  %v1387_v49 = vsel %vm829_vm1, %v1377_v44, -inf }
 0x5e0   :  { %v1381_v47 = vsel %vm829_vm1, %v1375_v42, -inf }
 0x5e1   :  { %1382 = vmax.xlane.f32.xlu0 %v1381_v47 }
 0x5e3   :  { %1388 = vmax.xlane.f32.xlu1 %v1387_v49  ;;  %v10461_v49 = vld [vmem:[%s15188_s6 + $0xb4] ss:$8 sps:$4 sm:$0xff]  }
 0x5e5   :  { %1385 = vmax.xlane.f32.xlu0 %v1384_v51 }
 0x66c   :  { %v1380_v52 = vpop.xlane.xlu1 %1379 }
 0x66d   :  { %v1390_v57 = vsub.f32 %v1374_v40, %v1380_v52 }
 0x66e   :  { %v1383_v53 = vpop.xlane.xlu0 %1382 }
 0x66f   :  { %v1391_v54 = vsub.f32 %v1375_v42, %v1383_v53  ;;  %v1394_v2 = vmul.f32 1.442695, %v1390_v57 }
 0x670   :  { %v1389_v56 = vpop.xlane.xlu1 %1388 }
 0x671   :  { %v1393_v58 = vsub.f32 %v1377_v44, %v1389_v56  ;;  %v1396_v59 = vmul.f32 1.442695, %v1391_v54 }
 0x672   :  { %v1386_v62 = vpop.xlane.xlu0 %1385 }
 0x673   :  { %v1400_v63 = vmul.f32 1.442695, %v1393_v58  ;;  %v1392_v0 = vsub.f32 %v1376_v48, %v1386_v62 }
 0x675   :  { %11482 = vpow2.f32 %v1400_v63  ;;  %v1398_v3 = vmul.f32 1.442695, %v1392_v0 }
 0x676   :  { %11484 = vpow2.f32 %v1396_v59 }
 0x677   :  { %11486 = vpow2.f32 %v1398_v3 }
 0x678   :  { %11488 = vpow2.f32 %v1394_v2 }
 0x67f   :  { %v11483_v4 = vpop.eup %11482 }
 0x680   :  { %v11485_v5 = vpop.eup %11484  ;;  %v1411_v6 = vsel %vm829_vm1, %v11483_v4, 0.0 }
 0x681   :  { %v11487_v7 = vpop.eup %11486  ;;  %1412 = vadd.xlane.f32.xlu1 %v1411_v6  ;;  %v1405_v10 = vsel %vm829_vm1, %v11485_v5, 0.0 }
 0x682   :  { %v1408_v8 = vsel %vm829_vm1, %v11487_v7, 0.0  ;;  %v11489_v9 = vpop.eup %11488 }
 0x683   :  { %1409 = vadd.xlane.f32.xlu0 %v1408_v8  ;;  %v1402_v11 = vsel %vm829_vm1, %v11489_v9, 0.0 }
 0x685   :  { %1406 = vadd.xlane.f32.xlu1 %v1405_v10 }
 0x687   :  { %1403 = vadd.xlane.f32.xlu0 %v1402_v11 }
 0x696   :  { %1428 = vrot.lane.b32.xlu1 %v12193_v50, %s11846_s21  ;;  %v10455_v50 = vld [vmem:[%s15188_s6 + $0x94] ss:$8 sps:$4 sm:$0xff]  }
 0x697   :  { %1537 = vmatprep.subr.bf16.mxu1 %v10455_v50 }
 0x69a   :  { %1598 = vrot.lane.b32.xlu1 %v12165_v17, %s11846_s21  ;;  %v10453_v17 = vld [vmem:[%s15188_s6 + $0x90] ss:$8 sps:$4 sm:$0xff]  }
 0x69b   :  { %1538 = vmatpush1.bf16.msra.mxu1 %v10453_v17 }
 0x69d   :  { %1426 = vrot.lane.b32.xlu0 %v12189_v43, %s11846_s21  ;;  %v10456_v43 = vld [vmem:[%s15188_s6 + $0xa0] ss:$8 sps:$4 sm:$0xff]  }
 0x69e   :  { %1600 = vrot.lane.b32.xlu1 %v12175_v33, %s11846_s21  ;;  %v10458_v33 = vld [vmem:[%s15188_s6 + $0xa4] ss:$8 sps:$4 sm:$0xff]  }
 0x69f   :  { %1539 = vmatprep.subr.bf16.mxu1 %v10458_v33 }
 0x6a0   :  { %1540 = vmatpush1.bf16.msra.mxu1 %v10456_v43 }
 0x6a1   :  { %1541 = vmatprep.subr.bf16.mxu1 %v10461_v49 }
 0x70e   :  { %v1413_v14 = vpop.xlane.xlu1 %1412 }
 0x710   :  { %v1410_v15 = vpop.xlane.xlu0 %1409 }
 0x711   :  { %11490 = vrcp.f32 %v1410_v15 }
 0x712   :  { %v1407_v16 = vpop.xlane.xlu1 %1406 }
 0x713   :  { %11492 = vrcp.f32 %v1407_v16 }
 0x714   :  { %11494 = vrcp.f32 %v1413_v14  ;;  %v1404_v32 = vpop.xlane.xlu0 %1403 }
 0x715   :  { %11496 = vrcp.f32 %v1404_v32 }
 0x716   :  { %v1429_v35 = vpop.permute.xlu1 %1428 }
 0x718   :  { %v1427_v34 = vpop.permute.xlu0 %1426 }
 0x719   :  { %10157 = vmatprep.subr.bf16.mxu0 %v1427_v34 }
 0x71a   :  { %10158 = vmatpush3.bf16.msra.mxu0 %v1427_v34  ;;  %v1599_v48 = vpop.permute.xlu1 %1598 }
 0x71b   :  { %10159 = vmatprep.subr.bf16.mxu0 %v1429_v35  ;;  %v11491_v36 = vpop.eup %11490 }
 0x71c   :  { %v1420_v39 = vmul.f32 %v11491_v36, %v11487_v7 }
 0x71d   :  { %v11493_v37 = vpop.eup %11492 }
 0x71e   :  { %v11495_v19 = vpop.eup %11494  ;;  %10160 = vmatpush3.bf16.msra.mxu0 %v1429_v35  ;;  %v1419_v41 = vmul.f32 %v11493_v37, %v11485_v5 }
 0x71f   :  { %v11497_v38 = vpop.eup %11496  ;;  %10331 = vmatprep.subr.msk.bf16.mxu0 %vm759_vm0, %v12297_v46  ;;  %v1421_v42 = vmul.f32 %v11495_v19, %v11483_v4  ;;  %v1601_v46 = vpop.permute.xlu1 %1600 }
 0x720   :  { %v1418_v40 = vmul.f32 %v11497_v38, %v11489_v9  ;;  %v10462_v38 = vld [vmem:[%s15188_s6 + $0xc0] ss:$8 sps:$4 sm:$0xff]  }
 0x721   :  { %v1423_v47 = vpack.c.bf16 %v1421_v42, %v1420_v39  ;;  %v10464_v39 = vld [vmem:[%s15188_s6 + $0xc4] ss:$8 sps:$4 sm:$0xff]  }
 0x722   :  { %v1422_v44 = vpack.c.bf16 %v1419_v41, %v1418_v40  ;;  %v10467_v40 = vld [vmem:[%s15188_s6 + $0xd4] ss:$8 sps:$4 sm:$0xff]   ;;  %v10465_v41 = vld [vmem:[%s15188_s6 + $0xd0] ss:$8 sps:$4 sm:$0xff]   ;;  %v10470_v42 = vld [vmem:[%s15188_s6 + $0xe4] ss:$8 sps:$4 sm:$0xff]  }
 0x724   :  { %10161 = vmatprep.mubr.msk.bf16.mxu0 %vm829_vm1, %v1422_v44  ;;  %v10468_v44 = vld [vmem:[%s15188_s6 + $0xe0] ss:$8 sps:$4 sm:$0xff]  }
 0x725   :  { %10162 = vmatmul.mubr.msk.bf16.vlgmr.msra.gmra.mrb[28].mxu0 %vm829_vm1, %v1423_v47 }
 0x726   :  { %10169 = vmatprep.mubr.msk.bf16.mxu0 %vm759_vm0, %v1599_v48 }
 0x727   :  { %10166 = vmatpush3.bf16.xpose.msra.mxu0 %v12332_v18  ;;  %v10459_v18 = vld [vmem:[%s15188_s6 + $0xb0] ss:$8 sps:$4 sm:$0xff]  }
 0x728   :  { %10332 = vmatprep.subr.msk.bf16.mxu0 %vm759_vm0, %v12334_v22  ;;  %1542 = vmatpush1.bf16.msra.mxu1 %v10459_v18 }
 0x729   :  { %1814 = vmatprep.subr.bf16.mxu1 %v10464_v39  ;;  %v10510_v39 = vld [vmem:[%s15190_s8 + $0x120] ss:$24 sps:$4 sm:$0xff]  }
 0x72f   :  { %10168 = vmatpush3.bf16.xpose.msra.mxu0 %v12343_v23 }
 0x730   :  { %10173 = vmatprep.subr.bf16.mxu0 %v1427_v34 }
 0x736   :  { %10170 = vmatmul.mubr.msk.bf16.vlgmr.msra.gmra.mrb[32].mxu0 %vm759_vm0, %v1601_v46 }
 0x737   :  { %10174 = vmatpush3.bf16.msra.mxu0 %v1427_v34 }
 0x738   :  { %10175 = vmatprep.subr.bf16.mxu0 %v1429_v35 }
 0x73b   :  { %10176 = vmatpush3.bf16.msra.mxu0 %v1429_v35 }
 0x7f8   :  { %v10163_v22 = vpop.f32.mrb[28].mxu0 }
 0x7f9   :  { %v1472_v51 = vpop.f32.mrb[29].mxu0 }
 0x7fa   :  { %v10164_v23 = vpop.f32.mrb[30].mxu0 }
 0x7fb   :  { %v1488_v52 = vpack.c.bf16 %v10164_v23, %v10163_v22  ;;  %v1475_v53 = vpop.f32.mrb[31].mxu0 }
 0x7fc   :  { %v1487_v54 = vpack.c.bf16 %v1475_v53, %v1472_v51 }
 0x7fe   :  { %8783 = vmatmul.mubr.msk.bf16.vlgmr.msra.gmra.mrb[24].mxu1 %vm759_vm0, %v1487_v54 }
 0x7ff   :  { %1577 = vmatprep.mubr.bf16.mxu1 %v11847_v45  ;;  %1815 = vmatpush1.bf16.msra.mxu1 %v10462_v38  ;;  %v10515_v38 = vld [vmem:[%s15191_s9 + $0x124] ss:$24 sps:$4 sm:$0xff]  }
 0x800   :  { %1816 = vmatprep.subr.bf16.mxu1 %v10467_v40  ;;  %v10513_v40 = vld [vmem:[%s15191_s9 + $0x120] ss:$24 sps:$4 sm:$0xff]  }
 0x803   :  { %1817 = vmatpush1.bf16.msra.mxu1 %v10465_v41  ;;  %v10518_v41 = vld [vmem:[%s15190_s8 + $0x154] ss:$24 sps:$4 sm:$0xff]  }
 0x804   :  { %1818 = vmatprep.subr.bf16.mxu1 %v10470_v42  ;;  %v10521_v42 = vld [vmem:[%s15191_s9 + $0x154] ss:$24 sps:$4 sm:$0xff]  }
 0x806   :  { %8784 = vmatmul.mubr.msk.bf16.gmra.mrb[28].mxu1 %vm759_vm0, %v1488_v52 }
 0x807   :  { %1846 = vmatprep.mubr.bf16.mxu1 %v11847_v45  ;;  %1819 = vmatpush1.bf16.msra.mxu1 %v10468_v44  ;;  %v10516_v44 = vld [vmem:[%s15190_s8 + $0x150] ss:$24 sps:$4 sm:$0xff]  }
 0x809   :  { %v10171_v56 = vpop.f32.mrb[32].mxu0 }
 0x80a   :  { %v1642_v57 = vpop.f32.mrb[33].mxu0  ;;  %v1659_v58 = vmul.f32 0.125, %v10171_v56 }
 0x80b   :  { %v1657_v59 = vmul.f32 0.125, %v1642_v57  ;;  %v10172_v62 = vpop.f32.mrb[34].mxu0 }
 0x80c   :  { %v1645_v63 = vpop.f32.mrb[35].mxu0  ;;  %v1660_v3 = vmul.f32 0.125, %v10172_v62  ;;  %v1663_v6 = vadd.f32 %v1659_v58, %v12219_v1  ;;  %v10471_v62 = vld [vmem:[%s15188_s6 + $0xf0] ss:$8 sps:$4 sm:$0xff]  }
 0x80d   :  { %v1658_v0 = vmul.f32 0.125, %v1645_v63  ;;  %v1661_v2 = vadd.f32 %v1657_v59, %v12203_v55  ;;  %v10473_v59 = vld [vmem:[%s15188_s6 + $0xf4] ss:$8 sps:$4 sm:$0xff]  }
 0x80e   :  { %v1671_v8 = vsel %vm829_vm1, %v1663_v6, -inf  ;;  %v1664_v9 = vadd.f32 %v1660_v3, %v12213_v61  ;;  %1820 = vmatprep.subr.bf16.mxu1 %v10473_v59 }
 0x80f   :  { %v1665_v4 = vsel %vm829_vm1, %v1661_v2, -inf  ;;  %v1662_v5 = vadd.f32 %v1658_v0, %v12208_v60  ;;  %1821 = vmatpush1.bf16.msra.mxu1 %v10471_v62 }
 0x810   :  { %1666 = vmax.xlane.f32.xlu0 %v1665_v4  ;;  %v1674_v10 = vsel %vm829_vm1, %v1664_v9, -inf }
 0x811   :  { %v1668_v7 = vsel %vm829_vm1, %v1662_v5, -inf }
 0x812   :  { %1669 = vmax.xlane.f32.xlu1 %v1668_v7  ;;  %v10476_v7 = vld [vmem:[%s15190_s8 + $0x4] ss:$24 sps:$4 sm:$0xff]  }
 0x813   :  { %2523 = vmatprep.subr.bf16.mxu0 %v10476_v7 }
 0x814   :  { %1672 = vmax.xlane.f32.xlu0 %v1671_v8  ;;  %v10477_v8 = vld [vmem:[%s15191_s9] ss:$24 sps:$4 sm:$0xff]  }
 0x818   :  { %1675 = vmax.xlane.f32.xlu0 %v1674_v10  ;;  %v10482_v10 = vld [vmem:[%s15190_s8 + $0x34] ss:$24 sps:$4 sm:$0xff]  }
 0x89d   :  { %v1667_v55 = vpop.xlane.xlu0 %1666 }
 0x89e   :  { %v1677_v11 = vsub.f32 %v1661_v2, %v1667_v55  ;;  %v10485_v55 = vld [vmem:[%s15191_s9 + $0x34] ss:$24 sps:$4 sm:$0xff]  }
 0x89f   :  { %v1670_v12 = vpop.xlane.xlu1 %1669 }
 0x8a0   :  { %v1681_v13 = vmul.f32 1.442695, %v1677_v11  ;;  %v1678_v50 = vsub.f32 %v1662_v5, %v1670_v12  ;;  %v10480_v11 = vld [vmem:[%s15190_s8 + $0x30] ss:$24 sps:$4 sm:$0xff]  }
 0x8a1   :  { %v1673_v60 = vpop.xlane.xlu0 %1672  ;;  %v10483_v12 = vld [vmem:[%s15191_s9 + $0x30] ss:$24 sps:$4 sm:$0xff]  }
 0x8a2   :  { %11498 = vpow2.f32 %v1681_v13  ;;  %v1683_v1 = vmul.f32 1.442695, %v1678_v50  ;;  %v1679_v17 = vsub.f32 %v1663_v6, %v1673_v60  ;;  %v10474_v6 = vld [vmem:[%s15190_s8] ss:$24 sps:$4 sm:$0xff]   ;;  %v10488_v13 = vld [vmem:[%s15190_s8 + $0x64] ss:$24 sps:$4 sm:$0xff]  }
 0x8a3   :  { %v10491_v50 = vld [vmem:[%s15191_s9 + $0x64] ss:$24 sps:$4 sm:$0xff]   ;;  %v10486_v60 = vld [vmem:[%s15190_s8 + $0x60] ss:$24 sps:$4 sm:$0xff]  }
 0x8a4   :  { %11500 = vpow2.f32 %v1683_v1  ;;  %v1685_v33 = vmul.f32 1.442695, %v1679_v17  ;;  %v10489_v1 = vld [vmem:[%s15191_s9 + $0x60] ss:$24 sps:$4 sm:$0xff]   ;;  %v10494_v17 = vld [vmem:[%s15190_s8 + $0x94] ss:$24 sps:$4 sm:$0xff]  }
 0x8a5   :  { %v1676_v43 = vpop.xlane.xlu0 %1675 }
 0x8a6   :  { %11502 = vpow2.f32 %v1685_v33  ;;  %v1680_v14 = vsub.f32 %v1664_v9, %v1676_v43  ;;  %v10479_v9 = vld [vmem:[%s15191_s9 + $0x4] ss:$24 sps:$4 sm:$0xff]   ;;  %v10497_v33 = vld [vmem:[%s15191_s9 + $0x94] ss:$24 sps:$4 sm:$0xff]   ;;  %v10492_v43 = vld [vmem:[%s15190_s8 + $0x90] ss:$24 sps:$4 sm:$0xff]  }
 0x8a7   :  { %3258 = vmatprep.subr.bf16.mxu1 %v10479_v9 }
 0x8a8   :  { %v1687_v15 = vmul.f32 1.442695, %v1680_v14  ;;  %v10495_v14 = vld [vmem:[%s15191_s9 + $0x90] ss:$24 sps:$4 sm:$0xff]  }
 0x8aa   :  { %11504 = vpow2.f32 %v1687_v15  ;;  %v10500_v15 = vld [vmem:[%s15190_s8 + $0xc4] ss:$24 sps:$4 sm:$0xff]  }
 0x8ac   :  { %v11499_v61 = vpop.eup %11498 }
 0x8ad   :  { %v1689_v16 = vsel %vm829_vm1, %v11499_v61, 0.0 }
 0x8ae   :  { %v11501_v32 = vpop.eup %11500  ;;  %1690 = vadd.xlane.f32.xlu0 %v1689_v16  ;;  %v10498_v16 = vld [vmem:[%s15190_s8 + $0xc0] ss:$24 sps:$4 sm:$0xff]  }
 0x8af   :  { %v1692_v34 = vsel %vm829_vm1, %v11501_v32, 0.0 }
 0x8b0   :  { %v11503_v35 = vpop.eup %11502  ;;  %1693 = vadd.xlane.f32.xlu1 %v1692_v34  ;;  %v10506_v34 = vld [vmem:[%s15190_s8 + $0xf4] ss:$24 sps:$4 sm:$0xff]  }
 0x8b1   :  { %v1695_v36 = vsel %vm829_vm1, %v11503_v35, 0.0 }
 0x8b2   :  { %1696 = vadd.xlane.f32.xlu0 %v1695_v36  ;;  %v10504_v36 = vld [vmem:[%s15190_s8 + $0xf0] ss:$24 sps:$4 sm:$0xff]  }
 0x8b4   :  { %v11505_v37 = vpop.eup %11504 }
 0x8b5   :  { %v1698_v19 = vsel %vm829_vm1, %v11505_v37, 0.0 }
 0x8b6   :  { %1699 = vadd.xlane.f32.xlu1 %v1698_v19  ;;  %v10512_v19 = vld [vmem:[%s15190_s8 + $0x124] ss:$24 sps:$4 sm:$0xff]  }
 0x93b   :  { %v1691_v47 = vpop.xlane.xlu0 %1690 }
 0x93c   :  { %11506 = vrcp.f32 %v1691_v47  ;;  %v10519_v47 = vld [vmem:[%s15191_s9 + $0x150] ss:$24 sps:$4 sm:$0xff]  }
 0x93d   :  { %v1694_v48 = vpop.xlane.xlu1 %1693 }
 0x93e   :  { %11508 = vrcp.f32 %v1694_v48  ;;  %v10524_v48 = vld [vmem:[%s15190_s8 + $0x184] ss:$24 sps:$4 sm:$0xff]  }
 0x93f   :  { %v1697_v46 = vpop.xlane.xlu0 %1696 }
 0x940   :  { %11510 = vrcp.f32 %v1697_v46  ;;  %v10527_v46 = vld [vmem:[%s15191_s9 + $0x184] ss:$24 sps:$4 sm:$0xff]  }
 0x943   :  { %v1700_v49 = vpop.xlane.xlu1 %1699 }
 0x944   :  { %11512 = vrcp.f32 %v1700_v49  ;;  %v10522_v49 = vld [vmem:[%s15190_s8 + $0x180] ss:$24 sps:$4 sm:$0xff]  }
 0x946   :  { %v11507_v18 = vpop.eup %11506 }
 0x947   :  { %v1705_v51 = vmul.f32 %v11507_v18, %v11499_v61  ;;  %v10503_v61 = vld [vmem:[%s15191_s9 + $0xc4] ss:$24 sps:$4 sm:$0xff]   ;;  %v10525_v18 = vld [vmem:[%s15191_s9 + $0x180] ss:$24 sps:$4 sm:$0xff]  }
 0x948   :  { %v11509_v22 = vpop.eup %11508 }
 0x949   :  { %v1706_v23 = vmul.f32 %v11509_v22, %v11501_v32  ;;  %v10501_v32 = vld [vmem:[%s15191_s9 + $0xc0] ss:$24 sps:$4 sm:$0xff]   ;;  %v10530_v22 = vld [vmem:[%s15190_s8 + $0x1b4] ss:$24 sps:$4 sm:$0xff]  }
 0x94a   :  { %v11511_v53 = vpop.eup %11510 }
 0x94b   :  { %v1709_v52 = vpack.c.bf16 %v1706_v23, %v1705_v51  ;;  %v1707_v56 = vmul.f32 %v11511_v53, %v11503_v35  ;;  %v10509_v35 = vld [vmem:[%s15191_s9 + $0xf4] ss:$24 sps:$4 sm:$0xff]   ;;  %v10528_v23 = vld [vmem:[%s15190_s8 + $0x1b0] ss:$24 sps:$4 sm:$0xff]   ;;  %v10536_v53 = vld [vmem:[%s15190_s8 + $0x1e4] ss:$24 sps:$4 sm:$0xff]  }
 0x94c   :  { %v10533_v51 = vld [vmem:[%s15191_s9 + $0x1b4] ss:$24 sps:$4 sm:$0xff]  }
 0x94d   :  { %10177 = vmatprep.mubr.msk.bf16.mxu0 %vm829_vm1, %v1709_v52  ;;  %v10531_v52 = vld [vmem:[%s15191_s9 + $0x1b0] ss:$24 sps:$4 sm:$0xff]  }
 0x94e   :  { %v11513_v54 = vpop.eup %11512 }
 0x94f   :  { %v1708_v57 = vmul.f32 %v11513_v54, %v11505_v37  ;;  %v10507_v37 = vld [vmem:[%s15191_s9 + $0xf0] ss:$24 sps:$4 sm:$0xff]   ;;  %v10539_v54 = vld [vmem:[%s15191_s9 + $0x1e4] ss:$24 sps:$4 sm:$0xff]  }
 0x951   :  { %v1710_v58 = vpack.c.bf16 %v1708_v57, %v1707_v56  ;;  %v10534_v56 = vld [vmem:[%s15190_s8 + $0x1e0] ss:$24 sps:$4 sm:$0xff]  }
 0x952   :  { %v10537_v57 = vld [vmem:[%s15191_s9 + $0x1e0] ss:$24 sps:$4 sm:$0xff]  }
 0x953   :  { %10178 = vmatmul.mubr.msk.bf16.vlgmr.msra.gmra.mrb[36].mxu0 %vm829_vm1, %v1710_v58 }
 0x954   :  { %2524 = vmatpush1.bf16.msra.mxu0 %v10474_v6  ;;  %v11811_v6 = vld [vmem:[%s15183_s1 + $0x8] sm:$0xff] }
 0x955   :  { %2525 = vmatprep.subr.bf16.mxu0 %v10482_v10 }
 0x958   :  { %2526 = vmatpush1.bf16.msra.mxu0 %v10480_v11 }
 0x959   :  { %2527 = vmatprep.subr.bf16.mxu0 %v10488_v13 }
 0x95c   :  { %2528 = vmatpush1.bf16.msra.mxu0 %v10486_v60 }
 0x95d   :  { %2529 = vmatprep.subr.bf16.mxu0 %v10494_v17 }
 0x960   :  { %2530 = vmatpush1.bf16.msra.mxu0 %v10492_v43  ;;  %v11814_v43 = vld [vmem:[%s15183_s1 + $0x20] sm:$0xff] }
 0x961   :  { %2531 = vmatprep.subr.bf16.mxu0 %v10500_v15 }
 0x964   :  { %2532 = vmatpush1.bf16.msra.mxu0 %v10498_v16  ;;  %v11815_v16 = vld [vmem:[%s15183_s1 + $0x28] sm:$0xff] }
 0x965   :  { %2533 = vmatprep.subr.bf16.mxu0 %v10506_v34 }
 0x968   :  { %2534 = vmatpush1.bf16.msra.mxu0 %v10504_v36 }
 0x969   :  { %2535 = vmatprep.subr.bf16.mxu0 %v10512_v19 }
 0x96c   :  { %2536 = vmatpush1.bf16.msra.mxu0 %v10510_v39 }
 0x96d   :  { %2537 = vmatprep.subr.bf16.mxu0 %v10518_v41  ;;  %v10545_v41 = vld [vmem:[%s15191_s9 + $0x214] ss:$24 sps:$4 sm:$0xff]  }
 0x970   :  { %2538 = vmatpush1.bf16.msra.mxu0 %v10516_v44  ;;  %v10543_v44 = vld [vmem:[%s15191_s9 + $0x210] ss:$24 sps:$4 sm:$0xff]  }
 0x971   :  { %2539 = vmatprep.subr.bf16.mxu0 %v10524_v48  ;;  %v10551_v48 = vld [vmem:[%s15191_s9 + $0x244] ss:$24 sps:$4 sm:$0xff]  }
 0x974   :  { %2540 = vmatpush1.bf16.msra.mxu0 %v10522_v49  ;;  %v10549_v49 = vld [vmem:[%s15191_s9 + $0x240] ss:$24 sps:$4 sm:$0xff]  }
 0x975   :  { %2541 = vmatprep.subr.bf16.mxu0 %v10530_v22  ;;  %v10557_v22 = vld [vmem:[%s15191_s9 + $0x274] ss:$24 sps:$4 sm:$0xff]  }
 0x978   :  { %2542 = vmatpush1.bf16.msra.mxu0 %v10528_v23  ;;  %v10555_v23 = vld [vmem:[%s15191_s9 + $0x270] ss:$24 sps:$4 sm:$0xff]  }
 0x979   :  { %2543 = vmatprep.subr.bf16.mxu0 %v10536_v53  ;;  %v10563_v53 = vld [vmem:[%s15191_s9 + $0x2a4] ss:$24 sps:$4 sm:$0xff]  }
 0x97c   :  { %2544 = vmatpush1.bf16.msra.mxu0 %v10534_v56  ;;  %v10561_v56 = vld [vmem:[%s15191_s9 + $0x2a0] ss:$24 sps:$4 sm:$0xff]  }
 0xa26   :  { %v10179_v63 = vpop.f32.mrb[36].mxu0 }
 0xa27   :  { %v1751_v0 = vpop.f32.mrb[37].mxu0 }
 0xa28   :  { %v10180_v2 = vpop.f32.mrb[38].mxu0 }
 0xa29   :  { %v1767_v3 = vpack.c.bf16 %v10180_v2, %v10179_v63  ;;  %v1754_v4 = vpop.f32.mrb[39].mxu0  ;;  %v11810_v2 = vld [vmem:[%s15183_s1] sm:$0xff] }
 0xa2a   :  { %v1766_v5 = vpack.c.bf16 %v1754_v4, %v1751_v0 }
 0xa2c   :  { %8797 = vmatmul.mubr.msk.bf16.vlgmr.msra.gmra.mrb[24].mxu1 %vm759_vm0, %v1766_v5 }
 0xa2d   :  { %1856 = vmatprep.mubr.bf16.mxu1 %v11847_v45  ;;  %3259 = vmatpush1.bf16.msra.mxu1 %v10477_v8 }
 0xa2e   :  { %3260 = vmatprep.subr.bf16.mxu1 %v10485_v55 }
 0xa31   :  { %3261 = vmatpush1.bf16.msra.mxu1 %v10483_v12 }
 0xa32   :  { %3262 = vmatprep.subr.bf16.mxu1 %v10491_v50 }
 0xa34   :  { %8798 = vmatmul.mubr.msk.bf16.gmra.mrb[28].mxu1 %vm759_vm0, %v1767_v3 }
 0xa35   :  { %3263 = vmatpush1.bf16.msra.mxu1 %v10489_v1 }
 0xa36   :  { %3264 = vmatprep.subr.bf16.mxu1 %v10497_v33 }
 0xa39   :  { %3265 = vmatpush1.bf16.msra.mxu1 %v10495_v14 }
 0xa3a   :  { %3266 = vmatprep.subr.bf16.mxu1 %v10503_v61 }
 0xa3d   :  { %3267 = vmatpush1.bf16.msra.mxu1 %v10501_v32  ;;  %v11816_v32 = vld [vmem:[%s15183_s1 + $0x30] sm:$0xff] }
 0xa3e   :  { %3268 = vmatprep.subr.bf16.mxu1 %v10509_v35 }
 0xa41   :  { %3269 = vmatpush1.bf16.msra.mxu1 %v10507_v37 }
 0xa42   :  { %3270 = vmatprep.subr.bf16.mxu1 %v10515_v38 }
 0xa45   :  { %3271 = vmatpush1.bf16.msra.mxu1 %v10513_v40  ;;  %v10542_v40 = vld [vmem:[%s15190_s8 + $0x214] ss:$24 sps:$4 sm:$0xff]  }
 0xa46   :  { %3272 = vmatprep.subr.bf16.mxu1 %v10521_v42  ;;  %v10540_v42 = vld [vmem:[%s15190_s8 + $0x210] ss:$24 sps:$4 sm:$0xff]   ;;  %2545 = vmatprep.subr.bf16.mxu0 %v10542_v40 }
 0xa47   :  { %2546 = vmatpush1.bf16.msra.mxu0 %v10540_v42  ;;  %v10581_v42 = vld [vmem:[%s15191_s9 + $0x44] ss:$24 sps:$4 sm:$0xff]  }
 0xa49   :  { %3273 = vmatpush1.bf16.msra.mxu1 %v10519_v47  ;;  %v10548_v47 = vld [vmem:[%s15190_s8 + $0x244] ss:$24 sps:$4 sm:$0xff]  }
 0xa4a   :  { %3274 = vmatprep.subr.bf16.mxu1 %v10527_v46  ;;  %v10546_v46 = vld [vmem:[%s15190_s8 + $0x240] ss:$24 sps:$4 sm:$0xff]   ;;  %2547 = vmatprep.subr.bf16.mxu0 %v10548_v47 }
 0xa4b   :  { %2548 = vmatpush1.bf16.msra.mxu0 %v10546_v46  ;;  %v10576_v46 = vld [vmem:[%s15190_s8 + $0x38] ss:$24 sps:$4 sm:$0xff]  }
 0xa4d   :  { %3275 = vmatpush1.bf16.msra.mxu1 %v10525_v18  ;;  %v10554_v18 = vld [vmem:[%s15190_s8 + $0x274] ss:$24 sps:$4 sm:$0xff]  }
 0xa4e   :  { %3276 = vmatprep.subr.bf16.mxu1 %v10533_v51  ;;  %v10552_v51 = vld [vmem:[%s15190_s8 + $0x270] ss:$24 sps:$4 sm:$0xff]   ;;  %2549 = vmatprep.subr.bf16.mxu0 %v10554_v18  ;;  %v10584_v18 = vld [vmem:[%s15190_s8 + $0x6c] ss:$24 sps:$4 sm:$0xff]  }
 0xa4f   :  { %2550 = vmatpush1.bf16.msra.mxu0 %v10552_v51 }
 0xa51   :  { %3277 = vmatpush1.bf16.msra.mxu1 %v10531_v52  ;;  %v10560_v52 = vld [vmem:[%s15190_s8 + $0x2a4] ss:$24 sps:$4 sm:$0xff]  }
 0xa52   :  { %3278 = vmatprep.subr.bf16.mxu1 %v10539_v54  ;;  %v10558_v54 = vld [vmem:[%s15190_s8 + $0x2a0] ss:$24 sps:$4 sm:$0xff]   ;;  %2551 = vmatprep.subr.bf16.mxu0 %v10560_v52 }
 0xa53   :  { %2552 = vmatpush1.bf16.msra.mxu0 %v10558_v54 }
 0xa55   :  { %3279 = vmatpush1.bf16.msra.mxu1 %v10537_v57  ;;  %v10566_v57 = vld [vmem:[%s15190_s8 + $0x2d4] ss:$24 sps:$4 sm:$0xff]  }
 0xa56   :  { %3280 = vmatprep.subr.bf16.mxu1 %v10545_v41  ;;  %2553 = vmatprep.subr.bf16.mxu0 %v10566_v57  ;;  %v10582_v57 = vld [vmem:[%s15190_s8 + $0x68] ss:$24 sps:$4 sm:$0xff]  }
 0xa59   :  { %3281 = vmatpush1.bf16.msra.mxu1 %v10543_v44 }
 0xa5a   :  { %3282 = vmatprep.subr.bf16.mxu1 %v10551_v48 }
 0xa5d   :  { %3283 = vmatpush1.bf16.msra.mxu1 %v10549_v49  ;;  %v10579_v49 = vld [vmem:[%s15191_s9 + $0x40] ss:$24 sps:$4 sm:$0xff]  }
 0xa5e   :  { %3284 = vmatprep.subr.bf16.mxu1 %v10557_v22 }
 0xa61   :  { %3285 = vmatpush1.bf16.msra.mxu1 %v10555_v23 }
 0xa62   :  { %3286 = vmatprep.subr.bf16.mxu1 %v10563_v53  ;;  %v10587_v53 = vld [vmem:[%s15191_s9 + $0x74] ss:$24 sps:$4 sm:$0xff]  }
 0xa65   :  { %3287 = vmatpush1.bf16.msra.mxu1 %v10561_v56 }
 0xaff   :  { %v1848_v58 = vpop.f32.mrb[24].mxu1 }
 0xb00   :  { %v10245_v59 = vadd.f32 %v1848_v58, %v12350_v24  ;;  %v1850_v62 = vpop.f32.mrb[25].mxu1  ;;  %v10569_v58 = vld [vmem:[%s15191_s9 + $0x2d4] ss:$24 sps:$4 sm:$0xff]  }
 0xb01   :  { %v10246_v63 = vadd.f32 %v1850_v62, %v12352_v25  ;;  %v1852_v0 = vpop.f32.mrb[26].mxu1  ;;  %v11812_v25 = vld [vmem:[%s15183_s1 + $0x10] sm:$0xff]  ;;  %3288 = vmatprep.subr.bf16.mxu1 %v10569_v58 }
 0xb02   :  { %v12602_v3 = vadd.f32 %v11810_v2, %v10245_v59  ;;  %v10247_v4 = vadd.f32 %v1852_v0, %v12354_v26  ;;  %v1854_v5 = vpop.f32.mrb[27].mxu1  ;;  %v11813_v26 = vld [vmem:[%s15183_s1 + $0x18] sm:$0xff]  ;;  %v10564_v59 = vld [vmem:[%s15190_s8 + $0x2d0] ss:$24 sps:$4 sm:$0xff]   ;;  %v10575_v0 = vld [vmem:[%s15191_s9 + $0x14] ss:$24 sps:$4 sm:$0xff]  }
 0xb03   :  { %v12608_v7 = vadd.f32 %v11811_v6, %v10246_v63  ;;  %v10248_v24 = vadd.f32 %v1854_v5, %v12356_v27  ;;  %v10567_v62 = vld [vmem:[%s15191_s9 + $0x2d0] ss:$24 sps:$4 sm:$0xff]   ;;  %2554 = vmatpush1.bf16.msra.mxu0 %v10564_v59  ;;  %v10572_v63 = vld [vmem:[%s15190_s8 + $0xc] ss:$24 sps:$4 sm:$0xff]   ;;  %v10590_v59 = vld [vmem:[%s15190_s8 + $0x9c] ss:$24 sps:$4 sm:$0xff]  }
 0xb04   :  { %v12614_v8 = vadd.f32 %v11812_v25, %v10247_v4  ;;  %v1884_v9 = vmul.f32 %v12602_v3, %v12602_v3  ;;  %3289 = vmatpush1.bf16.msra.mxu1 %v10567_v62  ;;  %2576 = vmatprep.subr.bf16.mxu0 %v10572_v63  ;;  %v10585_v58 = vld [vmem:[%s15191_s9 + $0x70] ss:$24 sps:$4 sm:$0xff]   ;;  %v10593_v62 = vld [vmem:[%s15191_s9 + $0xa4] ss:$24 sps:$4 sm:$0xff]  }
 0xb05   :  { %v12621_v10 = vadd.f32 %v11813_v26, %v10248_v24  ;;  %v1885_v55 = vmul.f32 %v12608_v7, %v12608_v7  ;;  %3364 = vmatprep.subr.bf16.mxu1 %v10575_v0  ;;  %v10588_v63 = vld [vmem:[%s15190_s8 + $0x98] ss:$24 sps:$4 sm:$0xff]  }
 0xb06   :  { %v1886_v27 = vmul.f32 %v12614_v8, %v12614_v8  ;;  %v10591_v0 = vld [vmem:[%s15191_s9 + $0xa0] ss:$24 sps:$4 sm:$0xff]  }
 0xb07   :  { %v1858_v11 = vpop.f32.mrb[28].mxu1  ;;  %v1892_v12 = vadd.f32 %v1885_v55, %v1884_v9  ;;  %v1887_v13 = vmul.f32 %v12621_v10, %v12621_v10 }
 0xb08   :  { %v10249_v50 = vadd.f32 %v1858_v11, %v12358_v28  ;;  %v1860_v60 = vpop.f32.mrb[29].mxu1 }
 0xb09   :  { %v10250_v1 = vadd.f32 %v1860_v60, %v12360_v29  ;;  %1893 = vadd.xlane.f32.xlu0 %v1892_v12  ;;  %v1862_v17 = vpop.f32.mrb[30].mxu1  ;;  %v1895_v33 = vadd.f32 %v1887_v13, %v1886_v27  ;;  %v1883_v12 = vld [vmem:[%s15189_s7] sm:$0x3] }
 0xb0a   :  { %v12634_v14 = vadd.f32 %v11814_v43, %v10249_v50  ;;  %v10251_v15 = vadd.f32 %v1862_v17, %v12362_v30  ;;  %v1864_v61 = vpop.f32.mrb[31].mxu1  ;;  %v11817_v30 = vld [vmem:[%s15183_s1 + $0x38] sm:$0xff]  ;;  %v1928_v60 = vrot.slane %v1883_v12, %v12092_v21 }
 0xb0b   :  { %v12640_v28 = vadd.f32 %v11815_v16, %v10250_v1  ;;  %v10252_v29 = vadd.f32 %v1864_v61, %v12364_v31  ;;  %1896 = vadd.xlane.f32.xlu1 %v1895_v33  ;;  %v1932_v1 = vrot.slane %v1883_v12, %v12090_v20  ;;  %v10609_v12 = vld [vmem:[%s15191_s9 + $0x130] ss:$24 sps:$4 sm:$0xff]  }
 0xb0c   :  { %v12646_v34 = vadd.f32 %v11816_v32, %v10251_v15  ;;  %v1888_v35 = vmul.f32 %v12634_v14, %v12634_v14 }
 0xb0d   :  { %v12653_v36 = vadd.f32 %v11817_v30, %v10252_v29  ;;  %v1889_v37 = vmul.f32 %v12640_v28, %v12640_v28 }
 0xb0e   :  { %v1890_v31 = vmul.f32 %v12646_v34, %v12646_v34 }
 0xb0f   :  { %v1898_v19 = vadd.f32 %v1889_v37, %v1888_v35  ;;  %v1891_v38 = vmul.f32 %v12653_v36, %v12653_v36 }
 0xb11   :  { %1899 = vadd.xlane.f32.xlu0 %v1898_v19  ;;  %v1901_v39 = vadd.f32 %v1891_v38, %v1890_v31  ;;  %v10570_v31 = vld [vmem:[%s15190_s8 + $0x8] ss:$24 sps:$4 sm:$0xff]  }
 0xb12   :  { %v10573_v38 = vld [vmem:[%s15191_s9 + $0x10] ss:$24 sps:$4 sm:$0xff]  }
 0xb13   :  { %1902 = vadd.xlane.f32.xlu1 %v1901_v39  ;;  %v10578_v39 = vld [vmem:[%s15190_s8 + $0x3c] ss:$24 sps:$4 sm:$0xff]  }
 0xb96   :  { %v1894_v2 = vpop.xlane.xlu0 %1893 }
 0xb97   :  { %v1904_v4 = vmul.f32 0.00390625, %v1894_v2  ;;  %v10596_v2 = vld [vmem:[%s15190_s8 + $0xcc] ss:$24 sps:$4 sm:$0xff]  }
 0xb98   :  { %v1897_v5 = vpop.xlane.xlu1 %1896 }
 0xb99   :  { %v1908_v6 = vadd.f32 1e-05, %v1904_v4  ;;  %v1905_v24 = vmul.f32 0.00390625, %v1897_v5  ;;  %v10599_v4 = vld [vmem:[%s15191_s9 + $0xd4] ss:$24 sps:$4 sm:$0xff]  }
 0xb9a   :  { %v10594_v5 = vld [vmem:[%s15190_s8 + $0xc8] ss:$24 sps:$4 sm:$0xff]  }
 0xb9b   :  { %11514 = vrsqrt.f32 %v1908_v6  ;;  %v1909_v25 = vadd.f32 1e-05, %v1905_v24  ;;  %v10597_v6 = vld [vmem:[%s15191_s9 + $0xd0] ss:$24 sps:$4 sm:$0xff]   ;;  %v10602_v24 = vld [vmem:[%s15190_s8 + $0xfc] ss:$24 sps:$4 sm:$0xff]  }
 0xb9d   :  { %11516 = vrsqrt.f32 %v1909_v25  ;;  %v10605_v25 = vld [vmem:[%s15191_s9 + $0x104] ss:$24 sps:$4 sm:$0xff]  }
 0xb9e   :  { %v1900_v9 = vpop.xlane.xlu0 %1899 }
 0xb9f   :  { %v1906_v26 = vmul.f32 0.00390625, %v1900_v9  ;;  %v10600_v9 = vld [vmem:[%s15190_s8 + $0xf8] ss:$24 sps:$4 sm:$0xff]  }
 0xba0   :  { %v1903_v55 = vpop.xlane.xlu1 %1902 }
 0xba1   :  { %v1910_v27 = vadd.f32 1e-05, %v1906_v26  ;;  %v1907_v11 = vmul.f32 0.00390625, %v1903_v55  ;;  %v10603_v26 = vld [vmem:[%s15191_s9 + $0x100] ss:$24 sps:$4 sm:$0xff]  }
 0xba2   :  { %v10608_v55 = vld [vmem:[%s15190_s8 + $0x12c] ss:$24 sps:$4 sm:$0xff]  }
 0xba3   :  { %11518 = vrsqrt.f32 %v1910_v27  ;;  %v1911_v13 = vadd.f32 1e-05, %v1907_v11  ;;  %v10611_v27 = vld [vmem:[%s15191_s9 + $0x134] ss:$24 sps:$4 sm:$0xff]   ;;  %v10606_v11 = vld [vmem:[%s15190_s8 + $0x128] ss:$24 sps:$4 sm:$0xff]  }
 0xba5   :  { %v11515_v50 = vpop.eup %11514  ;;  %11520 = vrsqrt.f32 %v1911_v13  ;;  %v10614_v13 = vld [vmem:[%s15190_s8 + $0x15c] ss:$24 sps:$4 sm:$0xff]  }
 0xba6   :  { %v1916_v17 = vmul.f32 %v11515_v50, %v12602_v3  ;;  %v1917_v33 = vmul.f32 %v11515_v50, %v12608_v7  ;;  %v10617_v50 = vld [vmem:[%s15191_s9 + $0x164] ss:$24 sps:$4 sm:$0xff]  }
 0xba7   :  { %v11517_v43 = vpop.eup %11516 }
 0xba8   :  { %v1918_v15 = vmul.f32 %v11517_v43, %v12614_v8  ;;  %v1919_v61 = vmul.f32 %v11517_v43, %v12621_v10  ;;  %v1935_v16 = vmul.f32 %v1928_v60, %v1916_v17  ;;  %v1936_v29 = vmul.f32 %v1932_v1, %v1917_v33  ;;  %v10620_v17 = vld [vmem:[%s15190_s8 + $0x18c] ss:$24 sps:$4 sm:$0xff]   ;;  %v10618_v43 = vld [vmem:[%s15190_s8 + $0x188] ss:$24 sps:$4 sm:$0xff]  }
 0xba9   :  { %v10623_v33 = vld [vmem:[%s15191_s9 + $0x194] ss:$24 sps:$4 sm:$0xff]  }
 0xbaa   :  { %v1937_v32 = vmul.f32 %v1928_v60, %v1918_v15  ;;  %v1938_v35 = vmul.f32 %v1932_v1, %v1919_v61  ;;  %v10621_v15 = vld [vmem:[%s15191_s9 + $0x190] ss:$24 sps:$4 sm:$0xff]   ;;  %v10626_v61 = vld [vmem:[%s15190_s8 + $0x1bc] ss:$24 sps:$4 sm:$0xff]  }
 0xbac   :  { %v12736_v30 = vpack.c.bf16 %v1937_v32, %v1935_v16  ;;  %v12738_v37 = vpack.c.bf16 %v1938_v35, %v1936_v29  ;;  %v10629_v16 = vld [vmem:[%s15191_s9 + $0x1c4] ss:$24 sps:$4 sm:$0xff]   ;;  %v10624_v29 = vld [vmem:[%s15190_s8 + $0x1b8] ss:$24 sps:$4 sm:$0xff]  }
 0xbad   :  { %v11519_v19 = vpop.eup %11518  ;;  %v10627_v32 = vld [vmem:[%s15191_s9 + $0x1c0] ss:$24 sps:$4 sm:$0xff]   ;;  %v10632_v35 = vld [vmem:[%s15190_s8 + $0x1ec] ss:$24 sps:$4 sm:$0xff]  }
 0xbae   :  { %v1920_v40 = vmul.f32 %v11519_v19, %v12634_v14  ;;  %v1921_v41 = vmul.f32 %v11519_v19, %v12640_v28  ;;  %2555 = vmatprep.mubr.bf16.mxu0 %v12738_v37  ;;  %3290 = vmatprep.mubr.bf16.mxu1 %v12738_v37  ;;  %v10630_v19 = vld [vmem:[%s15190_s8 + $0x1e8] ss:$24 sps:$4 sm:$0xff]  }
 0xbaf   :  { %v11521_v44 = vpop.eup %11520  ;;  %2556 = vmatmul.mubr.bf16.vlgmr.msra.gmra.mrb[40].mxu0 %v12736_v30  ;;  %3291 = vmatmul.mubr.bf16.vlgmr.msra.gmra.mrb[32].mxu1 %v12736_v30 }
 0xbb0   :  { %v1922_v47 = vmul.f32 %v11521_v44, %v12646_v34  ;;  %v1923_v48 = vmul.f32 %v11521_v44, %v12653_v36  ;;  %2577 = vmatpush1.bf16.msra.mxu0 %v10570_v31  ;;  %3365 = vmatpush1.bf16.msra.mxu1 %v10573_v38  ;;  %v1939_v22 = vmul.f32 %v1928_v60, %v1920_v40  ;;  %v10635_v31 = vld [vmem:[%s15191_s9 + $0x1f4] ss:$24 sps:$4 sm:$0xff]   ;;  %v10633_v38 = vld [vmem:[%s15191_s9 + $0x1f0] ss:$24 sps:$4 sm:$0xff]   ;;  %v10641_v40 = vld [vmem:[%s15191_s9 + $0x224] ss:$24 sps:$4 sm:$0xff]  }
 0xbb1   :  { %2578 = vmatprep.subr.bf16.mxu0 %v10578_v39  ;;  %v1940_v51 = vmul.f32 %v1932_v1, %v1921_v41  ;;  %3366 = vmatprep.subr.bf16.mxu1 %v10581_v42  ;;  %v10638_v39 = vld [vmem:[%s15190_s8 + $0x21c] ss:$24 sps:$4 sm:$0xff]   ;;  %v10636_v41 = vld [vmem:[%s15190_s8 + $0x218] ss:$24 sps:$4 sm:$0xff]   ;;  %v10644_v44 = vld [vmem:[%s15190_s8 + $0x24c] ss:$24 sps:$4 sm:$0xff]  }
 0xbb2   :  { %v1941_v23 = vmul.f32 %v1928_v60, %v1922_v47  ;;  %v1942_v52 = vmul.f32 %v1932_v1, %v1923_v48  ;;  %v10612_v60 = vld [vmem:[%s15190_s8 + $0x158] ss:$24 sps:$4 sm:$0xff]   ;;  %v10647_v47 = vld [vmem:[%s15191_s9 + $0x254] ss:$24 sps:$4 sm:$0xff]   ;;  %v10642_v48 = vld [vmem:[%s15190_s8 + $0x248] ss:$24 sps:$4 sm:$0xff]  }
 0xbb3   :  { %v10615_v1 = vld [vmem:[%s15191_s9 + $0x160] ss:$24 sps:$4 sm:$0xff]  }
 0xbb4   :  { %v12772_v54 = vpack.c.bf16 %v1941_v23, %v1939_v22  ;;  %v12774_v56 = vpack.c.bf16 %v1942_v52, %v1940_v51  ;;  %2579 = vmatpush1.bf16.msra.mxu0 %v10576_v46  ;;  %3367 = vmatpush1.bf16.msra.mxu1 %v10579_v49  ;;  %v10639_v42 = vld [vmem:[%s15191_s9 + $0x220] ss:$24 sps:$4 sm:$0xff]   ;;  %v10645_v46 = vld [vmem:[%s15191_s9 + $0x250] ss:$24 sps:$4 sm:$0xff]   ;;  %v10650_v49 = vld [vmem:[%s15190_s8 + $0x27c] ss:$24 sps:$4 sm:$0xff]  }
 0xbb5   :  { %2580 = vmatprep.subr.bf16.mxu0 %v10584_v18  ;;  %3368 = vmatprep.subr.bf16.mxu1 %v10587_v53  ;;  %v10653_v18 = vld [vmem:[%s15191_s9 + $0x284] ss:$24 sps:$4 sm:$0xff]   ;;  %v10648_v22 = vld [vmem:[%s15190_s8 + $0x278] ss:$24 sps:$4 sm:$0xff]   ;;  %v10659_v52 = vld [vmem:[%s15191_s9 + $0x2b4] ss:$24 sps:$4 sm:$0xff]  }
 0xbb6   :  { %2565 = vmatprep.mubr.bf16.mxu0 %v12774_v56  ;;  %3300 = vmatprep.mubr.bf16.mxu1 %v12774_v56  ;;  %v10651_v51 = vld [vmem:[%s15191_s9 + $0x280] ss:$24 sps:$4 sm:$0xff]   ;;  %v10656_v23 = vld [vmem:[%s15190_s8 + $0x2ac] ss:$24 sps:$4 sm:$0xff]  }
 0xbb7   :  { %2566 = vmatmul.mubr.bf16.gmra.mrb[44].mxu0 %v12772_v54  ;;  %3301 = vmatmul.mubr.bf16.gmra.mrb[36].mxu1 %v12772_v54  ;;  %v10654_v53 = vld [vmem:[%s15190_s8 + $0x2a8] ss:$24 sps:$4 sm:$0xff]  }
 0xbb8   :  { %2581 = vmatpush1.bf16.msra.mxu0 %v10582_v57  ;;  %3369 = vmatpush1.bf16.msra.mxu1 %v10585_v58  ;;  %v10657_v57 = vld [vmem:[%s15191_s9 + $0x2b0] ss:$24 sps:$4 sm:$0xff]   ;;  %v10662_v58 = vld [vmem:[%s15190_s8 + $0x2dc] ss:$24 sps:$4 sm:$0xff]  }
 0xbb9   :  { %2608 = vmatprep.mubr.bf16.mxu0 %v12738_v37  ;;  %3396 = vmatprep.mubr.bf16.mxu1 %v12738_v37 }
 0xbba   :  { %2582 = vmatprep.subr.bf16.mxu0 %v10590_v59  ;;  %3370 = vmatprep.subr.bf16.mxu1 %v10593_v62  ;;  %v10665_v59 = vld [vmem:[%s15191_s9 + $0x2e4] ss:$24 sps:$4 sm:$0xff]   ;;  %v10660_v62 = vld [vmem:[%s15190_s8 + $0x2d8] ss:$24 sps:$4 sm:$0xff]  }
 0xbbc   :  { %2583 = vmatpush1.bf16.msra.mxu0 %v10588_v63  ;;  %3371 = vmatpush1.bf16.msra.mxu1 %v10591_v0  ;;  %v10663_v63 = vld [vmem:[%s15191_s9 + $0x2e0] ss:$24 sps:$4 sm:$0xff]   ;;  %v10668_v0 = vld [vmem:[%s15190_s8 + $0x14] ss:$24 sps:$4 sm:$0xff]  }
 0xbbd   :  { %2584 = vmatprep.subr.bf16.mxu0 %v10596_v2  ;;  %3372 = vmatprep.subr.bf16.mxu1 %v10599_v4  ;;  %v10666_v2 = vld [vmem:[%s15190_s8 + $0x10] ss:$24 sps:$4 sm:$0xff]   ;;  %v10671_v4 = vld [vmem:[%s15190_s8 + $0x44] ss:$24 sps:$4 sm:$0xff]  }
 0xbc0   :  { %2585 = vmatpush1.bf16.msra.mxu0 %v10594_v5  ;;  %3373 = vmatpush1.bf16.msra.mxu1 %v10597_v6  ;;  %v10669_v5 = vld [vmem:[%s15190_s8 + $0x40] ss:$24 sps:$4 sm:$0xff]   ;;  %v10674_v6 = vld [vmem:[%s15190_s8 + $0x74] ss:$24 sps:$4 sm:$0xff]  }
 0xbc1   :  { %2586 = vmatprep.subr.bf16.mxu0 %v10602_v24  ;;  %3374 = vmatprep.subr.bf16.mxu1 %v10605_v25  ;;  %v10672_v24 = vld [vmem:[%s15190_s8 + $0x70] ss:$24 sps:$4 sm:$0xff]   ;;  %v10677_v25 = vld [vmem:[%s15190_s8 + $0xa4] ss:$24 sps:$4 sm:$0xff]  }
 0xbc4   :  { %2587 = vmatpush1.bf16.msra.mxu0 %v10600_v9  ;;  %3375 = vmatpush1.bf16.msra.mxu1 %v10603_v26  ;;  %v10675_v9 = vld [vmem:[%s15190_s8 + $0xa0] ss:$24 sps:$4 sm:$0xff]   ;;  %v10680_v26 = vld [vmem:[%s15190_s8 + $0xd4] ss:$24 sps:$4 sm:$0xff]  }
 0xbc5   :  { %2588 = vmatprep.subr.bf16.mxu0 %v10608_v55  ;;  %3376 = vmatprep.subr.bf16.mxu1 %v10611_v27  ;;  %v10678_v55 = vld [vmem:[%s15190_s8 + $0xd0] ss:$24 sps:$4 sm:$0xff]   ;;  %v10683_v27 = vld [vmem:[%s15190_s8 + $0x104] ss:$24 sps:$4 sm:$0xff]  }
 0xbc8   :  { %2589 = vmatpush1.bf16.msra.mxu0 %v10606_v11  ;;  %3377 = vmatpush1.bf16.msra.mxu1 %v10609_v12  ;;  %v10681_v11 = vld [vmem:[%s15190_s8 + $0x100] ss:$24 sps:$4 sm:$0xff]   ;;  %v10686_v12 = vld [vmem:[%s15190_s8 + $0x134] ss:$24 sps:$4 sm:$0xff]  }
 0xbc9   :  { %2590 = vmatprep.subr.bf16.mxu0 %v10614_v13  ;;  %3378 = vmatprep.subr.bf16.mxu1 %v10617_v50  ;;  %v10684_v13 = vld [vmem:[%s15190_s8 + $0x130] ss:$24 sps:$4 sm:$0xff]   ;;  %v10689_v50 = vld [vmem:[%s15190_s8 + $0x164] ss:$24 sps:$4 sm:$0xff]  }
 0xbcc   :  { %2591 = vmatpush1.bf16.msra.mxu0 %v10612_v60  ;;  %3379 = vmatpush1.bf16.msra.mxu1 %v10615_v1  ;;  %v10687_v60 = vld [vmem:[%s15190_s8 + $0x160] ss:$24 sps:$4 sm:$0xff]   ;;  %v10692_v1 = vld [vmem:[%s15190_s8 + $0x194] ss:$24 sps:$4 sm:$0xff]  }
 0xbcd   :  { %2592 = vmatprep.subr.bf16.mxu0 %v10620_v17  ;;  %3380 = vmatprep.subr.bf16.mxu1 %v10623_v33  ;;  %v10690_v17 = vld [vmem:[%s15190_s8 + $0x190] ss:$24 sps:$4 sm:$0xff]   ;;  %v10695_v33 = vld [vmem:[%s15190_s8 + $0x1c4] ss:$24 sps:$4 sm:$0xff]  }
 0xbd0   :  { %2593 = vmatpush1.bf16.msra.mxu0 %v10618_v43  ;;  %3381 = vmatpush1.bf16.msra.mxu1 %v10621_v15  ;;  %v10693_v43 = vld [vmem:[%s15190_s8 + $0x1c0] ss:$24 sps:$4 sm:$0xff]   ;;  %v10698_v15 = vld [vmem:[%s15190_s8 + $0x1f4] ss:$24 sps:$4 sm:$0xff]  }
 0xbd1   :  { %2594 = vmatprep.subr.bf16.mxu0 %v10626_v61  ;;  %3382 = vmatprep.subr.bf16.mxu1 %v10629_v16  ;;  %v10696_v61 = vld [vmem:[%s15190_s8 + $0x1f0] ss:$24 sps:$4 sm:$0xff]   ;;  %v10701_v16 = vld [vmem:[%s15190_s8 + $0x224] ss:$24 sps:$4 sm:$0xff]  }
 0xbd4   :  { %2595 = vmatpush1.bf16.msra.mxu0 %v10624_v29  ;;  %3383 = vmatpush1.bf16.msra.mxu1 %v10627_v32  ;;  %v10699_v29 = vld [vmem:[%s15190_s8 + $0x220] ss:$24 sps:$4 sm:$0xff]   ;;  %v10704_v32 = vld [vmem:[%s15190_s8 + $0x254] ss:$24 sps:$4 sm:$0xff]  }
 0xbd5   :  { %2596 = vmatprep.subr.bf16.mxu0 %v10632_v35  ;;  %3384 = vmatprep.subr.bf16.mxu1 %v10635_v31  ;;  %v10702_v35 = vld [vmem:[%s15190_s8 + $0x250] ss:$24 sps:$4 sm:$0xff]   ;;  %v10707_v31 = vld [vmem:[%s15190_s8 + $0x284] ss:$24 sps:$4 sm:$0xff]  }
 0xbd8   :  { %2597 = vmatpush1.bf16.msra.mxu0 %v10630_v19  ;;  %3385 = vmatpush1.bf16.msra.mxu1 %v10633_v38  ;;  %v10705_v19 = vld [vmem:[%s15190_s8 + $0x280] ss:$24 sps:$4 sm:$0xff]   ;;  %v10710_v38 = vld [vmem:[%s15190_s8 + $0x2b4] ss:$24 sps:$4 sm:$0xff]  }
 0xbd9   :  { %2598 = vmatprep.subr.bf16.mxu0 %v10638_v39  ;;  %3386 = vmatprep.subr.bf16.mxu1 %v10641_v40  ;;  %v10708_v39 = vld [vmem:[%s15190_s8 + $0x2b0] ss:$24 sps:$4 sm:$0xff]   ;;  %v10713_v40 = vld [vmem:[%s15190_s8 + $0x2e4] ss:$24 sps:$4 sm:$0xff]  }
 0xbdc   :  { %2599 = vmatpush1.bf16.msra.mxu0 %v10636_v41  ;;  %3387 = vmatpush1.bf16.msra.mxu1 %v10639_v42  ;;  %v10711_v41 = vld [vmem:[%s15190_s8 + $0x2e0] ss:$24 sps:$4 sm:$0xff]   ;;  %v10716_v42 = vld [vmem:[%s15191_s9 + $0xc] ss:$24 sps:$4 sm:$0xff]  }
 0xbdd   :  { %2600 = vmatprep.subr.bf16.mxu0 %v10644_v44  ;;  %3388 = vmatprep.subr.bf16.mxu1 %v10647_v47  ;;  %v10714_v44 = vld [vmem:[%s15191_s9 + $0x8] ss:$24 sps:$4 sm:$0xff]   ;;  %v10719_v47 = vld [vmem:[%s15191_s9 + $0x3c] ss:$24 sps:$4 sm:$0xff]  }
 0xbe0   :  { %2601 = vmatpush1.bf16.msra.mxu0 %v10642_v48  ;;  %3389 = vmatpush1.bf16.msra.mxu1 %v10645_v46  ;;  %v10717_v48 = vld [vmem:[%s15191_s9 + $0x38] ss:$24 sps:$4 sm:$0xff]   ;;  %v10722_v46 = vld [vmem:[%s15191_s9 + $0x6c] ss:$24 sps:$4 sm:$0xff]  }
 0xbe1   :  { %2602 = vmatprep.subr.bf16.mxu0 %v10650_v49  ;;  %3390 = vmatprep.subr.bf16.mxu1 %v10653_v18  ;;  %v10720_v49 = vld [vmem:[%s15191_s9 + $0x68] ss:$24 sps:$4 sm:$0xff]   ;;  %v10725_v18 = vld [vmem:[%s15191_s9 + $0x9c] ss:$24 sps:$4 sm:$0xff]  }
 0xbe4   :  { %2603 = vmatpush1.bf16.msra.mxu0 %v10648_v22  ;;  %3391 = vmatpush1.bf16.msra.mxu1 %v10651_v51  ;;  %v10723_v22 = vld [vmem:[%s15191_s9 + $0x98] ss:$24 sps:$4 sm:$0xff]   ;;  %v10728_v51 = vld [vmem:[%s15191_s9 + $0xcc] ss:$24 sps:$4 sm:$0xff]  }
 0xbe5   :  { %2604 = vmatprep.subr.bf16.mxu0 %v10656_v23  ;;  %3392 = vmatprep.subr.bf16.mxu1 %v10659_v52  ;;  %v10726_v23 = vld [vmem:[%s15191_s9 + $0xc8] ss:$24 sps:$4 sm:$0xff]   ;;  %v10731_v52 = vld [vmem:[%s15191_s9 + $0xfc] ss:$24 sps:$4 sm:$0xff]  }
 0xbe8   :  { %2605 = vmatpush1.bf16.msra.mxu0 %v10654_v53  ;;  %3393 = vmatpush1.bf16.msra.mxu1 %v10657_v57  ;;  %v10734_v53 = vld [vmem:[%s15191_s9 + $0x12c] ss:$24 sps:$4 sm:$0xff]   ;;  %v10732_v57 = vld [vmem:[%s15191_s9 + $0x128] ss:$24 sps:$4 sm:$0xff]  }
 0xbe9   :  { %2606 = vmatprep.subr.bf16.mxu0 %v10662_v58  ;;  %3394 = vmatprep.subr.bf16.mxu1 %v10665_v59  ;;  %v10737_v58 = vld [vmem:[%s15191_s9 + $0x15c] ss:$24 sps:$4 sm:$0xff]   ;;  %v10735_v59 = vld [vmem:[%s15191_s9 + $0x158] ss:$24 sps:$4 sm:$0xff]  }
 0xbec   :  { %2607 = vmatpush1.bf16.msra.mxu0 %v10660_v62  ;;  %3395 = vmatpush1.bf16.msra.mxu1 %v10663_v63  ;;  %v10740_v62 = vld [vmem:[%s15191_s9 + $0x18c] ss:$24 sps:$4 sm:$0xff]   ;;  %v10738_v63 = vld [vmem:[%s15191_s9 + $0x188] ss:$24 sps:$4 sm:$0xff]  }
 0xbed   :  { %2629 = vmatprep.subr.bf16.mxu0 %v10668_v0  ;;  %v10743_v0 = vld [vmem:[%s15191_s9 + $0x1bc] ss:$24 sps:$4 sm:$0xff]  }
 0xbef   :  { %2609 = vmatmul.mubr.bf16.vlgmr.msra.gmra.mrb[48].mxu0 %v12736_v30  ;;  %3397 = vmatmul.mubr.bf16.vlgmr.msra.gmra.mrb[40].mxu1 %v12736_v30 }
 0xbf0   :  { %2618 = vmatprep.mubr.bf16.mxu0 %v12774_v56  ;;  %2630 = vmatpush1.bf16.msra.mxu0 %v10666_v2  ;;  %v10741_v2 = vld [vmem:[%s15191_s9 + $0x1b8] ss:$24 sps:$4 sm:$0xff]  }
 0xbf1   :  { %3406 = vmatprep.mubr.bf16.mxu1 %v12774_v56  ;;  %2631 = vmatprep.subr.bf16.mxu0 %v10671_v4  ;;  %v10746_v4 = vld [vmem:[%s15191_s9 + $0x1ec] ss:$24 sps:$4 sm:$0xff]  }
 0xbf4   :  { %2632 = vmatpush1.bf16.msra.mxu0 %v10669_v5  ;;  %v10744_v5 = vld [vmem:[%s15191_s9 + $0x1e8] ss:$24 sps:$4 sm:$0xff]  }
 0xbf5   :  { %2633 = vmatprep.subr.bf16.mxu0 %v10674_v6  ;;  %v10749_v6 = vld [vmem:[%s15191_s9 + $0x21c] ss:$24 sps:$4 sm:$0xff]  }
 0xbf7   :  { %2619 = vmatmul.mubr.bf16.gmra.mrb[52].mxu0 %v12772_v54  ;;  %3407 = vmatmul.mubr.bf16.gmra.mrb[44].mxu1 %v12772_v54 }
 0xbf8   :  { %2661 = vmatprep.mubr.bf16.mxu0 %v12738_v37  ;;  %2634 = vmatpush1.bf16.msra.mxu0 %v10672_v24  ;;  %v10747_v24 = vld [vmem:[%s15191_s9 + $0x218] ss:$24 sps:$4 sm:$0xff]  }
 0xbf9   :  { %2635 = vmatprep.subr.bf16.mxu0 %v10677_v25  ;;  %v10752_v25 = vld [vmem:[%s15191_s9 + $0x24c] ss:$24 sps:$4 sm:$0xff]  }
 0xbfc   :  { %2636 = vmatpush1.bf16.msra.mxu0 %v10675_v9  ;;  %v10750_v9 = vld [vmem:[%s15191_s9 + $0x248] ss:$24 sps:$4 sm:$0xff]  }
 0xbfd   :  { %2637 = vmatprep.subr.bf16.mxu0 %v10680_v26  ;;  %v10755_v26 = vld [vmem:[%s15191_s9 + $0x27c] ss:$24 sps:$4 sm:$0xff]  }
 0xc00   :  { %2638 = vmatpush1.bf16.msra.mxu0 %v10678_v55  ;;  %v10753_v55 = vld [vmem:[%s15191_s9 + $0x278] ss:$24 sps:$4 sm:$0xff]  }
 0xc01   :  { %2639 = vmatprep.subr.bf16.mxu0 %v10683_v27  ;;  %v10758_v27 = vld [vmem:[%s15191_s9 + $0x2ac] ss:$24 sps:$4 sm:$0xff]  }
 0xc04   :  { %2640 = vmatpush1.bf16.msra.mxu0 %v10681_v11  ;;  %v10756_v11 = vld [vmem:[%s15191_s9 + $0x2a8] ss:$24 sps:$4 sm:$0xff]  }
 0xc05   :  { %2641 = vmatprep.subr.bf16.mxu0 %v10686_v12  ;;  %v10761_v12 = vld [vmem:[%s15191_s9 + $0x2dc] ss:$24 sps:$4 sm:$0xff]  }
 0xc08   :  { %2642 = vmatpush1.bf16.msra.mxu0 %v10684_v13  ;;  %v10759_v13 = vld [vmem:[%s15191_s9 + $0x2d8] ss:$24 sps:$4 sm:$0xff]  }
 0xc09   :  { %2643 = vmatprep.subr.bf16.mxu0 %v10689_v50  ;;  %v10764_v50 = vld [vmem:[%s15192_s10 + $0x4] ss:$8 sps:$4 sm:$0xff]  }
 0xc0c   :  { %2644 = vmatpush1.bf16.msra.mxu0 %v10687_v60  ;;  %v10762_v60 = vld [vmem:[%s15192_s10] ss:$8 sps:$4 sm:$0xff]  }
 0xc0d   :  { %2645 = vmatprep.subr.bf16.mxu0 %v10692_v1  ;;  %v10767_v1 = vld [vmem:[%s15192_s10 + $0x14] ss:$8 sps:$4 sm:$0xff]  }
 0xc10   :  { %2646 = vmatpush1.bf16.msra.mxu0 %v10690_v17  ;;  %v10765_v17 = vld [vmem:[%s15192_s10 + $0x10] ss:$8 sps:$4 sm:$0xff]  }
 0xc11   :  { %2647 = vmatprep.subr.bf16.mxu0 %v10695_v33  ;;  %v10770_v33 = vld [vmem:[%s15192_s10 + $0x24] ss:$8 sps:$4 sm:$0xff]  }
 0xc14   :  { %2648 = vmatpush1.bf16.msra.mxu0 %v10693_v43  ;;  %v10768_v43 = vld [vmem:[%s15192_s10 + $0x20] ss:$8 sps:$4 sm:$0xff]  }
 0xc15   :  { %2649 = vmatprep.subr.bf16.mxu0 %v10698_v15  ;;  %v10776_v15 = vld [vmem:[%s15192_s10 + $0x44] ss:$8 sps:$4 sm:$0xff]  }
 0xc18   :  { %2650 = vmatpush1.bf16.msra.mxu0 %v10696_v61  ;;  %v10774_v61 = vld [vmem:[%s15192_s10 + $0x40] ss:$8 sps:$4 sm:$0xff]  }
 0xc19   :  { %2651 = vmatprep.subr.bf16.mxu0 %v10701_v16  ;;  %v10777_v16 = vld [vmem:[%s15192_s10 + $0x50] ss:$8 sps:$4 sm:$0xff]  }
 0xc1c   :  { %2652 = vmatpush1.bf16.msra.mxu0 %v10699_v29 }
 0xc1d   :  { %2653 = vmatprep.subr.bf16.mxu0 %v10704_v32 }
 0xc20   :  { %2654 = vmatpush1.bf16.msra.mxu0 %v10702_v35  ;;  %v10782_v35 = vld [vmem:[%s15192_s10 + $0x64] ss:$8 sps:$4 sm:$0xff]  }
 0xc21   :  { %2655 = vmatprep.subr.bf16.mxu0 %v10707_v31 }
 0xc24   :  { %2656 = vmatpush1.bf16.msra.mxu0 %v10705_v19 }
 0xc25   :  { %2657 = vmatprep.subr.bf16.mxu0 %v10710_v38 }
 0xc28   :  { %2658 = vmatpush1.bf16.msra.mxu0 %v10708_v39 }
 0xc29   :  { %2659 = vmatprep.subr.bf16.mxu0 %v10713_v40 }
 0xc2c   :  { %2660 = vmatpush1.bf16.msra.mxu0 %v10711_v41 }
 0xc2d   :  { %3311 = vmatprep.subr.bf16.mxu0 %v10716_v42 }
 0xc2f   :  { %2662 = vmatmul.mubr.bf16.vlgmr.msra.gmra.mrb[56].mxu0 %v12736_v30 }
 0xc30   :  { %2671 = vmatprep.mubr.bf16.mxu0 %v12774_v56  ;;  %3312 = vmatpush1.bf16.msra.mxu0 %v10714_v44 }
 0xc31   :  { %3313 = vmatprep.subr.bf16.mxu0 %v10719_v47 }
 0xc34   :  { %3314 = vmatpush1.bf16.msra.mxu0 %v10717_v48  ;;  %v10780_v48 = vld [vmem:[%s15192_s10 + $0x60] ss:$8 sps:$4 sm:$0xff]  }
 0xc35   :  { %3315 = vmatprep.subr.bf16.mxu0 %v10722_v46 }
 0xc37   :  { %2672 = vmatmul.mubr.bf16.gmra.mrb[60].mxu0 %v12772_v54 }
 0xc38   :  { %3316 = vmatpush1.bf16.msra.mxu0 %v10720_v49  ;;  %3343 = vmatprep.mubr.bf16.mxu0 %v12738_v37  ;;  %v10729_v37 = vld [vmem:[%s15191_s9 + $0xf8] ss:$24 sps:$4 sm:$0xff]   ;;  %v10785_v49 = vld [vmem:[%s15192_s10 + $0x74] ss:$8 sps:$4 sm:$0xff]  }
 0xc39   :  { %3317 = vmatprep.subr.bf16.mxu0 %v10725_v18  ;;  %v10783_v18 = vld [vmem:[%s15192_s10 + $0x70] ss:$8 sps:$4 sm:$0xff]  }
 0xc3c   :  { %3318 = vmatpush1.bf16.msra.mxu0 %v10723_v22 }
 0xc3d   :  { %3319 = vmatprep.subr.bf16.mxu0 %v10728_v51  ;;  %v10788_v51 = vld [vmem:[%s15192_s10 + $0x84] ss:$8 sps:$4 sm:$0xff]  }
 0xc40   :  { %3320 = vmatpush1.bf16.msra.mxu0 %v10726_v23 }
 0xc41   :  { %3321 = vmatprep.subr.bf16.mxu0 %v10731_v52 }
 0xc44   :  { %3322 = vmatpush1.bf16.msra.mxu0 %v10729_v37 }
 0xc45   :  { %3323 = vmatprep.subr.bf16.mxu0 %v10734_v53 }
 0xc48   :  { %3324 = vmatpush1.bf16.msra.mxu0 %v10732_v57 }
 0xc49   :  { %3325 = vmatprep.subr.bf16.mxu0 %v10737_v58 }
 0xc4c   :  { %3326 = vmatpush1.bf16.msra.mxu0 %v10735_v59 }
 0xc4d   :  { %3327 = vmatprep.subr.bf16.mxu0 %v10740_v62 }
 0xc50   :  { %3328 = vmatpush1.bf16.msra.mxu0 %v10738_v63 }
 0xc51   :  { %3329 = vmatprep.subr.bf16.mxu0 %v10743_v0  ;;  %v10786_v0 = vld [vmem:[%s15192_s10 + $0x80] ss:$8 sps:$4 sm:$0xff]  }
 0xc54   :  { %3330 = vmatpush1.bf16.msra.mxu0 %v10741_v2 }
 0xc55   :  { %3331 = vmatprep.subr.bf16.mxu0 %v10746_v4 }
 0xc58   :  { %3332 = vmatpush1.bf16.msra.mxu0 %v10744_v5  ;;  %v10791_v5 = vld [vmem:[%s15192_s10 + $0x94] ss:$8 sps:$4 sm:$0xff]  }
 0xc59   :  { %3333 = vmatprep.subr.bf16.mxu0 %v10749_v6 }
 0xc5c   :  { %3334 = vmatpush1.bf16.msra.mxu0 %v10747_v24 }
 0xc5d   :  { %3335 = vmatprep.subr.bf16.mxu0 %v10752_v25 }
 0xc60   :  { %3336 = vmatpush1.bf16.msra.mxu0 %v10750_v9 }
 0xc61   :  { %3337 = vmatprep.subr.bf16.mxu0 %v10755_v26 }
 0xc64   :  { %3338 = vmatpush1.bf16.msra.mxu0 %v10753_v55  ;;  %v10789_v55 = vld [vmem:[%s15192_s10 + $0x90] ss:$8 sps:$4 sm:$0xff]  }
 0xc65   :  { %3339 = vmatprep.subr.bf16.mxu0 %v10758_v27 }
 0xc68   :  { %3340 = vmatpush1.bf16.msra.mxu0 %v10756_v11 }
 0xc69   :  { %3341 = vmatprep.subr.bf16.mxu0 %v10761_v12  ;;  %v10794_v12 = vld [vmem:[%s15192_s10 + $0xa4] ss:$8 sps:$4 sm:$0xff]  }
 0xc6c   :  { %3342 = vmatpush1.bf16.msra.mxu0 %v10759_v13 }
 0xc6d   :  { %4155 = vmatprep.subr.bf16.mxu0 %v10764_v50  ;;  %v10792_v50 = vld [vmem:[%s15192_s10 + $0xa0] ss:$8 sps:$4 sm:$0xff]  }
 0xc6f   :  { %3344 = vmatmul.mubr.bf16.vlgmr.msra.gmra.mrb[64].mxu0 %v12736_v30  ;;  %v10773_v30 = vld [vmem:[%s15192_s10 + $0x34] ss:$8 sps:$4 sm:$0xff]  }
 0xc70   :  { %3353 = vmatprep.mubr.bf16.mxu0 %v12774_v56  ;;  %4156 = vmatpush1.bf16.msra.mxu0 %v10762_v60  ;;  %v10771_v56 = vld [vmem:[%s15192_s10 + $0x30] ss:$8 sps:$4 sm:$0xff]   ;;  %v10797_v60 = vld [vmem:[%s15192_s10 + $0xb4] ss:$8 sps:$4 sm:$0xff]  }
 0xc71   :  { %4157 = vmatprep.subr.bf16.mxu0 %v10767_v1 }
 0xc74   :  { %4158 = vmatpush1.bf16.msra.mxu0 %v10765_v17 }
 0xc75   :  { %4159 = vmatprep.subr.bf16.mxu0 %v10770_v33 }
 0xc77   :  { %3354 = vmatmul.mubr.bf16.gmra.mrb[68].mxu0 %v12772_v54  ;;  %v10779_v54 = vld [vmem:[%s15192_s10 + $0x54] ss:$8 sps:$4 sm:$0xff]  }
 0xc78   :  { %4160 = vmatpush1.bf16.msra.mxu0 %v10768_v43 }
 0xc79   :  { %4161 = vmatprep.subr.bf16.mxu0 %v10773_v30 }
 0xc7c   :  { %4162 = vmatpush1.bf16.msra.mxu0 %v10771_v56  ;;  %v10795_v56 = vld [vmem:[%s15192_s10 + $0xb0] ss:$8 sps:$4 sm:$0xff]  }
 0xc7d   :  { %4163 = vmatprep.subr.bf16.mxu0 %v10776_v15 }
 0xc80   :  { %4164 = vmatpush1.bf16.msra.mxu0 %v10774_v61 }
 0xc81   :  { %4165 = vmatprep.subr.bf16.mxu0 %v10779_v54  ;;  %v10800_v54 = vld [vmem:[%s15192_s10 + $0xc4] ss:$8 sps:$4 sm:$0xff]  }
 0xc82   :  { %v13186_v29 = vpop.f32.mrb[40].mxu0  ;;  %v13188_v32 = vpop.f32.mrb[32].mxu1 }
 0xc83   :  { %v8991_v31 = vmul.f32 -1.442695, %v13186_v29  ;;  %v13194_v19 = vpop.f32.mrb[41].mxu0  ;;  %v13196_v38 = vpop.f32.mrb[33].mxu1 }
 0xc84   :  { %v8992_v39 = vmul.f32 -1.442695, %v13194_v19  ;;  %v13199_v40 = vpop.f32.mrb[42].mxu0  ;;  %v13201_v41 = vpop.f32.mrb[34].mxu1  ;;  %4166 = vmatpush1.bf16.msra.mxu0 %v10777_v16 }
 0xc85   :  { %11522 = vpow2.f32 %v8991_v31  ;;  %v8997_v42 = vmul.f32 -1.442695, %v13199_v40  ;;  %v13204_v44 = vpop.f32.mrb[43].mxu0  ;;  %v13206_v47 = vpop.f32.mrb[35].mxu1  ;;  %4167 = vmatprep.subr.bf16.mxu0 %v10782_v35 }
 0xc86   :  { %11524 = vpow2.f32 %v8992_v39  ;;  %v8998_v46 = vmul.f32 -1.442695, %v13204_v44 }
 0xc87   :  { %11526 = vpow2.f32 %v8997_v42  ;;  %v10798_v42 = vld [vmem:[%s15192_s10 + $0xc0] ss:$8 sps:$4 sm:$0xff]  }
 0xc88   :  { %11528 = vpow2.f32 %v8998_v46  ;;  %4168 = vmatpush1.bf16.msra.mxu0 %v10780_v48 }
 0xc89   :  { %4169 = vmatprep.subr.bf16.mxu0 %v10785_v49  ;;  %v10803_v49 = vld [vmem:[%s15192_s10 + $0xd4] ss:$8 sps:$4 sm:$0xff]  }
 0xc8a   :  { %v13218_v22 = vpop.f32.mrb[44].mxu0  ;;  %v13224_v52 = vpop.f32.mrb[36].mxu1 }
 0xc8b   :  { %v9003_v23 = vmul.f32 -1.442695, %v13218_v22  ;;  %v13226_v37 = vpop.f32.mrb[45].mxu0  ;;  %v13229_v57 = vpop.f32.mrb[37].mxu1 }
 0xc8c   :  { %v9004_v53 = vmul.f32 -1.442695, %v13226_v37  ;;  %v13231_v58 = vpop.f32.mrb[46].mxu0  ;;  %4170 = vmatpush1.bf16.msra.mxu0 %v10783_v18  ;;  %v13234_v62 = vpop.f32.mrb[38].mxu1 }
 0xc8d   :  { %11530 = vpow2.f32 %v9003_v23  ;;  %v9009_v59 = vmul.f32 -1.442695, %v13231_v58  ;;  %v13236_v63 = vpop.f32.mrb[47].mxu0  ;;  %v13242_v4 = vpop.f32.mrb[39].mxu1  ;;  %4171 = vmatprep.subr.bf16.mxu0 %v10788_v51 }
 0xc8e   :  { %11532 = vpow2.f32 %v9004_v53  ;;  %v9010_v2 = vmul.f32 -1.442695, %v13236_v63 }
 0xc8f   :  { %v11523_v6 = vpop.eup %11522  ;;  %11534 = vpow2.f32 %v9009_v59 }
 0xc90   :  { %v11525_v24 = vpop.eup %11524  ;;  %v3489_v25 = vadd.f32 1.0, %v11523_v6  ;;  %11536 = vpow2.f32 %v9010_v2  ;;  %4172 = vmatpush1.bf16.msra.mxu0 %v10786_v0 }
 0xc91   :  { %v11527_v9 = vpop.eup %11526  ;;  %v3490_v26 = vadd.f32 1.0, %v11525_v24  ;;  %4173 = vmatprep.subr.bf16.mxu0 %v10791_v5 }
 0xc92   :  { %v11529_v27 = vpop.eup %11528  ;;  %11538 = vrcp.f32 %v3489_v25  ;;  %v3495_v11 = vadd.f32 1.0, %v11527_v9 }
 0xc93   :  { %11540 = vrcp.f32 %v3490_v26  ;;  %v3496_v13 = vadd.f32 1.0, %v11529_v27 }
 0xc94   :  { %11542 = vrcp.f32 %v3495_v11  ;;  %4174 = vmatpush1.bf16.msra.mxu0 %v10789_v55 }
 0xc95   :  { %11544 = vrcp.f32 %v3496_v13  ;;  %4175 = vmatprep.subr.bf16.mxu0 %v10794_v12  ;;  %v10816_v13 = vld [vmem:[%s15192_s10 + $0x120] ss:$8 sps:$4 sm:$0xff]  }
 0xc97   :  { %v11531_v1 = vpop.eup %11530 }
 0xc98   :  { %v11533_v17 = vpop.eup %11532  ;;  %v3501_v33 = vadd.f32 1.0, %v11531_v1  ;;  %4176 = vmatpush1.bf16.msra.mxu0 %v10792_v50  ;;  %v10821_v50 = vld [vmem:[%s15192_s10 + $0x134] ss:$8 sps:$4 sm:$0xff]   ;;  %v10824_v1 = vld [vmem:[%s15192_s10 + $0x144] ss:$8 sps:$4 sm:$0xff]  }
 0xc99   :  { %v11535_v43 = vpop.eup %11534  ;;  %v3502_v30 = vadd.f32 1.0, %v11533_v17  ;;  %4177 = vmatprep.subr.bf16.mxu0 %v10797_v60  ;;  %v10819_v60 = vld [vmem:[%s15192_s10 + $0x130] ss:$8 sps:$4 sm:$0xff]   ;;  %v10822_v17 = vld [vmem:[%s15192_s10 + $0x140] ss:$8 sps:$4 sm:$0xff]  }
 0xc9a   :  { %v11537_v15 = vpop.eup %11536  ;;  %11546 = vrcp.f32 %v3501_v33  ;;  %v3507_v61 = vadd.f32 1.0, %v11535_v43  ;;  %v10827_v33 = vld [vmem:[%s15192_s10 + $0x154] ss:$8 sps:$4 sm:$0xff]   ;;  %v10825_v43 = vld [vmem:[%s15192_s10 + $0x150] ss:$8 sps:$4 sm:$0xff]  }
 0xc9b   :  { %11548 = vrcp.f32 %v3502_v30  ;;  %v3508_v16 = vadd.f32 1.0, %v11537_v15 }
 0xc9c   :  { %v11539_v35 = vpop.eup %11538  ;;  %11550 = vrcp.f32 %v3507_v61  ;;  %4178 = vmatpush1.bf16.msra.mxu0 %v10795_v56  ;;  %v10830_v56 = vld [vmem:[%s15192_s10 + $0x164] ss:$8 sps:$4 sm:$0xff]  }
 0xc9d   :  { %v11541_v31 = vpop.eup %11540  ;;  %v3561_v39 = vmul.f32 %v11539_v35, %v13186_v29  ;;  %11552 = vrcp.f32 %v3508_v16  ;;  %4179 = vmatprep.subr.bf16.mxu0 %v10800_v54 }
 0xc9e   :  { %v11543_v48 = vpop.eup %11542  ;;  %v3562_v46 = vmul.f32 %v11541_v31, %v13194_v19  ;;  %v10801_v19 = vld [vmem:[%s15192_s10 + $0xd0] ss:$8 sps:$4 sm:$0xff]  }
 0xc9f   :  { %v11545_v18 = vpop.eup %11544  ;;  %v3585_v51 = vmul.f32 %v3561_v39, %v13188_v32  ;;  %v3567_v23 = vmul.f32 %v11543_v48, %v13199_v40  ;;  %v10806_v32 = vld [vmem:[%s15192_s10 + $0xe4] ss:$8 sps:$4 sm:$0xff]   ;;  %v10828_v39 = vld [vmem:[%s15192_s10 + $0x160] ss:$8 sps:$4 sm:$0xff]   ;;  %v10833_v48 = vld [vmem:[%s15192_s10 + $0x174] ss:$8 sps:$4 sm:$0xff]  }
 0xca0   :  { %v3586_v29 = vmul.f32 %v3562_v46, %v13196_v38  ;;  %v3568_v53 = vmul.f32 %v11545_v18, %v13204_v44  ;;  %4180 = vmatpush1.bf16.msra.mxu0 %v10798_v42  ;;  %v10831_v46 = vld [vmem:[%s15192_s10 + $0x170] ss:$8 sps:$4 sm:$0xff]   ;;  %v10836_v18 = vld [vmem:[%s15192_s10 + $0x184] ss:$8 sps:$4 sm:$0xff]  }
 0xca1   :  { %v3591_v59 = vmul.f32 %v3567_v23, %v13201_v41  ;;  %4181 = vmatprep.subr.bf16.mxu0 %v10803_v49  ;;  %v10804_v41 = vld [vmem:[%s15192_s10 + $0xe0] ss:$8 sps:$4 sm:$0xff]  }
 0xca2   :  { %v3592_v0 = vmul.f32 %v3568_v53, %v13206_v47  ;;  %v10809_v47 = vld [vmem:[%s15192_s10 + $0xf4] ss:$8 sps:$4 sm:$0xff]  }
 0xca3   :  { %v3609_v2 = vpack.c.bf16 %v3591_v59, %v3585_v51 }
 0xca4   :  { %v11547_v40 = vpop.eup %11546  ;;  %v3610_v5 = vpack.c.bf16 %v3592_v0, %v3586_v29  ;;  %4182 = vmatpush1.bf16.msra.mxu0 %v10801_v19  ;;  %v10834_v0 = vld [vmem:[%s15192_s10 + $0x180] ss:$8 sps:$4 sm:$0xff]  }
 0xca5   :  { %v11549_v38 = vpop.eup %11548  ;;  %v3573_v44 = vmul.f32 %v11547_v40, %v13218_v22  ;;  %4183 = vmatprep.subr.bf16.mxu0 %v10806_v32  ;;  %v10837_v40 = vld [vmem:[%s15192_s10 + $0x190] ss:$8 sps:$4 sm:$0xff]  }
 0xca6   :  { %v11551_v6 = vpop.eup %11550  ;;  %v3574_v24 = vmul.f32 %v11549_v38, %v13226_v37  ;;  %4187 = vmatprep.mubr.bf16.mxu0 %v3610_v5  ;;  %v10807_v37 = vld [vmem:[%s15192_s10 + $0xf0] ss:$8 sps:$4 sm:$0xff]   ;;  %v10842_v5 = vld [vmem:[%s15192_s10 + $0x1a4] ss:$8 sps:$4 sm:$0xff]   ;;  %v10840_v38 = vld [vmem:[%s15192_s10 + $0x1a0] ss:$8 sps:$4 sm:$0xff]  }
 0xca7   :  { %v11553_v25 = vpop.eup %11552  ;;  %v3597_v9 = vmul.f32 %v3573_v44, %v13224_v52  ;;  %v3579_v26 = vmul.f32 %v11551_v6, %v13231_v58  ;;  %v10812_v52 = vld [vmem:[%s15192_s10 + $0x104] ss:$8 sps:$4 sm:$0xff]   ;;  %v10845_v44 = vld [vmem:[%s15192_s10 + $0x1b4] ss:$8 sps:$4 sm:$0xff]  }
 0xca8   :  { %v3598_v22 = vmul.f32 %v3574_v24, %v13229_v57  ;;  %v3580_v55 = vmul.f32 %v11553_v25, %v13236_v63  ;;  %4184 = vmatpush1.bf16.msra.mxu0 %v10804_v41  ;;  %v10810_v57 = vld [vmem:[%s15192_s10 + $0x100] ss:$8 sps:$4 sm:$0xff]   ;;  %v10813_v63 = vld [vmem:[%s15192_s10 + $0x110] ss:$8 sps:$4 sm:$0xff]   ;;  %v10848_v6 = vld [vmem:[%s15192_s10 + $0x1c4] ss:$8 sps:$4 sm:$0xff]  }
 0xca9   :  { %v3603_v27 = vmul.f32 %v3579_v26, %v13234_v62  ;;  %4185 = vmatprep.subr.bf16.mxu0 %v10809_v47  ;;  %v10815_v62 = vld [vmem:[%s15192_s10 + $0x114] ss:$8 sps:$4 sm:$0xff]   ;;  %v10843_v41 = vld [vmem:[%s15192_s10 + $0x1b0] ss:$8 sps:$4 sm:$0xff]   ;;  %v10846_v24 = vld [vmem:[%s15192_s10 + $0x1c0] ss:$8 sps:$4 sm:$0xff]  }
 0xcaa   :  { %v3604_v11 = vmul.f32 %v3580_v55, %v13242_v4  ;;  %v10818_v4 = vld [vmem:[%s15192_s10 + $0x124] ss:$8 sps:$4 sm:$0xff]   ;;  %v10851_v47 = vld [vmem:[%s15192_s10 + $0x1d4] ss:$8 sps:$4 sm:$0xff]   ;;  %v10849_v25 = vld [vmem:[%s15192_s10 + $0x1d0] ss:$8 sps:$4 sm:$0xff]  }
 0xcab   :  { %v3615_v12 = vpack.c.bf16 %v3603_v27, %v3597_v9  ;;  %v10854_v9 = vld [vmem:[%s15192_s10 + $0x1e4] ss:$8 sps:$4 sm:$0xff]   ;;  %v10852_v26 = vld [vmem:[%s15192_s10 + $0x1e0] ss:$8 sps:$4 sm:$0xff]   ;;  %v10855_v55 = vld [vmem:[%s15192_s10 + $0x1f0] ss:$8 sps:$4 sm:$0xff]  }
 0xcac   :  { %v3616_v58 = vpack.c.bf16 %v3604_v11, %v3598_v22  ;;  %4186 = vmatpush1.bf16.msra.mxu0 %v10807_v37  ;;  %v10857_v22 = vld [vmem:[%s15192_s10 + $0x1f4] ss:$8 sps:$4 sm:$0xff]   ;;  %v10860_v27 = vld [vmem:[%s15192_s10 + $0x204] ss:$8 sps:$4 sm:$0xff]  }
 0xcad   :  { %4208 = vmatprep.subr.bf16.mxu0 %v10812_v52 }
 0xcaf   :  { %4188 = vmatmul.mubr.bf16.vlgmr.msra.gmra.mrb[72].mxu0 %v3609_v2  ;;  %v10839_v2 = vld [vmem:[%s15192_s10 + $0x194] ss:$8 sps:$4 sm:$0xff]  }
 0xcb0   :  { %4197 = vmatprep.mubr.bf16.mxu0 %v3616_v58  ;;  %4209 = vmatpush1.bf16.msra.mxu0 %v10810_v57 }
 0xcb1   :  { %4210 = vmatprep.subr.bf16.mxu0 %v10815_v62 }
 0xcb4   :  { %4211 = vmatpush1.bf16.msra.mxu0 %v10813_v63 }
 0xcb5   :  { %4212 = vmatprep.subr.bf16.mxu0 %v10818_v4 }
 0xcb7   :  { %4198 = vmatmul.mubr.bf16.gmra.mrb[76].mxu0 %v3615_v12 }
 0xcb8   :  { %4213 = vmatpush1.bf16.msra.mxu0 %v10816_v13 }
 0xcb9   :  { %4214 = vmatprep.subr.bf16.mxu0 %v10821_v50 }
 0xcbc   :  { %4215 = vmatpush1.bf16.msra.mxu0 %v10819_v60 }
 0xcbd   :  { %4216 = vmatprep.subr.bf16.mxu0 %v10824_v1 }
 0xcc0   :  { %4217 = vmatpush1.bf16.msra.mxu0 %v10822_v17 }
 0xcc1   :  { %4218 = vmatprep.subr.bf16.mxu0 %v10827_v33 }
 0xcc2   :  { %v13338_v30 = vpop.f32.mrb[48].mxu0  ;;  %v13343_v15 = vpop.f32.mrb[40].mxu1 }
 0xcc3   :  { %v13345_v61 = vpop.f32.mrb[49].mxu0  ;;  %v13347_v54 = vpop.f32.mrb[41].mxu1 }
 0xcc4   :  { %v13349_v16 = vpop.f32.mrb[50].mxu0  ;;  %v13351_v35 = vpop.f32.mrb[42].mxu1  ;;  %4219 = vmatpush1.bf16.msra.mxu0 %v10825_v43 }
 0xcc5   :  { %v13353_v31 = vpop.f32.mrb[51].mxu0  ;;  %v13358_v42 = vpop.f32.mrb[43].mxu1  ;;  %4220 = vmatprep.subr.bf16.mxu0 %v10830_v56 }
 0xcc8   :  { %4221 = vmatpush1.bf16.msra.mxu0 %v10828_v39 }
 0xcc9   :  { %4222 = vmatprep.subr.bf16.mxu0 %v10833_v48 }
 0xcca   :  { %v13366_v49 = vpop.f32.mrb[52].mxu0  ;;  %v13371_v51 = vpop.f32.mrb[44].mxu1 }
 0xccb   :  { %v13373_v23 = vpop.f32.mrb[53].mxu0  ;;  %v13375_v29 = vpop.f32.mrb[45].mxu1 }
 0xccc   :  { %v13377_v53 = vpop.f32.mrb[54].mxu0  ;;  %v13379_v59 = vpop.f32.mrb[46].mxu1  ;;  %4223 = vmatpush1.bf16.msra.mxu0 %v10831_v46 }
 0xccd   :  { %v13381_v19 = vpop.f32.mrb[55].mxu0  ;;  %v13386_v32 = vpop.f32.mrb[47].mxu1  ;;  %4224 = vmatprep.subr.bf16.mxu0 %v10836_v18 }
 0xcd0   :  { %4225 = vmatpush1.bf16.msra.mxu0 %v10834_v0 }
 0xcd1   :  { %4226 = vmatprep.subr.bf16.mxu0 %v10839_v2 }
 0xcd4   :  { %4227 = vmatpush1.bf16.msra.mxu0 %v10837_v40 }
 0xcd5   :  { %4228 = vmatprep.subr.bf16.mxu0 %v10842_v5 }
 0xcd8   :  { %4229 = vmatpush1.bf16.msra.mxu0 %v10840_v38 }
 0xcd9   :  { %4230 = vmatprep.subr.bf16.mxu0 %v10845_v44 }
 0xcdc   :  { %4231 = vmatpush1.bf16.msra.mxu0 %v10843_v41 }
 0xcdd   :  { %4232 = vmatprep.subr.bf16.mxu0 %v10848_v6 }
 0xce0   :  { %4233 = vmatpush1.bf16.msra.mxu0 %v10846_v24 }
 0xce1   :  { %4234 = vmatprep.subr.bf16.mxu0 %v10851_v47 }
 0xce4   :  { %4235 = vmatpush1.bf16.msra.mxu0 %v10849_v25 }
 0xce5   :  { %4236 = vmatprep.subr.bf16.mxu0 %v10854_v9 }
 0xce8   :  { %4237 = vmatpush1.bf16.msra.mxu0 %v10852_v26 }
 0xce9   :  { %4238 = vmatprep.subr.bf16.mxu0 %v10857_v22 }
 0xcec   :  { %4239 = vmatpush1.bf16.msra.mxu0 %v10855_v55 }
 0xced   :  { %4261 = vmatprep.subr.bf16.mxu0 %v10860_v27 }
 0xd02   :  { %v2663_v37 = vpop.f32.mrb[56].mxu0 }
 0xd03   :  { %v8995_v11 = vmul.f32 -1.442695, %v2663_v37  ;;  %v2665_v52 = vpop.f32.mrb[57].mxu0 }
 0xd04   :  { %v8996_v12 = vmul.f32 -1.442695, %v2665_v52  ;;  %v2667_v58 = vpop.f32.mrb[58].mxu0 }
 0xd05   :  { %11554 = vpow2.f32 %v8995_v11  ;;  %v9001_v57 = vmul.f32 -1.442695, %v2667_v58  ;;  %v2669_v62 = vpop.f32.mrb[59].mxu0 }
 0xd06   :  { %11556 = vpow2.f32 %v8996_v12  ;;  %v9002_v63 = vmul.f32 -1.442695, %v2669_v62  ;;  %v8993_v12 = vmul.f32 -1.442695, %v13338_v30 }
 0xd07   :  { %11558 = vpow2.f32 %v9001_v57 }
 0xd08   :  { %11560 = vpow2.f32 %v9002_v63 }
 0xd0a   :  { %v2673_v4 = vpop.f32.mrb[60].mxu0 }
 0xd0b   :  { %v9007_v13 = vmul.f32 -1.442695, %v2673_v4  ;;  %v2675_v50 = vpop.f32.mrb[61].mxu0 }
 0xd0c   :  { %v9008_v60 = vmul.f32 -1.442695, %v2675_v50  ;;  %v2677_v1 = vpop.f32.mrb[62].mxu0 }
 0xd0d   :  { %11562 = vpow2.f32 %v9007_v13  ;;  %v9013_v17 = vmul.f32 -1.442695, %v2677_v1  ;;  %v2679_v33 = vpop.f32.mrb[63].mxu0  ;;  %v8994_v13 = vmul.f32 -1.442695, %v13345_v61 }
 0xd0e   :  { %11564 = vpow2.f32 %v9008_v60  ;;  %v9014_v43 = vmul.f32 -1.442695, %v2679_v33 }
 0xd0f   :  { %v11555_v56 = vpop.eup %11554  ;;  %11566 = vpow2.f32 %v9013_v17 }
 0xd10   :  { %v11557_v39 = vpop.eup %11556  ;;  %v3493_v48 = vadd.f32 1.0, %v11555_v56  ;;  %11568 = vpow2.f32 %v9014_v43  ;;  %v8999_v43 = vmul.f32 -1.442695, %v13349_v16 }
 0xd11   :  { %v11559_v46 = vpop.eup %11558  ;;  %v3494_v18 = vadd.f32 1.0, %v11557_v39 }
 0xd12   :  { %v11561_v0 = vpop.eup %11560  ;;  %11570 = vrcp.f32 %v3493_v48  ;;  %v3499_v2 = vadd.f32 1.0, %v11559_v46 }
 0xd13   :  { %11572 = vrcp.f32 %v3494_v18  ;;  %v3500_v40 = vadd.f32 1.0, %v11561_v0  ;;  %v9005_v18 = vmul.f32 -1.442695, %v13366_v49 }
 0xd14   :  { %11574 = vrcp.f32 %v3499_v2  ;;  %v9006_v2 = vmul.f32 -1.442695, %v13373_v23 }
 0xd15   :  { %11576 = vrcp.f32 %v3500_v40 }
 0xd17   :  { %v11563_v5 = vpop.eup %11562 }
 0xd18   :  { %v11565_v38 = vpop.eup %11564  ;;  %v3505_v44 = vadd.f32 1.0, %v11563_v5 }
 0xd19   :  { %v11567_v41 = vpop.eup %11566  ;;  %v3506_v6 = vadd.f32 1.0, %v11565_v38  ;;  %v9011_v38 = vmul.f32 -1.442695, %v13377_v53 }
 0xd1a   :  { %v11569_v24 = vpop.eup %11568  ;;  %11578 = vrcp.f32 %v3505_v44  ;;  %v3511_v47 = vadd.f32 1.0, %v11567_v41 }
 0xd1b   :  { %11580 = vrcp.f32 %v3506_v6  ;;  %v3512_v25 = vadd.f32 1.0, %v11569_v24 }
 0xd1c   :  { %v11571_v9 = vpop.eup %11570  ;;  %11582 = vrcp.f32 %v3511_v47 }
 0xd1d   :  { %v11573_v26 = vpop.eup %11572  ;;  %v3565_v22 = vmul.f32 %v11571_v9, %v2663_v37  ;;  %11584 = vrcp.f32 %v3512_v25 }
 0xd1e   :  { %v11575_v55 = vpop.eup %11574  ;;  %v3566_v27 = vmul.f32 %v11573_v26, %v2665_v52  ;;  %v9000_v52 = vmul.f32 -1.442695, %v13353_v31  ;;  %11586 = vpow2.f32 %v8993_v12 }
 0xd1f   :  { %v11577_v11 = vpop.eup %11576  ;;  %v13435_v57 = vmul.f32 %v3565_v22, %v13343_v15  ;;  %v3571_v63 = vmul.f32 %v11575_v55, %v2667_v58  ;;  %11588 = vpow2.f32 %v8994_v13 }
 0xd20   :  { %v13439_v60 = vmul.f32 %v3566_v27, %v13347_v54  ;;  %v3572_v17 = vmul.f32 %v11577_v11, %v2669_v62  ;;  %11590 = vpow2.f32 %v8999_v43 }
 0xd21   :  { %v13443_v37 = vmul.f32 %v3571_v63, %v13351_v35  ;;  %11592 = vpow2.f32 %v9000_v52 }
 0xd22   :  { %v13447_v56 = vmul.f32 %v3572_v17, %v13358_v42  ;;  %11594 = vpow2.f32 %v9005_v18 }
 0xd23   :  { %v3613_v15 = vpack.c.bf16 %v13443_v37, %v13435_v57  ;;  %11596 = vpow2.f32 %v9006_v2  ;;  %v10896_v57 = vld [vmem:[%s15185_s3 + $0x104] ss:$8 sps:$4 sm:$0xff]   ;;  %v10899_v37 = vld [vmem:[%s15185_s3 + $0x114] ss:$8 sps:$4 sm:$0xff]  }
 0xd24   :  { %v11579_v58 = vpop.eup %11578  ;;  %v3614_v54 = vpack.c.bf16 %v13447_v56, %v13439_v60  ;;  %11598 = vpow2.f32 %v9011_v38  ;;  %v10875_v60 = vld [vmem:[%s15192_s10 + $0x254] ss:$8 sps:$4 sm:$0xff]   ;;  %v10873_v56 = vld [vmem:[%s15192_s10 + $0x250] ss:$8 sps:$4 sm:$0xff]   ;;  %4580 = vmatprep.subr.bf16.mxu1 %v10896_v57 }
 0xd25   :  { %v11581_v62 = vpop.eup %11580  ;;  %v3577_v39 = vmul.f32 %v11579_v58, %v2673_v4 }
 0xd26   :  { %v11583_v48 = vpop.eup %11582  ;;  %v3578_v35 = vmul.f32 %v11581_v62, %v2675_v50  ;;  %v9012_v50 = vmul.f32 -1.442695, %v13381_v19 }
 0xd27   :  { %v11585_v46 = vpop.eup %11584  ;;  %v13455_v42 = vmul.f32 %v3577_v39, %v13371_v51  ;;  %v3583_v0 = vmul.f32 %v11583_v48, %v2677_v1 }
 0xd28   :  { %v13459_v40 = vmul.f32 %v3578_v35, %v13375_v29  ;;  %v3584_v5 = vmul.f32 %v11585_v46, %v2679_v33  ;;  %v11587_v1 = vpop.eup %11586  ;;  %11600 = vpow2.f32 %v9012_v50 }
 0xd29   :  { %v13463_v4 = vmul.f32 %v3583_v0, %v13379_v59  ;;  %v11589_v33 = vpop.eup %11588  ;;  %v3491_v6 = vadd.f32 1.0, %v11587_v1 }
 0xd2a   :  { %v13467_v44 = vmul.f32 %v3584_v5, %v13386_v32  ;;  %v11591_v41 = vpop.eup %11590  ;;  %v3492_v24 = vadd.f32 1.0, %v11589_v33 }
 0xd2b   :  { %v3619_v51 = vpack.c.bf16 %v13463_v4, %v13455_v42  ;;  %v11593_v59 = vpop.eup %11592  ;;  %v3497_v47 = vadd.f32 1.0, %v11591_v41  ;;  %11602 = vrcp.f32 %v3491_v6  ;;  %v10902_v42 = vld [vmem:[%s15185_s3 + $0x124] ss:$8 sps:$4 sm:$0xff]   ;;  %v10905_v4 = vld [vmem:[%s15185_s3 + $0x134] ss:$8 sps:$4 sm:$0xff]  }
 0xd2c   :  { %v3620_v29 = vpack.c.bf16 %v13467_v44, %v13459_v40  ;;  %v3498_v25 = vadd.f32 1.0, %v11593_v59  ;;  %v11595_v32 = vpop.eup %11594  ;;  %11604 = vrcp.f32 %v3492_v24  ;;  %v10900_v40 = vld [vmem:[%s15185_s3 + $0x120] ss:$8 sps:$4 sm:$0xff]   ;;  %v10903_v44 = vld [vmem:[%s15185_s3 + $0x130] ss:$8 sps:$4 sm:$0xff]  }
 0xd2d   :  { %v11597_v9 = vpop.eup %11596  ;;  %11606 = vrcp.f32 %v3497_v47  ;;  %v3503_v55 = vadd.f32 1.0, %v11595_v32 }
 0xd2e   :  { %v11599_v26 = vpop.eup %11598  ;;  %11608 = vrcp.f32 %v3498_v25  ;;  %v3504_v27 = vadd.f32 1.0, %v11597_v9 }
 0xd2f   :  { %v3509_v11 = vadd.f32 1.0, %v11599_v26  ;;  %11610 = vrcp.f32 %v3503_v55 }
 0xd30   :  { %11612 = vrcp.f32 %v3504_v27 }
 0xd31   :  { %11614 = vrcp.f32 %v3509_v11 }
 0xd32   :  { %v11601_v22 = vpop.eup %11600 }
 0xd33   :  { %v3510_v12 = vadd.f32 1.0, %v11601_v22 }
 0xd35   :  { %v11603_v63 = vpop.eup %11602  ;;  %11616 = vrcp.f32 %v3510_v12 }
 0xd36   :  { %v11605_v13 = vpop.eup %11604  ;;  %v3563_v52 = vmul.f32 %v11603_v63, %v13338_v30  ;;  %v10858_v30 = vld [vmem:[%s15192_s10 + $0x200] ss:$8 sps:$4 sm:$0xff]   ;;  %v10869_v63 = vld [vmem:[%s15192_s10 + $0x234] ss:$8 sps:$4 sm:$0xff]  }
 0xd37   :  { %v11607_v17 = vpop.eup %11606  ;;  %v3564_v58 = vmul.f32 %v11605_v13, %v13345_v61  ;;  %v10867_v13 = vld [vmem:[%s15192_s10 + $0x230] ss:$8 sps:$4 sm:$0xff]  }
 0xd38   :  { %v11609_v43 = vpop.eup %11608  ;;  %v3569_v39 = vmul.f32 %v11607_v17, %v13349_v16  ;;  %v10872_v17 = vld [vmem:[%s15192_s10 + $0x244] ss:$8 sps:$4 sm:$0xff]  }
 0xd39   :  { %v3570_v46 = vmul.f32 %v11609_v43, %v13353_v31  ;;  %v11611_v38 = vpop.eup %11610  ;;  %v10863_v31 = vld [vmem:[%s15192_s10 + $0x214] ss:$8 sps:$4 sm:$0xff]   ;;  %v10870_v43 = vld [vmem:[%s15192_s10 + $0x240] ss:$8 sps:$4 sm:$0xff]  }
 0xd3a   :  { %v11613_v1 = vpop.eup %11612  ;;  %v3575_v16 = vmul.f32 %v11611_v38, %v13366_v49  ;;  %v10861_v49 = vld [vmem:[%s15192_s10 + $0x210] ss:$8 sps:$4 sm:$0xff]   ;;  %v10894_v38 = vld [vmem:[%s15185_s3 + $0x100] ss:$8 sps:$4 sm:$0xff]  }
 0xd3b   :  { %v11615_v41 = vpop.eup %11614  ;;  %v3576_v6 = vmul.f32 %v11613_v1, %v13373_v23  ;;  %v10866_v23 = vld [vmem:[%s15192_s10 + $0x224] ss:$8 sps:$4 sm:$0xff]   ;;  %4581 = vmatpush1.bf16.msra.mxu1 %v10894_v38  ;;  %v10909_v1 = vld [vmem:[%s15185_s3 + $0x150] ss:$8 sps:$4 sm:$0xff]  }
 0xd3c   :  { %v3581_v47 = vmul.f32 %v11615_v41, %v13377_v53  ;;  %4582 = vmatprep.subr.bf16.mxu1 %v10899_v37  ;;  %v10912_v41 = vld [vmem:[%s15185_s3 + $0x160] ss:$8 sps:$4 sm:$0xff]  }
 0xd3f   :  { %v11617_v61 = vpop.eup %11616 }
 0xd40   :  { %v3582_v9 = vmul.f32 %v11617_v61, %v13381_v19  ;;  %v10864_v19 = vld [vmem:[%s15192_s10 + $0x220] ss:$8 sps:$4 sm:$0xff]   ;;  %v10920_v61 = vld [vmem:[%s15185_s3 + $0x184] ss:$8 sps:$4 sm:$0xff]  }
 0xd42   :  { %v3345_v62 = vpop.f32.mrb[64].mxu0 }
 0xd43   :  { %v3587_v48 = vmul.f32 %v3563_v52, %v3345_v62  ;;  %v3347_v35 = vpop.f32.mrb[65].mxu0  ;;  %v10876_v52 = vld [vmem:[%s15192_s10 + $0x260] ss:$8 sps:$4 sm:$0xff]   ;;  %v10879_v62 = vld [vmem:[%s15192_s10 + $0x270] ss:$8 sps:$4 sm:$0xff]  }
 0xd44   :  { %v3588_v18 = vmul.f32 %v3564_v58, %v3347_v35  ;;  %v3349_v0 = vpop.f32.mrb[66].mxu0  ;;  %v10881_v58 = vld [vmem:[%s15192_s10 + $0x274] ss:$8 sps:$4 sm:$0xff]  }
 0xd45   :  { %v3593_v2 = vmul.f32 %v3569_v39, %v3349_v0  ;;  %v3351_v5 = vpop.f32.mrb[67].mxu0  ;;  %v10884_v39 = vld [vmem:[%s15192_s10 + $0x284] ss:$8 sps:$4 sm:$0xff]   ;;  %v10887_v35 = vld [vmem:[%s15192_s10 + $0x294] ss:$8 sps:$4 sm:$0xff]  }
 0xd46   :  { %v3594_v50 = vmul.f32 %v3570_v46, %v3351_v5  ;;  %v10885_v46 = vld [vmem:[%s15192_s10 + $0x290] ss:$8 sps:$4 sm:$0xff]   ;;  %v10888_v0 = vld [vmem:[%s15192_s10 + $0x2a0] ss:$8 sps:$4 sm:$0xff]  }
 0xd47   :  { %v3611_v33 = vpack.c.bf16 %v3593_v2, %v3587_v48  ;;  %v10882_v48 = vld [vmem:[%s15192_s10 + $0x280] ss:$8 sps:$4 sm:$0xff]   ;;  %v10893_v2 = vld [vmem:[%s15192_s10 + $0x2b4] ss:$8 sps:$4 sm:$0xff]   ;;  %v10891_v5 = vld [vmem:[%s15192_s10 + $0x2b0] ss:$8 sps:$4 sm:$0xff]  }
 0xd48   :  { %v3612_v59 = vpack.c.bf16 %v3594_v50, %v3588_v18  ;;  %v10890_v18 = vld [vmem:[%s15192_s10 + $0x2a4] ss:$8 sps:$4 sm:$0xff]   ;;  %v10911_v50 = vld [vmem:[%s15185_s3 + $0x154] ss:$8 sps:$4 sm:$0xff]  }
 0xd4a   :  { %v3355_v24 = vpop.f32.mrb[68].mxu0  ;;  %4240 = vmatprep.mubr.bf16.mxu0 %v3612_v59  ;;  %v10917_v59 = vld [vmem:[%s15185_s3 + $0x174] ss:$8 sps:$4 sm:$0xff]  }
 0xd4b   :  { %v3599_v25 = vmul.f32 %v3575_v16, %v3355_v24  ;;  %v3357_v32 = vpop.f32.mrb[69].mxu0  ;;  %4241 = vmatmul.mubr.bf16.vlgmr.msra.gmra.mrb[72].mxu0 %v3611_v33  ;;  %v10914_v33 = vld [vmem:[%s15185_s3 + $0x164] ss:$8 sps:$4 sm:$0xff]   ;;  %v10918_v16 = vld [vmem:[%s15185_s3 + $0x180] ss:$8 sps:$4 sm:$0xff]  }
 0xd4c   :  { %v3600_v26 = vmul.f32 %v3576_v6, %v3357_v32  ;;  %4262 = vmatpush1.bf16.msra.mxu0 %v10858_v30  ;;  %v3359_v22 = vpop.f32.mrb[70].mxu0  ;;  %v10915_v30 = vld [vmem:[%s15185_s3 + $0x170] ss:$8 sps:$4 sm:$0xff]   ;;  %v10926_v24 = vld [vmem:[%s15185_s3 + $0x1a4] ss:$8 sps:$4 sm:$0xff]  }
 0xd4d   :  { %v3605_v55 = vmul.f32 %v3581_v47, %v3359_v22  ;;  %v3361_v27 = vpop.f32.mrb[71].mxu0  ;;  %4263 = vmatprep.subr.bf16.mxu0 %v10863_v31  ;;  %v10923_v31 = vld [vmem:[%s15185_s3 + $0x194] ss:$8 sps:$4 sm:$0xff]   ;;  %v10921_v6 = vld [vmem:[%s15185_s3 + $0x190] ss:$8 sps:$4 sm:$0xff]  }
 0xd4e   :  { %v3606_v53 = vmul.f32 %v3582_v9, %v3361_v27  ;;  %v10924_v47 = vld [vmem:[%s15185_s3 + $0x1a0] ss:$8 sps:$4 sm:$0xff]  }
 0xd4f   :  { %v3617_v11 = vpack.c.bf16 %v3605_v55, %v3599_v25 }
 0xd50   :  { %v3618_v12 = vpack.c.bf16 %v3606_v53, %v3600_v26  ;;  %4264 = vmatpush1.bf16.msra.mxu0 %v10861_v49 }
 0xd51   :  { %4265 = vmatprep.subr.bf16.mxu0 %v10866_v23 }
 0xd52   :  { %4250 = vmatprep.mubr.bf16.mxu0 %v3618_v12 }
 0xd53   :  { %4251 = vmatmul.mubr.bf16.gmra.mrb[76].mxu0 %v3617_v11 }
 0xd54   :  { %4266 = vmatpush1.bf16.msra.mxu0 %v10864_v19  ;;  %9103 = vmatprep.mubr.msk.bf16.mxu0 %vm759_vm0, %v3614_v54  ;;  %v10878_v54 = vld [vmem:[%s15192_s10 + $0x264] ss:$8 sps:$4 sm:$0xff]  }
 0xd55   :  { %4267 = vmatprep.subr.bf16.mxu0 %v10869_v63 }
 0xd58   :  { %4268 = vmatpush1.bf16.msra.mxu0 %v10867_v13 }
 0xd59   :  { %4269 = vmatprep.subr.bf16.mxu0 %v10872_v17 }
 0xd5c   :  { %4270 = vmatpush1.bf16.msra.mxu0 %v10870_v43 }
 0xd5d   :  { %4271 = vmatprep.subr.bf16.mxu0 %v10875_v60 }
 0xd60   :  { %4272 = vmatpush1.bf16.msra.mxu0 %v10873_v56 }
 0xd61   :  { %4273 = vmatprep.subr.bf16.mxu0 %v10878_v54 }
 0xd64   :  { %4274 = vmatpush1.bf16.msra.mxu0 %v10876_v52 }
 0xd65   :  { %4275 = vmatprep.subr.bf16.mxu0 %v10881_v58  ;;  %v10929_v58 = vld [vmem:[%s15185_s3 + $0x1b4] ss:$8 sps:$4 sm:$0xff]  }
 0xd68   :  { %4276 = vmatpush1.bf16.msra.mxu0 %v10879_v62  ;;  %v10932_v62 = vld [vmem:[%s15185_s3 + $0x1c4] ss:$8 sps:$4 sm:$0xff]  }
 0xd69   :  { %4277 = vmatprep.subr.bf16.mxu0 %v10884_v39  ;;  %v10930_v39 = vld [vmem:[%s15185_s3 + $0x1c0] ss:$8 sps:$4 sm:$0xff]  }
 0xd6c   :  { %4278 = vmatpush1.bf16.msra.mxu0 %v10882_v48  ;;  %v10935_v48 = vld [vmem:[%s15185_s3 + $0x1d4] ss:$8 sps:$4 sm:$0xff]  }
 0xd6d   :  { %4279 = vmatprep.subr.bf16.mxu0 %v10887_v35  ;;  %v10933_v35 = vld [vmem:[%s15185_s3 + $0x1d0] ss:$8 sps:$4 sm:$0xff]  }
 0xd70   :  { %4280 = vmatpush1.bf16.msra.mxu0 %v10885_v46  ;;  %v10938_v46 = vld [vmem:[%s15185_s3 + $0x1e4] ss:$8 sps:$4 sm:$0xff]  }
 0xd71   :  { %4281 = vmatprep.subr.bf16.mxu0 %v10890_v18  ;;  %v10936_v18 = vld [vmem:[%s15185_s3 + $0x1e0] ss:$8 sps:$4 sm:$0xff]  }
 0xd74   :  { %4282 = vmatpush1.bf16.msra.mxu0 %v10888_v0  ;;  %v10939_v0 = vld [vmem:[%s15185_s3 + $0x1f0] ss:$8 sps:$4 sm:$0xff]  }
 0xd75   :  { %4283 = vmatprep.subr.bf16.mxu0 %v10893_v2  ;;  %v10941_v2 = vld [vmem:[%s15185_s3 + $0x1f4] ss:$8 sps:$4 sm:$0xff]  }
 0xd78   :  { %4284 = vmatpush1.bf16.msra.mxu0 %v10891_v5  ;;  %v10942_v5 = vld [vmem:[%s15186_s4 + $0xc0] sm:$0xff]  }
 0xd7b   :  { %4294 = vmatmul.mubr.bf16.vlgmr.msra.gmra.mrb[72].mxu0 %v3613_v15  ;;  %v10897_v15 = vld [vmem:[%s15185_s3 + $0x110] ss:$8 sps:$4 sm:$0xff]  }
 0xd7c   :  { %9104 = vmatprep.mubr.msk.bf16.mxu0 %vm759_vm0, %v3620_v29  ;;  %4583 = vmatpush1.bf16.msra.mxu1 %v10897_v15  ;;  %v10906_v29 = vld [vmem:[%s15185_s3 + $0x140] ss:$8 sps:$4 sm:$0xff]  }
 0xd7d   :  { %4584 = vmatprep.subr.bf16.mxu1 %v10902_v42 }
 0xd80   :  { %4585 = vmatpush1.bf16.msra.mxu1 %v10900_v40 }
 0xd81   :  { %4586 = vmatprep.subr.bf16.mxu1 %v10905_v4 }
 0xd83   :  { %4304 = vmatmul.mubr.bf16.gmra.mrb[76].mxu0 %v3619_v51  ;;  %v10908_v51 = vld [vmem:[%s15185_s3 + $0x144] ss:$8 sps:$4 sm:$0xff]  }
 0xd84   :  { %5452 = vmatprep.mubr.bf16.mxu0 %v11847_v45  ;;  %4587 = vmatpush1.bf16.msra.mxu1 %v10903_v44 }
 0xd85   :  { %4588 = vmatprep.subr.bf16.mxu1 %v10908_v51 }
 0xd88   :  { %4589 = vmatpush1.bf16.msra.mxu1 %v10906_v29 }
 0xd89   :  { %4590 = vmatprep.subr.bf16.mxu1 %v10911_v50 }
 0xd8c   :  { %4591 = vmatpush1.bf16.msra.mxu1 %v10909_v1 }
 0xd8d   :  { %4592 = vmatprep.subr.bf16.mxu1 %v10914_v33  ;;  %v9105_v33 = vld [vmem:[%s15184_s2 + $0x2] sm:$0x3] }
 0xd90   :  { %4593 = vmatpush1.bf16.msra.mxu1 %v10912_v41 }
 0xd91   :  { %4594 = vmatprep.subr.bf16.mxu1 %v10917_v59 }
 0xd94   :  { %4595 = vmatpush1.bf16.msra.mxu1 %v10915_v30 }
 0xd95   :  { %4596 = vmatprep.subr.bf16.mxu1 %v10920_v61  ;;  %v4368_v61 = vrot.slane %v9105_v33, %v12092_v21 }
 0xd98   :  { %4597 = vmatpush1.bf16.msra.mxu1 %v10918_v16  ;;  %v4372_v16 = vrot.slane %v9105_v33, %v12090_v20  ;;  %v10969_v33 = vld [vmem:[%s15187_s5 + $0xa8] sm:$0xff]  }
 0xd99   :  { %4598 = vmatprep.subr.bf16.mxu1 %v10923_v31 }
 0xd9c   :  { %4599 = vmatpush1.bf16.msra.mxu1 %v10921_v6 }
 0xd9d   :  { %4600 = vmatprep.subr.bf16.mxu1 %v10926_v24 }
 0xda0   :  { %4601 = vmatpush1.bf16.msra.mxu1 %v10924_v47 }
 0xda1   :  { %4602 = vmatprep.subr.bf16.mxu1 %v10929_v58 }
 0xe4e   :  { %v4295_v25 = vpop.f32.mrb[72].mxu0 }
 0xe4f   :  { %v13632_v32 = vadd.f32 %v4295_v25, %v12602_v3  ;;  %v4297_v9 = vpop.f32.mrb[73].mxu0 }
 0xe50   :  { %v13635_v26 = vadd.f32 %v4297_v9, %v12608_v7  ;;  %v4299_v22 = vpop.f32.mrb[74].mxu0 }
 0xe51   :  { %v13638_v49 = vadd.f32 %v4299_v22, %v12614_v8  ;;  %v4301_v55 = vpop.f32.mrb[75].mxu0  ;;  %v4324_v27 = vmul.f32 %v13632_v32, %v13632_v32 }
 0xe52   :  { %v13643_v23 = vadd.f32 %v4301_v55, %v12621_v10  ;;  %v4325_v53 = vmul.f32 %v13635_v26, %v13635_v26 }
 0xe53   :  { %v4326_v3 = vmul.f32 %v13638_v49, %v13638_v49 }
 0xe54   :  { %v4332_v11 = vadd.f32 %v4325_v53, %v4324_v27  ;;  %v4327_v7 = vmul.f32 %v13643_v23, %v13643_v23  ;;  %v10943_v53 = vld [vmem:[%s15186_s4 + $0x80] sm:$0xff]  }
 0xe56   :  { %4333 = vadd.xlane.f32.xlu0 %v4332_v11  ;;  %v4305_v8 = vpop.f32.mrb[76].mxu0  ;;  %v4335_v12 = vadd.f32 %v4327_v7, %v4326_v3  ;;  %v10944_v11 = vld [vmem:[%s15186_s4 + $0xc8] sm:$0xff]  }
 0xe57   :  { %v13652_v19 = vadd.f32 %v4305_v8, %v12634_v14  ;;  %v4307_v63 = vpop.f32.mrb[77].mxu0 }
 0xe58   :  { %v13655_v10 = vadd.f32 %v4307_v63, %v12640_v28  ;;  %4336 = vadd.xlane.f32.xlu1 %v4335_v12  ;;  %v4309_v13 = vpop.f32.mrb[78].mxu0  ;;  %v10945_v63 = vld [vmem:[%s15186_s4 + $0x88] sm:$0xff]  }
 0xe59   :  { %v13658_v17 = vadd.f32 %v4309_v13, %v12646_v34  ;;  %v4311_v43 = vpop.f32.mrb[79].mxu0  ;;  %v4328_v60 = vmul.f32 %v13652_v19, %v13652_v19 }
 0xe5a   :  { %v13663_v56 = vadd.f32 %v4311_v43, %v12653_v36  ;;  %v4329_v14 = vmul.f32 %v13655_v10, %v13655_v10  ;;  %v10927_v36 = vld [vmem:[%s15185_s3 + $0x1b0] ss:$8 sps:$4 sm:$0xff]  }
 0xe5b   :  { %v4330_v54 = vmul.f32 %v13658_v17, %v13658_v17  ;;  %4603 = vmatpush1.bf16.msra.mxu1 %v10927_v36  ;;  %v10947_v36 = vld [vmem:[%s15186_s4 + $0x90] sm:$0xff]  }
 0xe5c   :  { %v4338_v28 = vadd.f32 %v4329_v14, %v4328_v60  ;;  %v4331_v52 = vmul.f32 %v13663_v56, %v13663_v56  ;;  %4604 = vmatprep.subr.bf16.mxu1 %v10932_v62  ;;  %v10946_v60 = vld [vmem:[%s15186_s4 + $0xd0] sm:$0xff]   ;;  %v10948_v62 = vld [vmem:[%s15186_s4 + $0xd8] sm:$0xff]  }
 0xe5e   :  { %4339 = vadd.xlane.f32.xlu0 %v4338_v28  ;;  %v4341_v34 = vadd.f32 %v4331_v52, %v4330_v54 }
 0xe5f   :  { %4605 = vmatpush1.bf16.msra.mxu1 %v10930_v39  ;;  %v10949_v39 = vld [vmem:[%s15186_s4 + $0x98] sm:$0xff]  }
 0xe60   :  { %4342 = vadd.xlane.f32.xlu1 %v4341_v34  ;;  %4606 = vmatprep.subr.bf16.mxu1 %v10935_v48  ;;  %v10950_v48 = vld [vmem:[%s15186_s4 + $0xe0] sm:$0xff]  }
 0xe63   :  { %4607 = vmatpush1.bf16.msra.mxu1 %v10933_v35  ;;  %v10951_v35 = vld [vmem:[%s15186_s4 + $0xa0] sm:$0xff]  }
 0xe64   :  { %4608 = vmatprep.subr.bf16.mxu1 %v10938_v46  ;;  %v10952_v46 = vld [vmem:[%s15186_s4 + $0xe8] sm:$0xff]  }
 0xe67   :  { %4609 = vmatpush1.bf16.msra.mxu1 %v10936_v18  ;;  %v10953_v18 = vld [vmem:[%s15186_s4 + $0xa8] sm:$0xff]  }
 0xe68   :  { %4610 = vmatprep.subr.bf16.mxu1 %v10941_v2  ;;  %v10955_v2 = vld [vmem:[%s15186_s4 + $0xb0] sm:$0xff]  }
 0xe6b   :  { %4611 = vmatpush1.bf16.msra.mxu1 %v10939_v0  ;;  %v10954_v0 = vld [vmem:[%s15186_s4 + $0xf0] sm:$0xff]  }
 0xe6c   :  { %10029 = vmatprep.subr.bf16.mxu1 %v10942_v5  ;;  %v10956_v5 = vld [vmem:[%s15186_s4 + $0xf8] sm:$0xff]  }
 0xee3   :  { %v4334_v38 = vpop.xlane.xlu0 %4333 }
 0xee4   :  { %v4344_v57 = vmul.f32 0.00390625, %v4334_v38  ;;  %v10957_v38 = vld [vmem:[%s15186_s4 + $0xb8] sm:$0xff]  }
 0xee5   :  { %v4337_v37 = vpop.xlane.xlu1 %4336 }
 0xee6   :  { %v4348_v15 = vadd.f32 1e-05, %v4344_v57  ;;  %v4345_v42 = vmul.f32 0.00390625, %v4337_v37  ;;  %v10958_v57 = vld [vmem:[%s15187_s5 + $0xc0] sm:$0xff]  }
 0xee7   :  { %v10959_v37 = vld [vmem:[%s15187_s5 + $0x80] sm:$0xff]  }
 0xee8   :  { %11618 = vrsqrt.f32 %v4348_v15  ;;  %v4349_v40 = vadd.f32 1e-05, %v4345_v42  ;;  %v10960_v15 = vld [vmem:[%s15187_s5 + $0xc8] sm:$0xff]  }
 0xee9   :  { %v10961_v42 = vld [vmem:[%s15187_s5 + $0x88] sm:$0xff]  }
 0xeea   :  { %11620 = vrsqrt.f32 %v4349_v40  ;;  %v10962_v40 = vld [vmem:[%s15187_s5 + $0xd0] sm:$0xff]  }
 0xeeb   :  { %v4340_v4 = vpop.xlane.xlu0 %4339 }
 0xeec   :  { %v4346_v44 = vmul.f32 0.00390625, %v4340_v4  ;;  %v10963_v4 = vld [vmem:[%s15187_s5 + $0x90] sm:$0xff]  }
 0xeed   :  { %v4343_v51 = vpop.xlane.xlu1 %4342 }
 0xeee   :  { %v4350_v29 = vadd.f32 1e-05, %v4346_v44  ;;  %v4347_v50 = vmul.f32 0.00390625, %v4343_v51  ;;  %v10964_v44 = vld [vmem:[%s15187_s5 + $0xd8] sm:$0xff]  }
 0xeef   :  { %v10965_v51 = vld [vmem:[%s15187_s5 + $0x98] sm:$0xff]  }
 0xef0   :  { %11622 = vrsqrt.f32 %v4350_v29  ;;  %v4351_v1 = vadd.f32 1e-05, %v4347_v50  ;;  %v10966_v29 = vld [vmem:[%s15187_s5 + $0xe0] sm:$0xff]  }
 0xef1   :  { %v10967_v50 = vld [vmem:[%s15187_s5 + $0xa0] sm:$0xff]  }
 0xef2   :  { %v11619_v41 = vpop.eup %11618  ;;  %11624 = vrsqrt.f32 %v4351_v1  ;;  %v10968_v1 = vld [vmem:[%s15187_s5 + $0xe8] sm:$0xff]  }
 0xef3   :  { %v4356_v59 = vmul.f32 %v11619_v41, %v13632_v32  ;;  %v4357_v30 = vmul.f32 %v11619_v41, %v13635_v26  ;;  %v10970_v41 = vld [vmem:[%s15187_s5 + $0xf0] sm:$0xff]  }
 0xef4   :  { %v11621_v31 = vpop.eup %11620 }
 0xef5   :  { %v4358_v6 = vmul.f32 %v11621_v31, %v13638_v49  ;;  %v4359_v24 = vmul.f32 %v11621_v31, %v13643_v23  ;;  %v4376_v47 = vmul.f32 %v4372_v16, %v4357_v30  ;;  %v4375_v9 = vmul.f32 %v4368_v61, %v4356_v59  ;;  %v10971_v59 = vld [vmem:[%s15187_s5 + $0xb0] sm:$0xff]   ;;  %v10972_v30 = vld [vmem:[%s15187_s5 + $0xf8] sm:$0xff]  }
 0xef7   :  { %v4378_v25 = vmul.f32 %v4372_v16, %v4359_v24  ;;  %v4377_v22 = vmul.f32 %v4368_v61, %v4358_v6 }
 0xef9   :  { %v13713_v55 = vpack.c.bf16 %v4378_v25, %v4376_v47  ;;  %v13715_v27 = vpack.c.bf16 %v4377_v22, %v4375_v9 }
 0xefa   :  { %v11623_v3 = vpop.eup %11622 }
 0xefb   :  { %4612 = vmatprep.mubr.bf16.mxu1 %v13713_v55  ;;  %v4361_v7 = vmul.f32 %v11623_v3, %v13655_v10  ;;  %v4360_v8 = vmul.f32 %v11623_v3, %v13652_v19 }
 0xefc   :  { %v11625_v12 = vpop.eup %11624  ;;  %4613 = vmatmul.mubr.bf16.vlgmr.msra.gmra.mrb[48].mxu1 %v13715_v27 }
 0xefd   :  { %10030 = vmatpush3.bf16.msra.mxu1 %v10943_v53  ;;  %v4363_v13 = vmul.f32 %v11625_v12, %v13663_v56  ;;  %v4362_v43 = vmul.f32 %v11625_v12, %v13658_v17  ;;  %v4380_v14 = vmul.f32 %v4372_v16, %v4361_v7  ;;  %v4379_v28 = vmul.f32 %v4368_v61, %v4360_v8 }
 0xefe   :  { %10031 = vmatprep.subr.bf16.mxu1 %v10944_v11 }
 0xeff   :  { %v4382_v54 = vmul.f32 %v4372_v16, %v4363_v13  ;;  %v4381_v52 = vmul.f32 %v4368_v61, %v4362_v43  ;;  %v10973_v61 = vld [vmem:[%s15187_s5 + $0xb8] sm:$0xff]  }
 0xf01   :  { %10032 = vmatpush3.bf16.msra.mxu1 %v10945_v63  ;;  %v13735_v34 = vpack.c.bf16 %v4382_v54, %v4380_v14  ;;  %v13737_v58 = vpack.c.bf16 %v4381_v52, %v4379_v28 }
 0xf02   :  { %10033 = vmatprep.subr.bf16.mxu1 %v10946_v60 }
 0xf03   :  { %4622 = vmatprep.mubr.bf16.mxu1 %v13735_v34 }
 0xf04   :  { %4623 = vmatmul.mubr.bf16.gmra.mrb[52].mxu1 %v13737_v58 }
 0xf05   :  { %10034 = vmatpush3.bf16.msra.mxu1 %v10947_v36  ;;  %4798 = vmatprep.mubr.bf16.mxu1 %v13713_v55 }
 0xf06   :  { %10035 = vmatprep.subr.bf16.mxu1 %v10948_v62 }
 0xf09   :  { %10036 = vmatpush3.bf16.msra.mxu1 %v10949_v39 }
 0xf0a   :  { %10037 = vmatprep.subr.bf16.mxu1 %v10950_v48 }
 0xf0d   :  { %10038 = vmatpush3.bf16.msra.mxu1 %v10951_v35 }
 0xf0e   :  { %10039 = vmatprep.subr.bf16.mxu1 %v10952_v46 }
 0xf11   :  { %10040 = vmatpush3.bf16.msra.mxu1 %v10953_v18 }
 0xf12   :  { %10041 = vmatprep.subr.bf16.mxu1 %v10954_v0 }
 0xf15   :  { %10042 = vmatpush3.bf16.msra.mxu1 %v10955_v2 }
 0xf16   :  { %10043 = vmatprep.subr.bf16.mxu1 %v10956_v5 }
 0xf19   :  { %10044 = vmatpush3.bf16.msra.mxu1 %v10957_v38 }
 0xf1a   :  { %10057 = vmatprep.subr.bf16.mxu1 %v10958_v57 }
 0xf1c   :  { %4799 = vmatmul.mubr.bf16.vlgmr.msra.gmra.mrb[56].mxu1 %v13715_v27 }
 0xf1d   :  { %4806 = vmatprep.mubr.bf16.mxu1 %v13735_v34  ;;  %10058 = vmatpush3.bf16.msra.mxu1 %v10959_v37 }
 0xf1e   :  { %10059 = vmatprep.subr.bf16.mxu1 %v10960_v15 }
 0xf21   :  { %10060 = vmatpush3.bf16.msra.mxu1 %v10961_v42 }
 0xf22   :  { %10061 = vmatprep.subr.bf16.mxu1 %v10962_v40 }
 0xf24   :  { %4807 = vmatmul.mubr.bf16.gmra.mrb[60].mxu1 %v13737_v58 }
 0xf25   :  { %10062 = vmatpush3.bf16.msra.mxu1 %v10963_v4  ;;  %4978 = vmatprep.mubr.bf16.mxu1 %v13713_v55 }
 0xf26   :  { %10063 = vmatprep.subr.bf16.mxu1 %v10964_v44 }
 0xf29   :  { %10064 = vmatpush3.bf16.msra.mxu1 %v10965_v51 }
 0xf2a   :  { %10065 = vmatprep.subr.bf16.mxu1 %v10966_v29 }
 0xf2d   :  { %10066 = vmatpush3.bf16.msra.mxu1 %v10967_v50 }
 0xf2e   :  { %10067 = vmatprep.subr.bf16.mxu1 %v10968_v1 }
 0xf31   :  { %10068 = vmatpush3.bf16.msra.mxu1 %v10969_v33 }
 0xf32   :  { %10069 = vmatprep.subr.bf16.mxu1 %v10970_v41 }
 0xf35   :  { %10070 = vmatpush3.bf16.msra.mxu1 %v10971_v59  ;;  %v13873_v59 = vld [vmem:[%s15182_s0] sm:$0xff] }
 0xf36   :  { %10071 = vmatprep.subr.bf16.mxu1 %v10972_v30 }
 0xf39   :  { %10072 = vmatpush3.bf16.msra.mxu1 %v10973_v61 }
 0xf3c   :  { %4979 = vmatmul.mubr.bf16.vlgmr.msra.gmra.mrb[64].mxu1 %v13715_v27 }
 0xf3d   :  { %4986 = vmatprep.mubr.bf16.mxu1 %v13735_v34 }
 0xf44   :  { %4987 = vmatmul.mubr.bf16.gmra.mrb[68].mxu1 %v13737_v58 }
 0xfcf   :  { %v4614_v16 = vpop.f32.mrb[48].mxu1 }
 0xfd0   :  { %v4616_v31 = vpop.f32.mrb[49].mxu1 }
 0xfd1   :  { %v4618_v6 = vpop.f32.mrb[50].mxu1 }
 0xfd2   :  { %v13830_v24 = vpack.c.bf16 %v4618_v6, %v4614_v16  ;;  %v4620_v47 = vpop.f32.mrb[51].mxu1  ;;  %v13880_v16 = vld [vmem:[%s15182_s0 + $0x8] sm:$0xff]  ;;  %v13886_v6 = vld [vmem:[%s15182_s0 + $0x10] sm:$0xff] }
 0xfd3   :  { %v13832_v25 = vpack.c.bf16 %v4620_v47, %v4616_v31 }
 0xfd4   :  { %10185 = vmatprep.mubr.msk.bf16.mxu1 %vm759_vm0, %v13830_v24 }
 0xfd7   :  { %v4624_v9 = vpop.f32.mrb[52].mxu1 }
 0xfd8   :  { %v4626_v22 = vpop.f32.mrb[53].mxu1 }
 0xfd9   :  { %v4628_v55 = vpop.f32.mrb[54].mxu1 }
 0xfda   :  { %v13836_v53 = vpack.c.bf16 %v4628_v55, %v4624_v9  ;;  %v4630_v27 = vpop.f32.mrb[55].mxu1 }
 0xfdb   :  { %v13838_v3 = vpack.c.bf16 %v4630_v27, %v4626_v22  ;;  %v13893_v22 = vld [vmem:[%s15182_s0 + $0x18] sm:$0xff] }
 0xfef   :  { %v10045_v11 = vpop.f32.mrb[56].mxu1 }
 0xff0   :  { %v10046_v7 = vpop.f32.mrb[57].mxu1 }
 0xff1   :  { %v10047_v8 = vadd.f32 %v10046_v7, %v10045_v11  ;;  %v10048_v12 = vpop.f32.mrb[58].mxu1 }
 0xff2   :  { %v10049_v63 = vpop.f32.mrb[59].mxu1 }
 0xff3   :  { %v10050_v13 = vadd.f32 %v10049_v63, %v10048_v12 }
 0xff5   :  { %v13840_v43 = vpack.c.bf16 %v10050_v13, %v10047_v8 }
 0xff7   :  { %v10051_v60 = vpop.f32.mrb[60].mxu1  ;;  %10333 = vmatprep.subr.msk.bf16.mxu1 %vm759_vm0, %v13840_v43  ;;  %v13846_v14 = vsel %vm759_vm0, %v13840_v43, 0 }
 0xff8   :  { %v10052_v54 = vpop.f32.mrb[61].mxu1  ;;  %10182 = vmatpush3.bf16.xpose.msra.mxu1 %v13846_v14 }
 0xff9   :  { %v10053_v28 = vadd.f32 %v10052_v54, %v10051_v60  ;;  %v10054_v52 = vpop.f32.mrb[62].mxu1 }
 0xffa   :  { %v10055_v34 = vpop.f32.mrb[63].mxu1 }
 0xffb   :  { %v10056_v58 = vadd.f32 %v10055_v34, %v10054_v52 }
 0xffd   :  { %v13849_v36 = vpack.c.bf16 %v10056_v58, %v10053_v28 }
 0xfff   :  { %10334 = vmatprep.subr.msk.bf16.mxu1 %vm759_vm0, %v13849_v36  ;;  %v13855_v62 = vsel %vm759_vm0, %v13849_v36, 0 }
0x1000   :  { %10184 = vmatpush3.bf16.xpose.msra.mxu1 %v13855_v62 }
0x1007   :  { %10186 = vmatmul.mubr.msk.bf16.vlgmr.msra.gmra.mrb[72].mxu1 %vm759_vm0, %v13836_v53 }
0x100f   :  { %v10073_v39 = vpop.f32.mrb[64].mxu1 }
0x1010   :  { %v10074_v48 = vpop.f32.mrb[65].mxu1 }
0x1011   :  { %v10075_v35 = vadd.f32 %v10074_v48, %v10073_v39  ;;  %v10076_v46 = vpop.f32.mrb[66].mxu1 }
0x1012   :  { %v10077_v18 = vpop.f32.mrb[67].mxu1 }
0x1013   :  { %v10078_v0 = vadd.f32 %v10077_v18, %v10076_v46 }
0x1015   :  { %v13860_v2 = vpack.c.bf16 %v10078_v0, %v10075_v35 }
0x1017   :  { %v10079_v5 = vpop.f32.mrb[68].mxu1  ;;  %10189 = vmatprep.subr.bf16.mxu1 %v13860_v2 }
0x1018   :  { %v10080_v38 = vpop.f32.mrb[69].mxu1  ;;  %10190 = vmatpush3.bf16.msra.mxu1 %v13860_v2 }
0x1019   :  { %v10081_v57 = vadd.f32 %v10080_v38, %v10079_v5  ;;  %v10082_v37 = vpop.f32.mrb[70].mxu1 }
0x101a   :  { %v10083_v15 = vpop.f32.mrb[71].mxu1 }
0x101b   :  { %v10084_v42 = vadd.f32 %v10083_v15, %v10082_v37 }
0x101d   :  { %v13864_v40 = vpack.c.bf16 %v10084_v42, %v10081_v57 }
0x101f   :  { %10191 = vmatprep.subr.bf16.mxu1 %v13864_v40 }
0x1020   :  { %10192 = vmatpush3.bf16.msra.mxu1 %v13864_v40 }
0x1021   :  { %10335 = vmatprep.subr.msk.bf16.mxu1 %vm759_vm0, %v13840_v43 }
0x10da   :  { %v10187_v4 = vpop.f32.mrb[72].mxu1 }
0x10db   :  { %v5076_v44 = vpop.f32.mrb[73].mxu1  ;;  %v5093_v51 = vmul.f32 0.125, %v10187_v4 }
0x10dc   :  { %v5091_v29 = vmul.f32 0.125, %v5076_v44  ;;  %v10188_v50 = vpop.f32.mrb[74].mxu1 }
0x10dd   :  { %v5079_v1 = vpop.f32.mrb[75].mxu1  ;;  %v5094_v33 = vmul.f32 0.125, %v10188_v50  ;;  %v5097_v47 = vadd.f32 %v13886_v6, %v5093_v51 }
0x10de   :  { %v5092_v41 = vmul.f32 0.125, %v5079_v1  ;;  %v5095_v30 = vadd.f32 %v13873_v59, %v5091_v29 }
0x10df   :  { %v5098_v55 = vadd.f32 %v13893_v22, %v5094_v33  ;;  %v5105_v27 = vsel %vm829_vm1, %v5097_v47, -inf }
0x10e0   :  { %v5099_v61 = vsel %vm829_vm1, %v5095_v30, -inf  ;;  %v5096_v31 = vadd.f32 %v13880_v16, %v5092_v41 }
0x10e1   :  { %5100 = vmax.xlane.f32.xlu0 %v5099_v61  ;;  %v5108_v11 = vsel %vm829_vm1, %v5098_v55, -inf }
0x10e2   :  { %v5102_v9 = vsel %vm829_vm1, %v5096_v31, -inf }
0x10e3   :  { %5103 = vmax.xlane.f32.xlu1 %v5102_v9 }
0x10e5   :  { %5106 = vmax.xlane.f32.xlu0 %v5105_v27 }
0x10e7   :  { %5109 = vmax.xlane.f32.xlu1 %v5108_v11 }
0x116e   :  { %v5101_v7 = vpop.xlane.xlu0 %5100 }
0x116f   :  { %v5111_v8 = vsub.f32 %v5095_v30, %v5101_v7 }
0x1170   :  { %v5104_v12 = vpop.xlane.xlu1 %5103 }
0x1171   :  { %v5115_v63 = vmul.f32 1.442695, %v5111_v8  ;;  %v5112_v13 = vsub.f32 %v5096_v31, %v5104_v12 }
0x1172   :  { %v5107_v60 = vpop.xlane.xlu0 %5106 }
0x1173   :  { %11626 = vpow2.f32 %v5115_v63  ;;  %v5117_v54 = vmul.f32 1.442695, %v5112_v13  ;;  %v5113_v28 = vsub.f32 %v5097_v47, %v5107_v60 }
0x1174   :  { %v5110_v52 = vpop.xlane.xlu1 %5109 }
0x1175   :  { %11628 = vpow2.f32 %v5117_v54  ;;  %v5119_v34 = vmul.f32 1.442695, %v5113_v28  ;;  %v5114_v58 = vsub.f32 %v5098_v55, %v5110_v52 }
0x1177   :  { %11630 = vpow2.f32 %v5119_v34  ;;  %v5121_v39 = vmul.f32 1.442695, %v5114_v58 }
0x1179   :  { %11632 = vpow2.f32 %v5121_v39 }
0x117d   :  { %v11627_v48 = vpop.eup %11626 }
0x117e   :  { %v5123_v35 = vsel %vm829_vm1, %v11627_v48, 0.0 }
0x117f   :  { %v11629_v46 = vpop.eup %11628  ;;  %5124 = vadd.xlane.f32.xlu0 %v5123_v35 }
0x1180   :  { %v5126_v18 = vsel %vm829_vm1, %v11629_v46, 0.0 }
0x1181   :  { %v11631_v0 = vpop.eup %11630  ;;  %5127 = vadd.xlane.f32.xlu1 %v5126_v18 }
0x1182   :  { %v5129_v5 = vsel %vm829_vm1, %v11631_v0, 0.0 }
0x1183   :  { %v11633_v38 = vpop.eup %11632  ;;  %5130 = vadd.xlane.f32.xlu0 %v5129_v5 }
0x1184   :  { %v5132_v57 = vsel %vm829_vm1, %v11633_v38, 0.0 }
0x1185   :  { %5133 = vadd.xlane.f32.xlu1 %v5132_v57 }
0x1196   :  { %5206 = vrot.lane.b32.xlu1 %v13836_v53, %s11846_s21 }
0x1199   :  { %5204 = vrot.lane.b32.xlu0 %v13830_v24, %s11846_s21 }
0x120c   :  { %v5125_v37 = vpop.xlane.xlu0 %5124 }
0x120d   :  { %11634 = vrcp.f32 %v5125_v37 }
0x120e   :  { %v5128_v15 = vpop.xlane.xlu1 %5127 }
0x120f   :  { %11636 = vrcp.f32 %v5128_v15 }
0x1210   :  { %v5131_v42 = vpop.xlane.xlu0 %5130 }
0x1211   :  { %11638 = vrcp.f32 %v5131_v42 }
0x1212   :  { %v5134_v4 = vpop.xlane.xlu1 %5133 }
0x1213   :  { %11640 = vrcp.f32 %v5134_v4 }
0x1214   :  { %v5205_v61 = vpop.permute.xlu0 %5204 }
0x1216   :  { %v5207_v31 = vpop.permute.xlu1 %5206 }
0x1217   :  { %v11635_v44 = vpop.eup %11634 }
0x1218   :  { %v5139_v29 = vmul.f32 %v11635_v44, %v11627_v48 }
0x1219   :  { %v11637_v51 = vpop.eup %11636 }
0x121a   :  { %v5140_v50 = vmul.f32 %v11637_v51, %v11629_v46 }
0x121b   :  { %v11639_v1 = vpop.eup %11638 }
0x121c   :  { %v5143_v33 = vpack.c.bf16 %v5140_v50, %v5139_v29  ;;  %v5141_v30 = vmul.f32 %v11639_v1, %v11631_v0 }
0x121d   :  { %v11641_v41 = vpop.eup %11640 }
0x121e   :  { %v5142_v53 = vmul.f32 %v11641_v41, %v11633_v38  ;;  %10193 = vmatprep.mubr.msk.bf16.mxu1 %vm829_vm1, %v5143_v33 }
0x1220   :  { %v5144_v24 = vpack.c.bf16 %v5142_v53, %v5141_v30 }
0x1222   :  { %10194 = vmatmul.mubr.msk.bf16.vlgmr.msra.gmra.mrb[76].mxu1 %vm829_vm1, %v5144_v24 }
0x1223   :  { %10198 = vmatpush3.bf16.xpose.msra.mxu1 %v13846_v14  ;;  %10201 = vmatprep.mubr.msk.bf16.mxu1 %vm759_vm0, %v5205_v61 }
0x1224   :  { %10336 = vmatprep.subr.msk.bf16.mxu1 %vm759_vm0, %v13849_v36 }
0x122b   :  { %10200 = vmatpush3.bf16.xpose.msra.mxu1 %v13855_v62 }
0x122c   :  { %10205 = vmatprep.subr.bf16.mxu1 %v13860_v2 }
0x1232   :  { %10202 = vmatmul.mubr.msk.bf16.vlgmr.msra.gmra.mrb[80].mxu1 %vm759_vm0, %v5207_v31  ;;  %v10974_v31 = vld [vmem:[%s15188_s6 + $0x140] ss:$8 sps:$4 sm:$0xff]  }
0x1233   :  { %10206 = vmatpush3.bf16.msra.mxu1 %v13860_v2 }
0x1234   :  { %10207 = vmatprep.subr.bf16.mxu1 %v13864_v40 }
0x1237   :  { %10208 = vmatpush3.bf16.msra.mxu1 %v13864_v40 }
0x12f5   :  { %v13918_v47 = vpop.f32.mrb[76].mxu1 }
0x12f6   :  { %v13920_v14 = vpop.f32.mrb[77].mxu1 }
0x12f7   :  { %v13922_v9 = vpop.f32.mrb[78].mxu1 }
0x12f8   :  { %v5201_v62 = vpack.c.bf16 %v13922_v9, %v13918_v47  ;;  %v13926_v55 = vpop.f32.mrb[79].mxu1 }
0x12f9   :  { %v5200_v27 = vpack.c.bf16 %v13926_v55, %v13920_v14 }
0x1305   :  { %v10203_v11 = vpop.f32.mrb[80].mxu1 }
0x1306   :  { %v5248_v7 = vpop.f32.mrb[81].mxu1  ;;  %v5265_v60 = vmul.f32 0.125, %v10203_v11  ;;  %v10976_v11 = vld [vmem:[%s15188_s6 + $0x144] ss:$8 sps:$4 sm:$0xff]  }
0x1307   :  { %v5263_v8 = vmul.f32 0.125, %v5248_v7  ;;  %v10204_v12 = vpop.f32.mrb[82].mxu1  ;;  %v10979_v7 = vld [vmem:[%s15188_s6 + $0x154] ss:$8 sps:$4 sm:$0xff]   ;;  %5420 = vmatprep.subr.bf16.mxu0 %v10976_v11 }
0x1308   :  { %v5266_v63 = vmul.f32 0.125, %v10204_v12  ;;  %v5251_v13 = vpop.f32.mrb[83].mxu1  ;;  %v5269_v48 = vadd.f32 %v13886_v6, %v5265_v60  ;;  %5421 = vmatpush1.bf16.msra.mxu0 %v10974_v31  ;;  %v10995_v31 = vld [vmem:[%s15188_s6 + $0x130] ss:$8 sps:$4 sm:$0xff]  }
0x1309   :  { %v5264_v54 = vmul.f32 0.125, %v5251_v13  ;;  %v5267_v28 = vadd.f32 %v13873_v59, %v5263_v8  ;;  %5422 = vmatprep.subr.bf16.mxu0 %v10979_v7  ;;  %v10980_v8 = vld [vmem:[%s15188_s6 + $0x160] ss:$8 sps:$4 sm:$0xff]  }
0x130a   :  { %v5270_v58 = vadd.f32 %v13893_v22, %v5266_v63  ;;  %v5277_v46 = vsel %vm829_vm1, %v5269_v48, -inf }
0x130b   :  { %v5271_v52 = vsel %vm829_vm1, %v5267_v28, -inf  ;;  %v5268_v34 = vadd.f32 %v13880_v16, %v5264_v54 }
0x130c   :  { %5272 = vmax.xlane.f32.xlu1 %v5271_v52  ;;  %v5280_v35 = vsel %vm829_vm1, %v5270_v58, -inf }
0x130d   :  { %v5274_v39 = vsel %vm829_vm1, %v5268_v34, -inf }
0x130e   :  { %5275 = vmax.xlane.f32.xlu0 %v5274_v39 }
0x1310   :  { %5281 = vmax.xlane.f32.xlu1 %v5280_v35 }
0x1312   :  { %5278 = vmax.xlane.f32.xlu0 %v5277_v46 }
0x1399   :  { %v5273_v18 = vpop.xlane.xlu1 %5272 }
0x139a   :  { %v5283_v57 = vsub.f32 %v5267_v28, %v5273_v18 }
0x139b   :  { %v5276_v0 = vpop.xlane.xlu0 %5275 }
0x139c   :  { %v5284_v5 = vsub.f32 %v5268_v34, %v5276_v0  ;;  %v5287_v51 = vmul.f32 1.442695, %v5283_v57 }
0x139d   :  { %v5282_v38 = vpop.xlane.xlu1 %5281 }
0x139e   :  { %v5289_v37 = vmul.f32 1.442695, %v5284_v5  ;;  %v5286_v15 = vsub.f32 %v5270_v58, %v5282_v38 }
0x139f   :  { %v5279_v42 = vpop.xlane.xlu0 %5278 }
0x13a0   :  { %11642 = vpow2.f32 %v5289_v37  ;;  %v5293_v4 = vmul.f32 1.442695, %v5286_v15  ;;  %v5285_v44 = vsub.f32 %v5269_v48, %v5279_v42  ;;  %v10985_v37 = vld [vmem:[%s15188_s6 + $0x174] ss:$8 sps:$4 sm:$0xff]   ;;  %v10983_v15 = vld [vmem:[%s15188_s6 + $0x170] ss:$8 sps:$4 sm:$0xff]  }
0x13a1   :  { %v10988_v42 = vld [vmem:[%s15188_s6 + $0x104] ss:$8 sps:$4 sm:$0xff]  }
0x13a2   :  { %11644 = vpow2.f32 %v5293_v4  ;;  %v5291_v29 = vmul.f32 1.442695, %v5285_v44 }
0x13a4   :  { %11646 = vpow2.f32 %v5291_v29 }
0x13a5   :  { %11648 = vpow2.f32 %v5287_v51 }
0x13aa   :  { %v11643_v50 = vpop.eup %11642 }
0x13ab   :  { %v5298_v1 = vsel %vm829_vm1, %v11643_v50, 0.0 }
0x13ac   :  { %v11645_v33 = vpop.eup %11644  ;;  %5299 = vadd.xlane.f32.xlu1 %v5298_v1  ;;  %v10986_v1 = vld [vmem:[%s15188_s6 + $0x100] ss:$8 sps:$4 sm:$0xff]  }
0x13ad   :  { %v5304_v30 = vsel %vm829_vm1, %v11645_v33, 0.0 }
0x13ae   :  { %v11647_v41 = vpop.eup %11646 }
0x13af   :  { %v5301_v53 = vsel %vm829_vm1, %v11647_v41, 0.0  ;;  %v11649_v24 = vpop.eup %11648 }
0x13b0   :  { %5305 = vadd.xlane.f32.xlu1 %v5304_v30  ;;  %5302 = vadd.xlane.f32.xlu0 %v5301_v53  ;;  %v5295_v61 = vsel %vm829_vm1, %v11649_v24, 0.0  ;;  %v10989_v30 = vld [vmem:[%s15188_s6 + $0x110] ss:$8 sps:$4 sm:$0xff]   ;;  %v10994_v53 = vld [vmem:[%s15188_s6 + $0x124] ss:$8 sps:$4 sm:$0xff]  }
0x13b4   :  { %5296 = vadd.xlane.f32.xlu0 %v5295_v61  ;;  %v10997_v61 = vld [vmem:[%s15188_s6 + $0x134] ss:$8 sps:$4 sm:$0xff]  }
0x13c1   :  { %5576 = vrot.lane.b32.xlu1 %v13849_v36, %s11846_s21  ;;  %v10977_v36 = vld [vmem:[%s15188_s6 + $0x150] ss:$8 sps:$4 sm:$0xff]  }
0x13c2   :  { %5423 = vmatpush1.bf16.msra.mxu0 %v10977_v36 }
0x13ca   :  { %5574 = vrot.lane.b32.xlu0 %v13840_v43, %s11846_s21  ;;  %v10982_v43 = vld [vmem:[%s15188_s6 + $0x164] ss:$8 sps:$4 sm:$0xff]  }
0x13cb   :  { %5424 = vmatprep.subr.bf16.mxu0 %v10982_v43 }
0x13cc   :  { %5425 = vmatpush1.bf16.msra.mxu0 %v10980_v8 }
0x13cd   :  { %5426 = vmatprep.subr.bf16.mxu0 %v10985_v37 }
0x13d0   :  { %5427 = vmatpush1.bf16.msra.mxu0 %v10983_v15 }
0x13d1   :  { %5519 = vmatprep.subr.bf16.mxu0 %v10988_v42 }
0x1439   :  { %v5300_v12 = vpop.xlane.xlu1 %5299 }
0x143d   :  { %v5306_v63 = vpop.xlane.xlu1 %5305  ;;  %v5303_v13 = vpop.xlane.xlu0 %5302 }
0x143e   :  { %11650 = vrcp.f32 %v5306_v63 }
0x143f   :  { %11652 = vrcp.f32 %v5303_v13 }
0x1440   :  { %11654 = vrcp.f32 %v5300_v12 }
0x1441   :  { %v5297_v60 = vpop.xlane.xlu0 %5296  ;;  %v13974_v38 = vpop.permute.xlu1 %5576 }
0x1442   :  { %11656 = vrcp.f32 %v5297_v60  ;;  %v13983_v57 = vsel %vm759_vm0, %v13974_v38, 0 }
0x1445   :  { %v13964_v54 = vpop.permute.xlu0 %5574 }
0x1446   :  { %10337 = vmatprep.subr.msk.bf16.mxu1 %vm759_vm0, %v13964_v54  ;;  %v13972_v5 = vsel %vm759_vm0, %v13964_v54, 0 }
0x1448   :  { %v11651_v28 = vpop.eup %11650 }
0x1449   :  { %v11653_v52 = vpop.eup %11652  ;;  %v5314_v39 = vmul.f32 %v11651_v28, %v11645_v33 }
0x144a   :  { %v11655_v34 = vpop.eup %11654  ;;  %v5313_v48 = vmul.f32 %v11653_v52, %v11647_v41  ;;  %v10991_v41 = vld [vmem:[%s15188_s6 + $0x114] ss:$8 sps:$4 sm:$0xff]  }
0x144b   :  { %v5312_v46 = vmul.f32 %v11655_v34, %v11643_v50 }
0x144c   :  { %v11657_v58 = vpop.eup %11656  ;;  %v5316_v0 = vpack.c.bf16 %v5314_v39, %v5313_v48 }
0x144d   :  { %v5311_v35 = vmul.f32 %v11657_v58, %v11649_v24  ;;  %v10992_v24 = vld [vmem:[%s15188_s6 + $0x120] ss:$8 sps:$4 sm:$0xff]  }
0x144f   :  { %v5315_v18 = vpack.c.bf16 %v5312_v46, %v5311_v35 }
0x1451   :  { %10209 = vmatprep.mubr.msk.bf16.mxu1 %vm829_vm1, %v5315_v18 }
0x1452   :  { %10210 = vmatmul.mubr.msk.bf16.vlgmr.msra.gmra.mrb[84].mxu1 %vm829_vm1, %v5316_v0 }
0x1453   :  { %10214 = vmatpush3.bf16.xpose.msra.mxu1 %v13972_v5  ;;  %10217 = vmatprep.mubr.msk.bf16.mxu1 %vm759_vm0, %v13832_v25 }
0x1454   :  { %10338 = vmatprep.subr.msk.bf16.mxu1 %vm759_vm0, %v13974_v38 }
0x145b   :  { %10216 = vmatpush3.bf16.xpose.msra.mxu1 %v13983_v57 }
0x1462   :  { %10218 = vmatmul.mubr.msk.bf16.vlgmr.msra.gmra.mrb[88].mxu1 %vm759_vm0, %v13838_v3 }
0x1525   :  { %v10211_v4 = vpop.f32.mrb[84].mxu1 }
0x1526   :  { %v5357_v44 = vpop.f32.mrb[85].mxu1 }
0x1527   :  { %v10212_v51 = vpop.f32.mrb[86].mxu1 }
0x1528   :  { %v5373_v29 = vpack.c.bf16 %v10212_v51, %v10211_v4  ;;  %v5360_v50 = vpop.f32.mrb[87].mxu1 }
0x1529   :  { %v5372_v33 = vpack.c.bf16 %v5360_v50, %v5357_v44 }
0x152b   :  { %9314 = vmatmul.mubr.msk.bf16.vlgmr.msra.gmra.mrb[80].mxu0 %vm759_vm0, %v5372_v33 }
0x152c   :  { %5520 = vmatpush1.bf16.msra.mxu0 %v10986_v1  ;;  %5462 = vmatprep.mubr.bf16.mxu0 %v11847_v45 }
0x152d   :  { %5521 = vmatprep.subr.bf16.mxu0 %v10991_v41 }
0x1530   :  { %5522 = vmatpush1.bf16.msra.mxu0 %v10989_v30  ;;  %v10998_v30 = vld [vmem:[%s15188_s6 + $0x180] ss:$8 sps:$4 sm:$0xff]  }
0x1531   :  { %5523 = vmatprep.subr.bf16.mxu0 %v10994_v53  ;;  %v11000_v53 = vld [vmem:[%s15188_s6 + $0x184] ss:$8 sps:$4 sm:$0xff]  }
0x1533   :  { %9315 = vmatmul.mubr.msk.bf16.gmra.mrb[84].mxu0 %vm759_vm0, %v5373_v29 }
0x1534   :  { %5524 = vmatpush1.bf16.msra.mxu0 %v10992_v24  ;;  %5551 = vmatprep.mubr.bf16.mxu0 %v11847_v45 }
0x1535   :  { %v10219_v11 = vpop.f32.mrb[88].mxu1  ;;  %5525 = vmatprep.subr.bf16.mxu0 %v10997_v61 }
0x1536   :  { %v5624_v7 = vpop.f32.mrb[89].mxu1  ;;  %v5641_v63 = vmul.f32 0.125, %v10219_v11 }
0x1537   :  { %v5639_v36 = vmul.f32 0.125, %v5624_v7  ;;  %v10220_v43 = vpop.f32.mrb[90].mxu1 }
0x1538   :  { %v5642_v8 = vmul.f32 0.125, %v10220_v43  ;;  %v5627_v12 = vpop.f32.mrb[91].mxu1  ;;  %5526 = vmatpush1.bf16.msra.mxu0 %v10995_v31  ;;  %v5645_v39 = vadd.f32 %v13886_v6, %v5641_v63 }
0x1539   :  { %v5640_v13 = vmul.f32 0.125, %v5627_v12  ;;  %v5643_v60 = vadd.f32 %v13873_v59, %v5639_v36  ;;  %5804 = vmatprep.subr.bf16.mxu0 %v11000_v53 }
0x153a   :  { %v5646_v34 = vadd.f32 %v13893_v22, %v5642_v8  ;;  %v5653_v14 = vsel %vm829_vm1, %v5645_v39, -inf }
0x153b   :  { %9324 = vmatmul.mubr.msk.bf16.vlgmr.msra.gmra.mrb[80].mxu0 %vm759_vm0, %v5200_v27  ;;  %v5647_v28 = vsel %vm829_vm1, %v5643_v60, -inf  ;;  %v5644_v52 = vadd.f32 %v13880_v16, %v5640_v13 }
0x153c   :  { %5648 = vmax.xlane.f32.xlu1 %v5647_v28  ;;  %5561 = vmatprep.mubr.bf16.mxu0 %v11847_v45  ;;  %v5656_v48 = vsel %vm829_vm1, %v5646_v34, -inf }
0x153d   :  { %v5650_v58 = vsel %vm829_vm1, %v5644_v52, -inf  ;;  %5805 = vmatpush1.bf16.msra.mxu0 %v10998_v30 }
0x153e   :  { %5651 = vmax.xlane.f32.xlu0 %v5650_v58 }
0x1540   :  { %5657 = vmax.xlane.f32.xlu1 %v5656_v48  ;;  %v11009_v48 = vld [vmem:[%s15188_s6 + $0x1b4] ss:$8 sps:$4 sm:$0xff]  }
0x1542   :  { %5654 = vmax.xlane.f32.xlu0 %v5653_v14 }
0x1543   :  { %9325 = vmatmul.mubr.msk.bf16.gmra.mrb[84].mxu0 %vm759_vm0, %v5201_v62 }
0x1544   :  { %5836 = vmatprep.mubr.bf16.mxu0 %v11847_v45 }
0x15c9   :  { %v5649_v55 = vpop.xlane.xlu1 %5648 }
0x15ca   :  { %v5659_v18 = vsub.f32 %v5643_v60, %v5649_v55 }
0x15cb   :  { %v5652_v27 = vpop.xlane.xlu0 %5651 }
0x15cc   :  { %v5660_v35 = vsub.f32 %v5644_v52, %v5652_v27  ;;  %v5663_v44 = vmul.f32 1.442695, %v5659_v18 }
0x15cd   :  { %v5658_v46 = vpop.xlane.xlu1 %5657 }
0x15ce   :  { %v5662_v0 = vsub.f32 %v5646_v34, %v5658_v46  ;;  %v5665_v37 = vmul.f32 1.442695, %v5660_v35 }
0x15cf   :  { %v5655_v15 = vpop.xlane.xlu0 %5654 }
0x15d0   :  { %v5669_v42 = vmul.f32 1.442695, %v5662_v0  ;;  %v5661_v4 = vsub.f32 %v5645_v39, %v5655_v15 }
0x15d2   :  { %11658 = vpow2.f32 %v5669_v42  ;;  %v5667_v51 = vmul.f32 1.442695, %v5661_v4 }
0x15d3   :  { %11660 = vpow2.f32 %v5665_v37 }
0x15d4   :  { %11662 = vpow2.f32 %v5667_v51 }
0x15d5   :  { %11664 = vpow2.f32 %v5663_v44 }
0x15dc   :  { %v11659_v47 = vpop.eup %11658 }
0x15dd   :  { %v11661_v9 = vpop.eup %11660  ;;  %v5680_v62 = vsel %vm829_vm1, %v11659_v47, 0.0 }
0x15de   :  { %v11663_v29 = vpop.eup %11662  ;;  %5681 = vadd.xlane.f32.xlu1 %v5680_v62  ;;  %v5674_v33 = vsel %vm829_vm1, %v11661_v9, 0.0 }
0x15df   :  { %v5677_v50 = vsel %vm829_vm1, %v11663_v29, 0.0  ;;  %v11665_v1 = vpop.eup %11664 }
0x15e0   :  { %5678 = vadd.xlane.f32.xlu0 %v5677_v50  ;;  %v5671_v41 = vsel %vm829_vm1, %v11665_v1, 0.0 }
0x15e2   :  { %5675 = vadd.xlane.f32.xlu1 %v5674_v33 }
0x15e4   :  { %5672 = vadd.xlane.f32.xlu0 %v5671_v41 }
0x15f3   :  { %5697 = vrot.lane.b32.xlu1 %v13864_v40, %s11846_s21  ;;  %v11003_v40 = vld [vmem:[%s15188_s6 + $0x194] ss:$8 sps:$4 sm:$0xff]  }
0x15f4   :  { %5806 = vmatprep.subr.bf16.mxu0 %v11003_v40 }
0x15f7   :  { %5867 = vrot.lane.b32.xlu1 %v13832_v25, %s11846_s21  ;;  %v11001_v25 = vld [vmem:[%s15188_s6 + $0x190] ss:$8 sps:$4 sm:$0xff]  }
0x15f8   :  { %5807 = vmatpush1.bf16.msra.mxu0 %v11001_v25 }
0x15fa   :  { %5695 = vrot.lane.b32.xlu0 %v13860_v2, %s11846_s21  ;;  %v11004_v2 = vld [vmem:[%s15188_s6 + $0x1a0] ss:$8 sps:$4 sm:$0xff]  }
0x15fb   :  { %5869 = vrot.lane.b32.xlu1 %v13838_v3, %s11846_s21  ;;  %v11006_v3 = vld [vmem:[%s15188_s6 + $0x1a4] ss:$8 sps:$4 sm:$0xff]  }
0x15fc   :  { %5808 = vmatprep.subr.bf16.mxu0 %v11006_v3 }
0x15fd   :  { %5809 = vmatpush1.bf16.msra.mxu0 %v11004_v2 }
0x15fe   :  { %5810 = vmatprep.subr.bf16.mxu0 %v11009_v48 }
0x166b   :  { %v5682_v24 = vpop.xlane.xlu1 %5681 }
0x166d   :  { %v5679_v61 = vpop.xlane.xlu0 %5678 }
0x166e   :  { %11666 = vrcp.f32 %v5679_v61 }
0x166f   :  { %v5676_v31 = vpop.xlane.xlu1 %5675 }
0x1670   :  { %11668 = vrcp.f32 %v5676_v31 }
0x1671   :  { %11670 = vrcp.f32 %v5682_v24  ;;  %v5673_v11 = vpop.xlane.xlu0 %5672 }
0x1672   :  { %11672 = vrcp.f32 %v5673_v11 }
0x1673   :  { %v5698_v36 = vpop.permute.xlu1 %5697 }
0x1675   :  { %v5696_v7 = vpop.permute.xlu0 %5695 }
0x1676   :  { %10221 = vmatprep.subr.bf16.mxu1 %v5696_v7 }
0x1677   :  { %10222 = vmatpush3.bf16.msra.mxu1 %v5696_v7  ;;  %v5868_v39 = vpop.permute.xlu1 %5867 }
0x1678   :  { %10223 = vmatprep.subr.bf16.mxu1 %v5698_v36  ;;  %v11667_v43 = vpop.eup %11666 }
0x1679   :  { %v5689_v13 = vmul.f32 %v11667_v43, %v11663_v29 }
0x167a   :  { %v11669_v8 = vpop.eup %11668 }
0x167b   :  { %v11671_v12 = vpop.eup %11670  ;;  %10224 = vmatpush3.bf16.msra.mxu1 %v5698_v36  ;;  %v5688_v28 = vmul.f32 %v11669_v8, %v11661_v9 }
0x167c   :  { %v11673_v63 = vpop.eup %11672  ;;  %10339 = vmatprep.subr.msk.bf16.mxu1 %vm759_vm0, %v13964_v54  ;;  %v5690_v52 = vmul.f32 %v11671_v12, %v11659_v47  ;;  %v5870_v54 = vpop.permute.xlu1 %5869 }
0x167d   :  { %v5687_v60 = vmul.f32 %v11673_v63, %v11665_v1  ;;  %v11010_v63 = vld [vmem:[%s15188_s6 + $0x1c0] ss:$8 sps:$4 sm:$0xff]  }
0x167e   :  { %v5692_v58 = vpack.c.bf16 %v5690_v52, %v5689_v13  ;;  %v11012_v13 = vld [vmem:[%s15188_s6 + $0x1c4] ss:$8 sps:$4 sm:$0xff]  }
0x167f   :  { %v5691_v34 = vpack.c.bf16 %v5688_v28, %v5687_v60  ;;  %v11015_v60 = vld [vmem:[%s15188_s6 + $0x1d4] ss:$8 sps:$4 sm:$0xff]   ;;  %v11013_v28 = vld [vmem:[%s15188_s6 + $0x1d0] ss:$8 sps:$4 sm:$0xff]   ;;  %v11018_v52 = vld [vmem:[%s15188_s6 + $0x1e4] ss:$8 sps:$4 sm:$0xff]  }
0x1681   :  { %10225 = vmatprep.mubr.msk.bf16.mxu1 %vm829_vm1, %v5691_v34  ;;  %v11016_v34 = vld [vmem:[%s15188_s6 + $0x1e0] ss:$8 sps:$4 sm:$0xff]  }
0x1682   :  { %10226 = vmatmul.mubr.msk.bf16.vlgmr.msra.gmra.mrb[92].mxu1 %vm829_vm1, %v5692_v58 }
0x1683   :  { %10233 = vmatprep.mubr.msk.bf16.mxu1 %vm759_vm0, %v5868_v39 }
0x1684   :  { %10230 = vmatpush3.bf16.xpose.msra.mxu1 %v13972_v5  ;;  %v11007_v5 = vld [vmem:[%s15188_s6 + $0x1b0] ss:$8 sps:$4 sm:$0xff]  }
0x1685   :  { %10340 = vmatprep.subr.msk.bf16.mxu1 %vm759_vm0, %v13974_v38  ;;  %5811 = vmatpush1.bf16.msra.mxu0 %v11007_v5 }
0x1686   :  { %6083 = vmatprep.subr.bf16.mxu0 %v11012_v13  ;;  %v11061_v13 = vld [vmem:[%s15190_s8 + $0x428] ss:$24 sps:$4 sm:$0xff]  }
0x168c   :  { %10232 = vmatpush3.bf16.xpose.msra.mxu1 %v13983_v57 }
0x168d   :  { %10237 = vmatprep.subr.bf16.mxu1 %v5696_v7 }
0x1693   :  { %10234 = vmatmul.mubr.msk.bf16.vlgmr.msra.gmra.mrb[96].mxu1 %vm759_vm0, %v5870_v54 }
0x1694   :  { %10238 = vmatpush3.bf16.msra.mxu1 %v5696_v7 }
0x1695   :  { %10239 = vmatprep.subr.bf16.mxu1 %v5698_v36 }
0x1698   :  { %10240 = vmatpush3.bf16.msra.mxu1 %v5698_v36 }
0x1755   :  { %v10227_v38 = vpop.f32.mrb[92].mxu1 }
0x1756   :  { %v5741_v14 = vpop.f32.mrb[93].mxu1 }
0x1757   :  { %v10228_v57 = vpop.f32.mrb[94].mxu1 }
0x1758   :  { %v5757_v55 = vpack.c.bf16 %v10228_v57, %v10227_v38  ;;  %v5744_v27 = vpop.f32.mrb[95].mxu1 }
0x1759   :  { %v5756_v35 = vpack.c.bf16 %v5744_v27, %v5741_v14 }
0x175b   :  { %9338 = vmatmul.mubr.msk.bf16.vlgmr.msra.gmra.mrb[80].mxu0 %vm759_vm0, %v5756_v35 }
0x175c   :  { %5846 = vmatprep.mubr.bf16.mxu0 %v11847_v45  ;;  %6084 = vmatpush1.bf16.msra.mxu0 %v11010_v63  ;;  %v11058_v63 = vld [vmem:[%s15190_s8 + $0x420] ss:$24 sps:$4 sm:$0xff]  }
0x175d   :  { %6085 = vmatprep.subr.bf16.mxu0 %v11015_v60  ;;  %v11066_v60 = vld [vmem:[%s15190_s8 + $0x454] ss:$24 sps:$4 sm:$0xff]  }
0x1760   :  { %6086 = vmatpush1.bf16.msra.mxu0 %v11013_v28  ;;  %v11069_v28 = vld [vmem:[%s15190_s8 + $0x45c] ss:$24 sps:$4 sm:$0xff]  }
0x1761   :  { %6087 = vmatprep.subr.bf16.mxu0 %v11018_v52  ;;  %v11064_v52 = vld [vmem:[%s15190_s8 + $0x450] ss:$24 sps:$4 sm:$0xff]  }
0x1763   :  { %9339 = vmatmul.mubr.msk.bf16.gmra.mrb[84].mxu0 %vm759_vm0, %v5757_v55 }
0x1764   :  { %6115 = vmatprep.mubr.bf16.mxu0 %v11847_v45  ;;  %6088 = vmatpush1.bf16.msra.mxu0 %v11016_v34  ;;  %v11067_v34 = vld [vmem:[%s15190_s8 + $0x458] ss:$24 sps:$4 sm:$0xff]  }
0x1766   :  { %v10235_v46 = vpop.f32.mrb[96].mxu1 }
0x1767   :  { %v5911_v18 = vpop.f32.mrb[97].mxu1  ;;  %v5928_v0 = vmul.f32 0.125, %v10235_v46 }
0x1768   :  { %v5926_v37 = vmul.f32 0.125, %v5911_v18  ;;  %v10236_v15 = vpop.f32.mrb[98].mxu1 }
0x1769   :  { %v5914_v42 = vpop.f32.mrb[99].mxu1  ;;  %v5929_v51 = vmul.f32 0.125, %v10236_v15  ;;  %v5932_v62 = vadd.f32 %v13886_v6, %v5928_v0  ;;  %v11019_v15 = vld [vmem:[%s15188_s6 + $0x1f0] ss:$8 sps:$4 sm:$0xff]  }
0x176a   :  { %v5927_v4 = vmul.f32 0.125, %v5914_v42  ;;  %v5930_v44 = vadd.f32 %v13873_v59, %v5926_v37  ;;  %v11021_v37 = vld [vmem:[%s15188_s6 + $0x1f4] ss:$8 sps:$4 sm:$0xff]  }
0x176b   :  { %v5940_v50 = vsel %vm829_vm1, %v5932_v62, -inf  ;;  %v5933_v1 = vadd.f32 %v13893_v22, %v5929_v51  ;;  %6089 = vmatprep.subr.bf16.mxu0 %v11021_v37 }
0x176c   :  { %v5934_v47 = vsel %vm829_vm1, %v5930_v44, -inf  ;;  %v5931_v9 = vadd.f32 %v13880_v16, %v5927_v4  ;;  %6090 = vmatpush1.bf16.msra.mxu0 %v11019_v15 }
0x176d   :  { %5935 = vmax.xlane.f32.xlu0 %v5934_v47  ;;  %v5943_v33 = vsel %vm829_vm1, %v5933_v1, -inf }
0x176e   :  { %v5937_v29 = vsel %vm829_vm1, %v5931_v9, -inf }
0x176f   :  { %5938 = vmax.xlane.f32.xlu1 %v5937_v29  ;;  %v11024_v29 = vld [vmem:[%s15190_s8 + $0x304] ss:$24 sps:$4 sm:$0xff]  }
0x1770   :  { %6794 = vmatprep.subr.bf16.mxu1 %v11024_v29 }
0x1771   :  { %5941 = vmax.xlane.f32.xlu0 %v5940_v50  ;;  %v11025_v50 = vld [vmem:[%s15190_s8 + $0x308] ss:$24 sps:$4 sm:$0xff]  }
0x1775   :  { %5944 = vmax.xlane.f32.xlu0 %v5943_v33  ;;  %v11033_v33 = vld [vmem:[%s15190_s8 + $0x33c] ss:$24 sps:$4 sm:$0xff]  }
0x17fa   :  { %v5936_v59 = vpop.xlane.xlu0 %5935 }
0x17fb   :  { %v5946_v41 = vsub.f32 %v5930_v44, %v5936_v59  ;;  %v11028_v59 = vld [vmem:[%s15190_s8 + $0x330] ss:$24 sps:$4 sm:$0xff]  }
0x17fc   :  { %v5939_v30 = vpop.xlane.xlu1 %5938 }
0x17fd   :  { %v5950_v53 = vmul.f32 1.442695, %v5946_v41  ;;  %v5947_v40 = vsub.f32 %v5931_v9, %v5939_v30  ;;  %v11031_v41 = vld [vmem:[%s15190_s8 + $0x338] ss:$24 sps:$4 sm:$0xff]   ;;  %v11036_v30 = vld [vmem:[%s15190_s8 + $0x364] ss:$24 sps:$4 sm:$0xff]  }
0x17fe   :  { %v5942_v16 = vpop.xlane.xlu0 %5941 }
0x17ff   :  { %11674 = vpow2.f32 %v5950_v53  ;;  %v5952_v6 = vmul.f32 1.442695, %v5947_v40  ;;  %v5948_v25 = vsub.f32 %v5932_v62, %v5942_v16  ;;  %v11022_v62 = vld [vmem:[%s15190_s8 + $0x300] ss:$24 sps:$4 sm:$0xff]   ;;  %v11039_v53 = vld [vmem:[%s15190_s8 + $0x36c] ss:$24 sps:$4 sm:$0xff]  }
0x1800   :  { %v11034_v40 = vld [vmem:[%s15190_s8 + $0x360] ss:$24 sps:$4 sm:$0xff]  }
0x1801   :  { %11676 = vpow2.f32 %v5952_v6  ;;  %v5954_v3 = vmul.f32 1.442695, %v5948_v25  ;;  %v11037_v16 = vld [vmem:[%s15190_s8 + $0x368] ss:$24 sps:$4 sm:$0xff]   ;;  %v11042_v6 = vld [vmem:[%s15190_s8 + $0x394] ss:$24 sps:$4 sm:$0xff]  }
0x1802   :  { %v5945_v2 = vpop.xlane.xlu0 %5944  ;;  %v11045_v25 = vld [vmem:[%s15190_s8 + $0x39c] ss:$24 sps:$4 sm:$0xff]  }
0x1803   :  { %11678 = vpow2.f32 %v5954_v3  ;;  %v5949_v24 = vsub.f32 %v5933_v1, %v5945_v2  ;;  %v11027_v1 = vld [vmem:[%s15190_s8 + $0x30c] ss:$24 sps:$4 sm:$0xff]   ;;  %v11040_v3 = vld [vmem:[%s15190_s8 + $0x390] ss:$24 sps:$4 sm:$0xff]  }
0x1804   :  { %6847 = vmatprep.subr.bf16.mxu0 %v11027_v1  ;;  %v11043_v2 = vld [vmem:[%s15190_s8 + $0x398] ss:$24 sps:$4 sm:$0xff]  }
0x1805   :  { %v5956_v61 = vmul.f32 1.442695, %v5949_v24  ;;  %v11048_v24 = vld [vmem:[%s15190_s8 + $0x3c4] ss:$24 sps:$4 sm:$0xff]  }
0x1807   :  { %11680 = vpow2.f32 %v5956_v61  ;;  %v11051_v61 = vld [vmem:[%s15190_s8 + $0x3cc] ss:$24 sps:$4 sm:$0xff]  }
0x1809   :  { %v11675_v22 = vpop.eup %11674 }
0x180a   :  { %v5958_v31 = vsel %vm829_vm1, %v11675_v22, 0.0 }
0x180b   :  { %v11677_v11 = vpop.eup %11676  ;;  %5959 = vadd.xlane.f32.xlu0 %v5958_v31  ;;  %v11049_v31 = vld [vmem:[%s15190_s8 + $0x3c8] ss:$24 sps:$4 sm:$0xff]  }
0x180c   :  { %v5961_v7 = vsel %vm829_vm1, %v11677_v11, 0.0 }
0x180d   :  { %v11679_v36 = vpop.eup %11678  ;;  %5962 = vadd.xlane.f32.xlu1 %v5961_v7  ;;  %v11057_v7 = vld [vmem:[%s15190_s8 + $0x3fc] ss:$24 sps:$4 sm:$0xff]  }
0x180e   :  { %v5964_v43 = vsel %vm829_vm1, %v11679_v36, 0.0 }
0x180f   :  { %5965 = vadd.xlane.f32.xlu0 %v5964_v43  ;;  %v11055_v43 = vld [vmem:[%s15190_s8 + $0x3f8] ss:$24 sps:$4 sm:$0xff]  }
0x1811   :  { %v11681_v8 = vpop.eup %11680 }
0x1812   :  { %v5967_v12 = vsel %vm829_vm1, %v11681_v8, 0.0 }
0x1813   :  { %5968 = vadd.xlane.f32.xlu1 %v5967_v12  ;;  %v11063_v12 = vld [vmem:[%s15190_s8 + $0x42c] ss:$24 sps:$4 sm:$0xff]  }
0x1898   :  { %v5960_v58 = vpop.xlane.xlu0 %5959 }
0x1899   :  { %11682 = vrcp.f32 %v5960_v58  ;;  %v11072_v58 = vld [vmem:[%s15190_s8 + $0x484] ss:$24 sps:$4 sm:$0xff]  }
0x189a   :  { %v5963_v39 = vpop.xlane.xlu1 %5962 }
0x189b   :  { %11684 = vrcp.f32 %v5963_v39  ;;  %v11075_v39 = vld [vmem:[%s15190_s8 + $0x48c] ss:$24 sps:$4 sm:$0xff]  }
0x189c   :  { %v5966_v54 = vpop.xlane.xlu0 %5965 }
0x189d   :  { %11686 = vrcp.f32 %v5966_v54  ;;  %v11070_v54 = vld [vmem:[%s15190_s8 + $0x480] ss:$24 sps:$4 sm:$0xff]  }
0x18a0   :  { %v5969_v48 = vpop.xlane.xlu1 %5968 }
0x18a1   :  { %11688 = vrcp.f32 %v5969_v48  ;;  %v11073_v48 = vld [vmem:[%s15190_s8 + $0x488] ss:$24 sps:$4 sm:$0xff]  }
0x18a3   :  { %v11683_v5 = vpop.eup %11682 }
0x18a4   :  { %v5974_v14 = vmul.f32 %v11683_v5, %v11675_v22  ;;  %v11046_v22 = vld [vmem:[%s15190_s8 + $0x3c0] ss:$24 sps:$4 sm:$0xff]   ;;  %v11078_v5 = vld [vmem:[%s15190_s8 + $0x4b4] ss:$24 sps:$4 sm:$0xff]  }
0x18a5   :  { %v11685_v38 = vpop.eup %11684 }
0x18a6   :  { %v5975_v57 = vmul.f32 %v11685_v38, %v11677_v11  ;;  %v11054_v11 = vld [vmem:[%s15190_s8 + $0x3f4] ss:$24 sps:$4 sm:$0xff]  }
0x18a7   :  { %v11687_v27 = vpop.eup %11686  ;;  %v11081_v38 = vld [vmem:[%s15190_s8 + $0x4bc] ss:$24 sps:$4 sm:$0xff]  }
0x18a8   :  { %v5978_v55 = vpack.c.bf16 %v5975_v57, %v5974_v14  ;;  %v5976_v46 = vmul.f32 %v11687_v27, %v11679_v36  ;;  %v11052_v36 = vld [vmem:[%s15190_s8 + $0x3f0] ss:$24 sps:$4 sm:$0xff]   ;;  %v11087_v27 = vld [vmem:[%s15190_s8 + $0x4ec] ss:$24 sps:$4 sm:$0xff]  }
0x18a9   :  { %v11076_v14 = vld [vmem:[%s15190_s8 + $0x4b0] ss:$24 sps:$4 sm:$0xff]  }
0x18aa   :  { %10241 = vmatprep.mubr.msk.bf16.mxu1 %vm829_vm1, %v5978_v55  ;;  %v11079_v57 = vld [vmem:[%s15190_s8 + $0x4b8] ss:$24 sps:$4 sm:$0xff]   ;;  %v11084_v55 = vld [vmem:[%s15190_s8 + $0x4e4] ss:$24 sps:$4 sm:$0xff]  }
0x18ab   :  { %v11689_v35 = vpop.eup %11688 }
0x18ac   :  { %v5977_v18 = vmul.f32 %v11689_v35, %v11681_v8  ;;  %v11060_v8 = vld [vmem:[%s15190_s8 + $0x424] ss:$24 sps:$4 sm:$0xff]   ;;  %v11082_v35 = vld [vmem:[%s15190_s8 + $0x4e0] ss:$24 sps:$4 sm:$0xff]  }
0x18ae   :  { %v5979_v0 = vpack.c.bf16 %v5977_v18, %v5976_v46  ;;  %v11085_v46 = vld [vmem:[%s15190_s8 + $0x4e8] ss:$24 sps:$4 sm:$0xff]  }
0x18b0   :  { %10242 = vmatmul.mubr.msk.bf16.vlgmr.msra.gmra.mrb[100].mxu1 %vm829_vm1, %v5979_v0 }
0x18b1   :  { %6795 = vmatpush1.bf16.msra.mxu1 %v11022_v62 }
0x1983   :  { %v10243_v42 = vpop.f32.mrb[100].mxu1 }
0x1984   :  { %v6020_v4 = vpop.f32.mrb[101].mxu1 }
0x1985   :  { %v10244_v44 = vpop.f32.mrb[102].mxu1 }
0x1986   :  { %v6036_v51 = vpack.c.bf16 %v10244_v44, %v10243_v42  ;;  %v6023_v47 = vpop.f32.mrb[103].mxu1 }
0x1987   :  { %v6035_v9 = vpack.c.bf16 %v6023_v47, %v6020_v4 }
0x1989   :  { %9352 = vmatmul.mubr.msk.bf16.vlgmr.msra.gmra.mrb[80].mxu0 %vm759_vm0, %v6035_v9 }
0x198a   :  { %6125 = vmatprep.mubr.bf16.mxu0 %v11847_v45  ;;  %v11030_v45 = vld [vmem:[%s15190_s8 + $0x334] ss:$24 sps:$4 sm:$0xff]   ;;  %6848 = vmatpush1.bf16.msra.mxu0 %v11025_v50 }
0x198b   :  { %6796 = vmatprep.subr.bf16.mxu1 %v11030_v45  ;;  %6849 = vmatprep.subr.bf16.mxu0 %v11033_v33 }
0x198c   :  { %6797 = vmatpush1.bf16.msra.mxu1 %v11028_v59 }
0x198d   :  { %6798 = vmatprep.subr.bf16.mxu1 %v11036_v30 }
0x198e   :  { %6850 = vmatpush1.bf16.msra.mxu0 %v11031_v41 }
0x198f   :  { %6851 = vmatprep.subr.bf16.mxu0 %v11039_v53 }
0x1990   :  { %6799 = vmatpush1.bf16.msra.mxu1 %v11034_v40 }
0x1991   :  { %9353 = vmatmul.mubr.msk.bf16.gmra.mrb[84].mxu0 %vm759_vm0, %v6036_v51  ;;  %6800 = vmatprep.subr.bf16.mxu1 %v11042_v6  ;;  %v11088_v6 = vld [vmem:[%s15190_s8 + $0x510] ss:$24 sps:$4 sm:$0xff]  }
0x1992   :  { %6852 = vmatpush1.bf16.msra.mxu0 %v11037_v16  ;;  %v11090_v16 = vld [vmem:[%s15190_s8 + $0x514] ss:$24 sps:$4 sm:$0xff]  }
0x1993   :  { %6853 = vmatprep.subr.bf16.mxu0 %v11045_v25  ;;  %v11091_v25 = vld [vmem:[%s15190_s8 + $0x518] ss:$24 sps:$4 sm:$0xff]  }
0x1994   :  { %6801 = vmatpush1.bf16.msra.mxu1 %v11040_v3  ;;  %v11096_v3 = vld [vmem:[%s15190_s8 + $0x544] ss:$24 sps:$4 sm:$0xff]  }
0x1995   :  { %6802 = vmatprep.subr.bf16.mxu1 %v11048_v24  ;;  %v11094_v24 = vld [vmem:[%s15190_s8 + $0x540] ss:$24 sps:$4 sm:$0xff]  }
0x1996   :  { %6854 = vmatpush1.bf16.msra.mxu0 %v11043_v2  ;;  %v11099_v2 = vld [vmem:[%s15190_s8 + $0x54c] ss:$24 sps:$4 sm:$0xff]  }
0x1997   :  { %6855 = vmatprep.subr.bf16.mxu0 %v11051_v61  ;;  %v11097_v61 = vld [vmem:[%s15190_s8 + $0x548] ss:$24 sps:$4 sm:$0xff]  }
0x1998   :  { %6803 = vmatpush1.bf16.msra.mxu1 %v11046_v22  ;;  %v11102_v22 = vld [vmem:[%s15190_s8 + $0x574] ss:$24 sps:$4 sm:$0xff]  }
0x1999   :  { %6804 = vmatprep.subr.bf16.mxu1 %v11054_v11  ;;  %v11100_v11 = vld [vmem:[%s15190_s8 + $0x570] ss:$24 sps:$4 sm:$0xff]  }
0x199a   :  { %6856 = vmatpush1.bf16.msra.mxu0 %v11049_v31  ;;  %v11105_v31 = vld [vmem:[%s15190_s8 + $0x57c] ss:$24 sps:$4 sm:$0xff]  }
0x199b   :  { %6857 = vmatprep.subr.bf16.mxu0 %v11057_v7  ;;  %v11103_v7 = vld [vmem:[%s15190_s8 + $0x578] ss:$24 sps:$4 sm:$0xff]  }
0x199c   :  { %6805 = vmatpush1.bf16.msra.mxu1 %v11052_v36  ;;  %v11108_v36 = vld [vmem:[%s15190_s8 + $0x5a4] ss:$24 sps:$4 sm:$0xff]  }
0x199d   :  { %6806 = vmatprep.subr.bf16.mxu1 %v11060_v8  ;;  %v11106_v8 = vld [vmem:[%s15190_s8 + $0x5a0] ss:$24 sps:$4 sm:$0xff]  }
0x199e   :  { %6858 = vmatpush1.bf16.msra.mxu0 %v11055_v43  ;;  %v11111_v43 = vld [vmem:[%s15190_s8 + $0x5ac] ss:$24 sps:$4 sm:$0xff]  }
0x199f   :  { %6859 = vmatprep.subr.bf16.mxu0 %v11063_v12  ;;  %v11109_v12 = vld [vmem:[%s15190_s8 + $0x5a8] ss:$24 sps:$4 sm:$0xff]  }
0x19a0   :  { %6807 = vmatpush1.bf16.msra.mxu1 %v11058_v63  ;;  %v11114_v63 = vld [vmem:[%s15190_s8 + $0x5d4] ss:$24 sps:$4 sm:$0xff]  }
0x19a1   :  { %6808 = vmatprep.subr.bf16.mxu1 %v11066_v60  ;;  %v11112_v60 = vld [vmem:[%s15190_s8 + $0x5d0] ss:$24 sps:$4 sm:$0xff]  }
0x19a2   :  { %6860 = vmatpush1.bf16.msra.mxu0 %v11061_v13  ;;  %v11117_v13 = vld [vmem:[%s15190_s8 + $0x5dc] ss:$24 sps:$4 sm:$0xff]  }
0x19a3   :  { %6861 = vmatprep.subr.bf16.mxu0 %v11069_v28  ;;  %v11115_v28 = vld [vmem:[%s15190_s8 + $0x5d8] ss:$24 sps:$4 sm:$0xff]  }
0x19a4   :  { %6809 = vmatpush1.bf16.msra.mxu1 %v11064_v52  ;;  %v11120_v52 = vld [vmem:[%s15190_s8 + $0x314] ss:$24 sps:$4 sm:$0xff]  }
0x19a5   :  { %6810 = vmatprep.subr.bf16.mxu1 %v11072_v58 }
0x19a6   :  { %6862 = vmatpush1.bf16.msra.mxu0 %v11067_v34  ;;  %v11123_v34 = vld [vmem:[%s15191_s9 + $0x304] ss:$24 sps:$4 sm:$0xff]  }
0x19a7   :  { %6863 = vmatprep.subr.bf16.mxu0 %v11075_v39 }
0x19a8   :  { %6811 = vmatpush1.bf16.msra.mxu1 %v11070_v54 }
0x19a9   :  { %6812 = vmatprep.subr.bf16.mxu1 %v11078_v5 }
0x19aa   :  { %6864 = vmatpush1.bf16.msra.mxu0 %v11073_v48 }
0x19ab   :  { %6865 = vmatprep.subr.bf16.mxu0 %v11081_v38 }
0x19ac   :  { %6813 = vmatpush1.bf16.msra.mxu1 %v11076_v14 }
0x19ad   :  { %6814 = vmatprep.subr.bf16.mxu1 %v11084_v55 }
0x19ae   :  { %6866 = vmatpush1.bf16.msra.mxu0 %v11079_v57 }
0x19af   :  { %6867 = vmatprep.subr.bf16.mxu0 %v11087_v27 }
0x19b0   :  { %6815 = vmatpush1.bf16.msra.mxu1 %v11082_v35 }
0x19b1   :  { %6816 = vmatprep.subr.bf16.mxu1 %v11090_v16 }
0x19b2   :  { %6868 = vmatpush1.bf16.msra.mxu0 %v11085_v46  ;;  %v9354_v46 = vld [vmem:[%s15189_s7 + $0x2] sm:$0x3] }
0x19b4   :  { %6817 = vmatpush1.bf16.msra.mxu1 %v11088_v6 }
0x19b5   :  { %6818 = vmatprep.subr.bf16.mxu1 %v11096_v3 }
0x19b8   :  { %6819 = vmatpush1.bf16.msra.mxu1 %v11094_v24  ;;  %v11127_v24 = vld [vmem:[%s15191_s9 + $0x330] ss:$24 sps:$4 sm:$0xff]  }
0x19b9   :  { %6820 = vmatprep.subr.bf16.mxu1 %v11102_v22 }
0x19bc   :  { %6821 = vmatpush1.bf16.msra.mxu1 %v11100_v11 }
0x19bd   :  { %6822 = vmatprep.subr.bf16.mxu1 %v11108_v36  ;;  %v11135_v36 = vld [vmem:[%s15191_s9 + $0x364] ss:$24 sps:$4 sm:$0xff]  }
0x19c0   :  { %6823 = vmatpush1.bf16.msra.mxu1 %v11106_v8 }
0x19c1   :  { %6824 = vmatprep.subr.bf16.mxu1 %v11114_v63  ;;  %v11133_v63 = vld [vmem:[%s15191_s9 + $0x360] ss:$24 sps:$4 sm:$0xff]  }
0x19c4   :  { %6825 = vmatpush1.bf16.msra.mxu1 %v11112_v60  ;;  %v11141_v60 = vld [vmem:[%s15191_s9 + $0x394] ss:$24 sps:$4 sm:$0xff]  }
0x19c5   :  { %6900 = vmatprep.subr.bf16.mxu1 %v11120_v52  ;;  %v11139_v52 = vld [vmem:[%s15191_s9 + $0x390] ss:$24 sps:$4 sm:$0xff]  }
0x1a5c   :  { %v6117_v18 = vpop.f32.mrb[80].mxu0 }
0x1a5d   :  { %v14264_v0 = vadd.f32 %v6117_v18, %v13632_v32  ;;  %v6119_v37 = vpop.f32.mrb[81].mxu0 }
0x1a5e   :  { %v14267_v15 = vadd.f32 %v6119_v37, %v13635_v26  ;;  %v6121_v42 = vpop.f32.mrb[82].mxu0 }
0x1a5f   :  { %v14270_v4 = vadd.f32 %v6121_v42, %v13638_v49  ;;  %v6123_v44 = vpop.f32.mrb[83].mxu0  ;;  %v6154_v51 = vmul.f32 %v14264_v0, %v14264_v0  ;;  %v6198_v42 = vrot.slane %v9354_v46, %v12092_v21 }
0x1a60   :  { %v14275_v47 = vadd.f32 %v6123_v44, %v13643_v23  ;;  %v6155_v9 = vmul.f32 %v14267_v15, %v14267_v15  ;;  %v6202_v44 = vrot.slane %v9354_v46, %v12090_v20  ;;  %v11162_v46 = vld [vmem:[%s15190_s8 + $0x464] ss:$24 sps:$4 sm:$0xff]  }
0x1a61   :  { %v6156_v32 = vmul.f32 %v14270_v4, %v14270_v4 }
0x1a62   :  { %v6162_v62 = vadd.f32 %v6155_v9, %v6154_v51  ;;  %v6157_v26 = vmul.f32 %v14275_v47, %v14275_v47 }
0x1a64   :  { %6163 = vadd.xlane.f32.xlu0 %v6162_v62  ;;  %v6127_v49 = vpop.f32.mrb[84].mxu0  ;;  %v6165_v29 = vadd.f32 %v6157_v26, %v6156_v32 }
0x1a65   :  { %v14284_v50 = vadd.f32 %v6127_v49, %v13652_v19  ;;  %v6129_v1 = vpop.f32.mrb[85].mxu0 }
0x1a66   :  { %v14287_v23 = vadd.f32 %v6129_v1, %v13655_v10  ;;  %6166 = vadd.xlane.f32.xlu1 %v6165_v29  ;;  %v6131_v45 = vpop.f32.mrb[86].mxu0 }
0x1a67   :  { %v14290_v33 = vadd.f32 %v6131_v45, %v13658_v17  ;;  %v6133_v59 = vpop.f32.mrb[87].mxu0  ;;  %v6158_v41 = vmul.f32 %v14284_v50, %v14284_v50 }
0x1a68   :  { %v14295_v30 = vadd.f32 %v6133_v59, %v13663_v56  ;;  %v6159_v19 = vmul.f32 %v14287_v23, %v14287_v23  ;;  %v11093_v56 = vld [vmem:[%s15190_s8 + $0x51c] ss:$24 sps:$4 sm:$0xff]  }
0x1a69   :  { %v6160_v53 = vmul.f32 %v14290_v33, %v14290_v33  ;;  %6869 = vmatprep.subr.bf16.mxu0 %v11093_v56  ;;  %v11129_v56 = vld [vmem:[%s15191_s9 + $0x334] ss:$24 sps:$4 sm:$0xff]  }
0x1a6a   :  { %v6168_v10 = vadd.f32 %v6159_v19, %v6158_v41  ;;  %v6161_v40 = vmul.f32 %v14295_v30, %v14295_v30  ;;  %6870 = vmatpush1.bf16.msra.mxu0 %v11091_v25  ;;  %v11118_v19 = vld [vmem:[%s15190_s8 + $0x310] ss:$24 sps:$4 sm:$0xff]  }
0x1a6b   :  { %6871 = vmatprep.subr.bf16.mxu0 %v11099_v2  ;;  %v11124_v2 = vld [vmem:[%s15190_s8 + $0x340] ss:$24 sps:$4 sm:$0xff]  }
0x1a6c   :  { %6169 = vadd.xlane.f32.xlu0 %v6168_v10  ;;  %v6171_v17 = vadd.f32 %v6161_v40, %v6160_v53  ;;  %v11121_v10 = vld [vmem:[%s15191_s9 + $0x300] ss:$24 sps:$4 sm:$0xff]   ;;  %v11126_v40 = vld [vmem:[%s15190_s8 + $0x344] ss:$24 sps:$4 sm:$0xff]  }
0x1a6e   :  { %6172 = vadd.xlane.f32.xlu1 %v6171_v17  ;;  %6872 = vmatpush1.bf16.msra.mxu0 %v11097_v61  ;;  %v11132_v61 = vld [vmem:[%s15190_s8 + $0x374] ss:$24 sps:$4 sm:$0xff]  }
0x1a6f   :  { %6873 = vmatprep.subr.bf16.mxu0 %v11105_v31 }
0x1a72   :  { %6874 = vmatpush1.bf16.msra.mxu0 %v11103_v7 }
0x1a73   :  { %6875 = vmatprep.subr.bf16.mxu0 %v11111_v43 }
0x1a76   :  { %6876 = vmatpush1.bf16.msra.mxu0 %v11109_v12  ;;  %v11130_v12 = vld [vmem:[%s15190_s8 + $0x370] ss:$24 sps:$4 sm:$0xff]  }
0x1a77   :  { %6877 = vmatprep.subr.bf16.mxu0 %v11117_v13  ;;  %v11138_v13 = vld [vmem:[%s15190_s8 + $0x3a4] ss:$24 sps:$4 sm:$0xff]  }
0x1a7a   :  { %6878 = vmatpush1.bf16.msra.mxu0 %v11115_v28  ;;  %v11136_v28 = vld [vmem:[%s15190_s8 + $0x3a0] ss:$24 sps:$4 sm:$0xff]  }
0x1a7b   :  { %7530 = vmatprep.subr.bf16.mxu0 %v11123_v34  ;;  %v11144_v34 = vld [vmem:[%s15190_s8 + $0x3d4] ss:$24 sps:$4 sm:$0xff]  }
0x1af1   :  { %v6164_v58 = vpop.xlane.xlu0 %6163 }
0x1af2   :  { %v6174_v39 = vmul.f32 0.00390625, %v6164_v58  ;;  %v11147_v58 = vld [vmem:[%s15191_s9 + $0x3c4] ss:$24 sps:$4 sm:$0xff]  }
0x1af3   :  { %v6167_v54 = vpop.xlane.xlu1 %6166 }
0x1af4   :  { %v6178_v48 = vadd.f32 1e-05, %v6174_v39  ;;  %v6175_v5 = vmul.f32 0.00390625, %v6167_v54  ;;  %v11142_v39 = vld [vmem:[%s15190_s8 + $0x3d0] ss:$24 sps:$4 sm:$0xff]  }
0x1af5   :  { %v11145_v54 = vld [vmem:[%s15191_s9 + $0x3c0] ss:$24 sps:$4 sm:$0xff]  }
0x1af6   :  { %11690 = vrsqrt.f32 %v6178_v48  ;;  %v6179_v38 = vadd.f32 1e-05, %v6175_v5  ;;  %v11150_v48 = vld [vmem:[%s15190_s8 + $0x404] ss:$24 sps:$4 sm:$0xff]   ;;  %v11153_v5 = vld [vmem:[%s15191_s9 + $0x3f4] ss:$24 sps:$4 sm:$0xff]  }
0x1af8   :  { %11692 = vrsqrt.f32 %v6179_v38  ;;  %v11148_v38 = vld [vmem:[%s15190_s8 + $0x400] ss:$24 sps:$4 sm:$0xff]  }
0x1af9   :  { %v6170_v14 = vpop.xlane.xlu0 %6169 }
0x1afa   :  { %v6176_v57 = vmul.f32 0.00390625, %v6170_v14  ;;  %v11151_v14 = vld [vmem:[%s15191_s9 + $0x3f0] ss:$24 sps:$4 sm:$0xff]  }
0x1afb   :  { %v6173_v55 = vpop.xlane.xlu1 %6172 }
0x1afc   :  { %v6180_v27 = vadd.f32 1e-05, %v6176_v57  ;;  %v6177_v35 = vmul.f32 0.00390625, %v6173_v55  ;;  %v11156_v57 = vld [vmem:[%s15190_s8 + $0x434] ss:$24 sps:$4 sm:$0xff]  }
0x1afd   :  { %v11159_v55 = vld [vmem:[%s15191_s9 + $0x424] ss:$24 sps:$4 sm:$0xff]  }
0x1afe   :  { %11694 = vrsqrt.f32 %v6180_v27  ;;  %v6181_v18 = vadd.f32 1e-05, %v6177_v35  ;;  %v11154_v27 = vld [vmem:[%s15190_s8 + $0x430] ss:$24 sps:$4 sm:$0xff]   ;;  %v11157_v35 = vld [vmem:[%s15191_s9 + $0x420] ss:$24 sps:$4 sm:$0xff]  }
0x1b00   :  { %v11691_v37 = vpop.eup %11690  ;;  %11696 = vrsqrt.f32 %v6181_v18  ;;  %v11165_v18 = vld [vmem:[%s15191_s9 + $0x454] ss:$24 sps:$4 sm:$0xff]  }
0x1b01   :  { %v6186_v51 = vmul.f32 %v11691_v37, %v14264_v0  ;;  %v6187_v9 = vmul.f32 %v11691_v37, %v14267_v15  ;;  %v11160_v37 = vld [vmem:[%s15190_s8 + $0x460] ss:$24 sps:$4 sm:$0xff]  }
0x1b02   :  { %v11693_v32 = vpop.eup %11692 }
0x1b03   :  { %v6188_v62 = vmul.f32 %v11693_v32, %v14270_v4  ;;  %v6189_v26 = vmul.f32 %v11693_v32, %v14275_v47  ;;  %v6205_v49 = vmul.f32 %v6198_v42, %v6186_v51  ;;  %v6206_v29 = vmul.f32 %v6202_v44, %v6187_v9  ;;  %v11171_v51 = vld [vmem:[%s15191_s9 + $0x484] ss:$24 sps:$4 sm:$0xff]   ;;  %v11166_v9 = vld [vmem:[%s15190_s8 + $0x490] ss:$24 sps:$4 sm:$0xff]   ;;  %v11169_v32 = vld [vmem:[%s15191_s9 + $0x480] ss:$24 sps:$4 sm:$0xff]  }
0x1b05   :  { %v6207_v1 = vmul.f32 %v6198_v42, %v6188_v62  ;;  %v6208_v45 = vmul.f32 %v6202_v44, %v6189_v26  ;;  %v11174_v62 = vld [vmem:[%s15190_s8 + $0x4c4] ss:$24 sps:$4 sm:$0xff]   ;;  %v11177_v26 = vld [vmem:[%s15191_s9 + $0x4b4] ss:$24 sps:$4 sm:$0xff]  }
0x1b07   :  { %v14378_v59 = vpack.c.bf16 %v6207_v1, %v6205_v49  ;;  %v14380_v41 = vpack.c.bf16 %v6208_v45, %v6206_v29  ;;  %v11172_v49 = vld [vmem:[%s15190_s8 + $0x4c0] ss:$24 sps:$4 sm:$0xff]   ;;  %v11175_v29 = vld [vmem:[%s15191_s9 + $0x4b0] ss:$24 sps:$4 sm:$0xff]   ;;  %v11180_v1 = vld [vmem:[%s15190_s8 + $0x4f4] ss:$24 sps:$4 sm:$0xff]  }
0x1b08   :  { %v11695_v53 = vpop.eup %11694  ;;  %v11183_v45 = vld [vmem:[%s15191_s9 + $0x4e4] ss:$24 sps:$4 sm:$0xff]  }
0x1b09   :  { %v6190_v17 = vmul.f32 %v11695_v53, %v14284_v50  ;;  %v6191_v16 = vmul.f32 %v11695_v53, %v14287_v23  ;;  %6826 = vmatprep.mubr.bf16.mxu1 %v14380_v41  ;;  %6879 = vmatprep.mubr.bf16.mxu0 %v14380_v41  ;;  %v11181_v53 = vld [vmem:[%s15191_s9 + $0x4e0] ss:$24 sps:$4 sm:$0xff]  }
0x1b0a   :  { %v11697_v6 = vpop.eup %11696  ;;  %6827 = vmatmul.mubr.bf16.vlgmr.msra.gmra.mrb[104].mxu1 %v14378_v59  ;;  %6880 = vmatmul.mubr.bf16.vlgmr.msra.gmra.mrb[88].mxu0 %v14378_v59 }
0x1b0b   :  { %v6192_v25 = vmul.f32 %v11697_v6, %v14290_v33  ;;  %v6193_v3 = vmul.f32 %v11697_v6, %v14295_v30  ;;  %6901 = vmatpush1.bf16.msra.mxu1 %v11118_v19  ;;  %7531 = vmatpush1.bf16.msra.mxu0 %v11121_v10  ;;  %v6209_v22 = vmul.f32 %v6198_v42, %v6190_v17  ;;  %v11178_v19 = vld [vmem:[%s15190_s8 + $0x4f0] ss:$24 sps:$4 sm:$0xff]   ;;  %v11186_v10 = vld [vmem:[%s15190_s8 + $0x524] ss:$24 sps:$4 sm:$0xff]   ;;  %v11184_v17 = vld [vmem:[%s15190_s8 + $0x520] ss:$24 sps:$4 sm:$0xff]  }
0x1b0c   :  { %6902 = vmatprep.subr.bf16.mxu1 %v11126_v40  ;;  %v6210_v31 = vmul.f32 %v6202_v44, %v6191_v16  ;;  %7532 = vmatprep.subr.bf16.mxu0 %v11129_v56  ;;  %v11189_v40 = vld [vmem:[%s15191_s9 + $0x514] ss:$24 sps:$4 sm:$0xff]   ;;  %v11187_v16 = vld [vmem:[%s15191_s9 + $0x510] ss:$24 sps:$4 sm:$0xff]   ;;  %v11195_v6 = vld [vmem:[%s15191_s9 + $0x544] ss:$24 sps:$4 sm:$0xff]  }
0x1b0d   :  { %v6211_v11 = vmul.f32 %v6198_v42, %v6192_v25  ;;  %v6212_v7 = vmul.f32 %v6202_v44, %v6193_v3  ;;  %v11163_v42 = vld [vmem:[%s15191_s9 + $0x450] ss:$24 sps:$4 sm:$0xff]   ;;  %v11168_v44 = vld [vmem:[%s15190_s8 + $0x494] ss:$24 sps:$4 sm:$0xff]   ;;  %v11193_v3 = vld [vmem:[%s15191_s9 + $0x540] ss:$24 sps:$4 sm:$0xff]  }
0x1b0e   :  { %v11192_v56 = vld [vmem:[%s15190_s8 + $0x554] ss:$24 sps:$4 sm:$0xff]   ;;  %v11190_v25 = vld [vmem:[%s15190_s8 + $0x550] ss:$24 sps:$4 sm:$0xff]  }
0x1b0f   :  { %v14414_v43 = vpack.c.bf16 %v6211_v11, %v6209_v22  ;;  %v14416_v8 = vpack.c.bf16 %v6212_v7, %v6210_v31  ;;  %6903 = vmatpush1.bf16.msra.mxu1 %v11124_v2  ;;  %7533 = vmatpush1.bf16.msra.mxu0 %v11127_v24  ;;  %v11198_v2 = vld [vmem:[%s15190_s8 + $0x584] ss:$24 sps:$4 sm:$0xff]   ;;  %v11201_v24 = vld [vmem:[%s15191_s9 + $0x574] ss:$24 sps:$4 sm:$0xff]   ;;  %v11199_v22 = vld [vmem:[%s15191_s9 + $0x570] ss:$24 sps:$4 sm:$0xff]  }
0x1b10   :  { %6904 = vmatprep.subr.bf16.mxu1 %v11132_v61  ;;  %7534 = vmatprep.subr.bf16.mxu0 %v11135_v36  ;;  %v11196_v61 = vld [vmem:[%s15190_s8 + $0x580] ss:$24 sps:$4 sm:$0xff]   ;;  %v11204_v31 = vld [vmem:[%s15190_s8 + $0x5b4] ss:$24 sps:$4 sm:$0xff]   ;;  %v11207_v11 = vld [vmem:[%s15191_s9 + $0x5a4] ss:$24 sps:$4 sm:$0xff]  }
0x1b11   :  { %6836 = vmatprep.mubr.bf16.mxu1 %v14416_v8  ;;  %6889 = vmatprep.mubr.bf16.mxu0 %v14416_v8  ;;  %v11202_v7 = vld [vmem:[%s15190_s8 + $0x5b0] ss:$24 sps:$4 sm:$0xff]   ;;  %v11205_v36 = vld [vmem:[%s15191_s9 + $0x5a0] ss:$24 sps:$4 sm:$0xff]  }
0x1b12   :  { %6837 = vmatmul.mubr.bf16.gmra.mrb[108].mxu1 %v14414_v43  ;;  %6890 = vmatmul.mubr.bf16.gmra.mrb[92].mxu0 %v14414_v43 }
0x1b13   :  { %6905 = vmatpush1.bf16.msra.mxu1 %v11130_v12  ;;  %7535 = vmatpush1.bf16.msra.mxu0 %v11133_v63  ;;  %v11210_v12 = vld [vmem:[%s15190_s8 + $0x5e4] ss:$24 sps:$4 sm:$0xff]   ;;  %v11213_v63 = vld [vmem:[%s15191_s9 + $0x5d4] ss:$24 sps:$4 sm:$0xff]  }
0x1b14   :  { %6932 = vmatprep.mubr.bf16.mxu1 %v14380_v41  ;;  %7562 = vmatprep.mubr.bf16.mxu0 %v14380_v41 }
0x1b15   :  { %6906 = vmatprep.subr.bf16.mxu1 %v11138_v13  ;;  %7536 = vmatprep.subr.bf16.mxu0 %v11141_v60  ;;  %v11208_v13 = vld [vmem:[%s15190_s8 + $0x5e0] ss:$24 sps:$4 sm:$0xff]   ;;  %v11211_v60 = vld [vmem:[%s15191_s9 + $0x5d0] ss:$24 sps:$4 sm:$0xff]  }
0x1b17   :  { %6907 = vmatpush1.bf16.msra.mxu1 %v11136_v28  ;;  %7537 = vmatpush1.bf16.msra.mxu0 %v11139_v52  ;;  %v11216_v28 = vld [vmem:[%s15191_s9 + $0x30c] ss:$24 sps:$4 sm:$0xff]  }
0x1b18   :  { %6908 = vmatprep.subr.bf16.mxu1 %v11144_v34  ;;  %7538 = vmatprep.subr.bf16.mxu0 %v11147_v58  ;;  %v11219_v52 = vld [vmem:[%s15191_s9 + $0x314] ss:$24 sps:$4 sm:$0xff]   ;;  %v11214_v34 = vld [vmem:[%s15191_s9 + $0x308] ss:$24 sps:$4 sm:$0xff]  }
0x1b19   :  { %v11217_v58 = vld [vmem:[%s15191_s9 + $0x310] ss:$24 sps:$4 sm:$0xff]  }
0x1b1b   :  { %6909 = vmatpush1.bf16.msra.mxu1 %v11142_v39  ;;  %7539 = vmatpush1.bf16.msra.mxu0 %v11145_v54  ;;  %v11222_v39 = vld [vmem:[%s15191_s9 + $0x33c] ss:$24 sps:$4 sm:$0xff]  }
0x1b1c   :  { %6910 = vmatprep.subr.bf16.mxu1 %v11150_v48  ;;  %7540 = vmatprep.subr.bf16.mxu0 %v11153_v5  ;;  %v11225_v54 = vld [vmem:[%s15191_s9 + $0x344] ss:$24 sps:$4 sm:$0xff]   ;;  %v11220_v48 = vld [vmem:[%s15191_s9 + $0x338] ss:$24 sps:$4 sm:$0xff]  }
0x1b1d   :  { %v11223_v5 = vld [vmem:[%s15191_s9 + $0x340] ss:$24 sps:$4 sm:$0xff]  }
0x1b1f   :  { %6911 = vmatpush1.bf16.msra.mxu1 %v11148_v38  ;;  %7541 = vmatpush1.bf16.msra.mxu0 %v11151_v14  ;;  %v11228_v38 = vld [vmem:[%s15191_s9 + $0x36c] ss:$24 sps:$4 sm:$0xff]  }
0x1b20   :  { %6912 = vmatprep.subr.bf16.mxu1 %v11156_v57  ;;  %7542 = vmatprep.subr.bf16.mxu0 %v11159_v55  ;;  %v11231_v14 = vld [vmem:[%s15191_s9 + $0x374] ss:$24 sps:$4 sm:$0xff]   ;;  %v11226_v57 = vld [vmem:[%s15191_s9 + $0x368] ss:$24 sps:$4 sm:$0xff]  }
0x1b21   :  { %v11229_v55 = vld [vmem:[%s15191_s9 + $0x370] ss:$24 sps:$4 sm:$0xff]  }
0x1b23   :  { %6913 = vmatpush1.bf16.msra.mxu1 %v11154_v27  ;;  %7543 = vmatpush1.bf16.msra.mxu0 %v11157_v35  ;;  %v11234_v27 = vld [vmem:[%s15191_s9 + $0x39c] ss:$24 sps:$4 sm:$0xff]  }
0x1b24   :  { %6914 = vmatprep.subr.bf16.mxu1 %v11162_v46  ;;  %7544 = vmatprep.subr.bf16.mxu0 %v11165_v18  ;;  %v11237_v35 = vld [vmem:[%s15191_s9 + $0x3a4] ss:$24 sps:$4 sm:$0xff]   ;;  %v11232_v46 = vld [vmem:[%s15191_s9 + $0x398] ss:$24 sps:$4 sm:$0xff]  }
0x1b25   :  { %v11235_v18 = vld [vmem:[%s15191_s9 + $0x3a0] ss:$24 sps:$4 sm:$0xff]  }
0x1b27   :  { %6915 = vmatpush1.bf16.msra.mxu1 %v11160_v37  ;;  %7545 = vmatpush1.bf16.msra.mxu0 %v11163_v42  ;;  %v11240_v37 = vld [vmem:[%s15191_s9 + $0x3cc] ss:$24 sps:$4 sm:$0xff]  }
0x1b28   :  { %6916 = vmatprep.subr.bf16.mxu1 %v11168_v44  ;;  %7546 = vmatprep.subr.bf16.mxu0 %v11171_v51  ;;  %v11243_v42 = vld [vmem:[%s15191_s9 + $0x3d4] ss:$24 sps:$4 sm:$0xff]   ;;  %v11241_v44 = vld [vmem:[%s15191_s9 + $0x3d0] ss:$24 sps:$4 sm:$0xff]  }
0x1b29   :  { %v11246_v51 = vld [vmem:[%s15191_s9 + $0x3fc] ss:$24 sps:$4 sm:$0xff]  }
0x1b2b   :  { %6917 = vmatpush1.bf16.msra.mxu1 %v11166_v9  ;;  %7547 = vmatpush1.bf16.msra.mxu0 %v11169_v32  ;;  %v11249_v9 = vld [vmem:[%s15191_s9 + $0x404] ss:$24 sps:$4 sm:$0xff]   ;;  %v11244_v32 = vld [vmem:[%s15191_s9 + $0x3f8] ss:$24 sps:$4 sm:$0xff]  }
0x1b2c   :  { %6918 = vmatprep.subr.bf16.mxu1 %v11174_v62  ;;  %7548 = vmatprep.subr.bf16.mxu0 %v11177_v26  ;;  %v11247_v62 = vld [vmem:[%s15191_s9 + $0x400] ss:$24 sps:$4 sm:$0xff]   ;;  %v11252_v26 = vld [vmem:[%s15191_s9 + $0x42c] ss:$24 sps:$4 sm:$0xff]  }
0x1b2f   :  { %6919 = vmatpush1.bf16.msra.mxu1 %v11172_v49  ;;  %7549 = vmatpush1.bf16.msra.mxu0 %v11175_v29  ;;  %v11255_v49 = vld [vmem:[%s15191_s9 + $0x434] ss:$24 sps:$4 sm:$0xff]   ;;  %v11250_v29 = vld [vmem:[%s15191_s9 + $0x428] ss:$24 sps:$4 sm:$0xff]  }
0x1b30   :  { %6920 = vmatprep.subr.bf16.mxu1 %v11180_v1  ;;  %7550 = vmatprep.subr.bf16.mxu0 %v11183_v45  ;;  %v11253_v1 = vld [vmem:[%s15191_s9 + $0x430] ss:$24 sps:$4 sm:$0xff]   ;;  %v11258_v45 = vld [vmem:[%s15191_s9 + $0x45c] ss:$24 sps:$4 sm:$0xff]  }
0x1b33   :  { %6921 = vmatpush1.bf16.msra.mxu1 %v11178_v19  ;;  %7551 = vmatpush1.bf16.msra.mxu0 %v11181_v53  ;;  %v11261_v19 = vld [vmem:[%s15191_s9 + $0x464] ss:$24 sps:$4 sm:$0xff]   ;;  %v11256_v53 = vld [vmem:[%s15191_s9 + $0x458] ss:$24 sps:$4 sm:$0xff]  }
0x1b34   :  { %6922 = vmatprep.subr.bf16.mxu1 %v11186_v10  ;;  %7552 = vmatprep.subr.bf16.mxu0 %v11189_v40  ;;  %v11259_v10 = vld [vmem:[%s15191_s9 + $0x460] ss:$24 sps:$4 sm:$0xff]   ;;  %v11264_v40 = vld [vmem:[%s15191_s9 + $0x48c] ss:$24 sps:$4 sm:$0xff]  }
0x1b37   :  { %6923 = vmatpush1.bf16.msra.mxu1 %v11184_v17  ;;  %7553 = vmatpush1.bf16.msra.mxu0 %v11187_v16  ;;  %v11267_v17 = vld [vmem:[%s15191_s9 + $0x494] ss:$24 sps:$4 sm:$0xff]   ;;  %v11262_v16 = vld [vmem:[%s15191_s9 + $0x488] ss:$24 sps:$4 sm:$0xff]  }
0x1b38   :  { %6924 = vmatprep.subr.bf16.mxu1 %v11192_v56  ;;  %7554 = vmatprep.subr.bf16.mxu0 %v11195_v6  ;;  %v11265_v56 = vld [vmem:[%s15191_s9 + $0x490] ss:$24 sps:$4 sm:$0xff]   ;;  %v11270_v6 = vld [vmem:[%s15191_s9 + $0x4bc] ss:$24 sps:$4 sm:$0xff]  }
0x1b3b   :  { %6925 = vmatpush1.bf16.msra.mxu1 %v11190_v25  ;;  %7555 = vmatpush1.bf16.msra.mxu0 %v11193_v3  ;;  %v11273_v25 = vld [vmem:[%s15191_s9 + $0x4c4] ss:$24 sps:$4 sm:$0xff]   ;;  %v11268_v3 = vld [vmem:[%s15191_s9 + $0x4b8] ss:$24 sps:$4 sm:$0xff]  }
0x1b3c   :  { %6926 = vmatprep.subr.bf16.mxu1 %v11198_v2  ;;  %7556 = vmatprep.subr.bf16.mxu0 %v11201_v24  ;;  %v11271_v2 = vld [vmem:[%s15191_s9 + $0x4c0] ss:$24 sps:$4 sm:$0xff]   ;;  %v11276_v24 = vld [vmem:[%s15191_s9 + $0x4ec] ss:$24 sps:$4 sm:$0xff]  }
0x1b3f   :  { %6927 = vmatpush1.bf16.msra.mxu1 %v11196_v61  ;;  %7557 = vmatpush1.bf16.msra.mxu0 %v11199_v22  ;;  %v11279_v61 = vld [vmem:[%s15191_s9 + $0x4f4] ss:$24 sps:$4 sm:$0xff]   ;;  %v11274_v22 = vld [vmem:[%s15191_s9 + $0x4e8] ss:$24 sps:$4 sm:$0xff]  }
0x1b40   :  { %6928 = vmatprep.subr.bf16.mxu1 %v11204_v31  ;;  %7558 = vmatprep.subr.bf16.mxu0 %v11207_v11  ;;  %v11277_v31 = vld [vmem:[%s15191_s9 + $0x4f0] ss:$24 sps:$4 sm:$0xff]   ;;  %v11282_v11 = vld [vmem:[%s15191_s9 + $0x51c] ss:$24 sps:$4 sm:$0xff]  }
0x1b43   :  { %6929 = vmatpush1.bf16.msra.mxu1 %v11202_v7  ;;  %7559 = vmatpush1.bf16.msra.mxu0 %v11205_v36  ;;  %v11285_v7 = vld [vmem:[%s15191_s9 + $0x524] ss:$24 sps:$4 sm:$0xff]   ;;  %v11280_v36 = vld [vmem:[%s15191_s9 + $0x518] ss:$24 sps:$4 sm:$0xff]  }
0x1b44   :  { %6930 = vmatprep.subr.bf16.mxu1 %v11210_v12  ;;  %7560 = vmatprep.subr.bf16.mxu0 %v11213_v63  ;;  %v11283_v12 = vld [vmem:[%s15191_s9 + $0x520] ss:$24 sps:$4 sm:$0xff]   ;;  %v11288_v63 = vld [vmem:[%s15191_s9 + $0x54c] ss:$24 sps:$4 sm:$0xff]  }
0x1b47   :  { %6931 = vmatpush1.bf16.msra.mxu1 %v11208_v13  ;;  %7561 = vmatpush1.bf16.msra.mxu0 %v11211_v60  ;;  %v11291_v13 = vld [vmem:[%s15191_s9 + $0x554] ss:$24 sps:$4 sm:$0xff]   ;;  %v11286_v60 = vld [vmem:[%s15191_s9 + $0x548] ss:$24 sps:$4 sm:$0xff]  }
0x1b48   :  { %7583 = vmatprep.subr.bf16.mxu1 %v11216_v28  ;;  %7636 = vmatprep.subr.bf16.mxu0 %v11219_v52  ;;  %v11289_v28 = vld [vmem:[%s15191_s9 + $0x550] ss:$24 sps:$4 sm:$0xff]   ;;  %v11294_v52 = vld [vmem:[%s15191_s9 + $0x57c] ss:$24 sps:$4 sm:$0xff]  }
0x1b4a   :  { %6933 = vmatmul.mubr.bf16.vlgmr.msra.gmra.mrb[112].mxu1 %v14378_v59  ;;  %7563 = vmatmul.mubr.bf16.vlgmr.msra.gmra.mrb[96].mxu0 %v14378_v59 }
0x1b4b   :  { %6942 = vmatprep.mubr.bf16.mxu1 %v14416_v8  ;;  %7572 = vmatprep.mubr.bf16.mxu0 %v14416_v8 }
0x1b4c   :  { %7584 = vmatpush1.bf16.msra.mxu1 %v11214_v34  ;;  %7637 = vmatpush1.bf16.msra.mxu0 %v11217_v58  ;;  %v11297_v34 = vld [vmem:[%s15191_s9 + $0x584] ss:$24 sps:$4 sm:$0xff]   ;;  %v11292_v58 = vld [vmem:[%s15191_s9 + $0x578] ss:$24 sps:$4 sm:$0xff]  }
0x1b4d   :  { %7585 = vmatprep.subr.bf16.mxu1 %v11222_v39  ;;  %7638 = vmatprep.subr.bf16.mxu0 %v11225_v54  ;;  %v11295_v39 = vld [vmem:[%s15191_s9 + $0x580] ss:$24 sps:$4 sm:$0xff]   ;;  %v11300_v54 = vld [vmem:[%s15191_s9 + $0x5ac] ss:$24 sps:$4 sm:$0xff]  }
0x1b50   :  { %7586 = vmatpush1.bf16.msra.mxu1 %v11220_v48  ;;  %7639 = vmatpush1.bf16.msra.mxu0 %v11223_v5  ;;  %v11303_v48 = vld [vmem:[%s15191_s9 + $0x5b4] ss:$24 sps:$4 sm:$0xff]   ;;  %v11298_v5 = vld [vmem:[%s15191_s9 + $0x5a8] ss:$24 sps:$4 sm:$0xff]  }
0x1b51   :  { %7587 = vmatprep.subr.bf16.mxu1 %v11228_v38  ;;  %7640 = vmatprep.subr.bf16.mxu0 %v11231_v14  ;;  %v11301_v38 = vld [vmem:[%s15191_s9 + $0x5b0] ss:$24 sps:$4 sm:$0xff]   ;;  %v11306_v14 = vld [vmem:[%s15191_s9 + $0x5dc] ss:$24 sps:$4 sm:$0xff]  }
0x1b52   :  { %6943 = vmatmul.mubr.bf16.gmra.mrb[116].mxu1 %v14414_v43  ;;  %7573 = vmatmul.mubr.bf16.gmra.mrb[100].mxu0 %v14414_v43 }
0x1b53   :  { %7615 = vmatprep.mubr.bf16.mxu1 %v14380_v41  ;;  %7668 = vmatprep.mubr.bf16.mxu0 %v14380_v41  ;;  %v11238_v41 = vld [vmem:[%s15191_s9 + $0x3c8] ss:$24 sps:$4 sm:$0xff]  }
0x1b54   :  { %7588 = vmatpush1.bf16.msra.mxu1 %v11226_v57  ;;  %7641 = vmatpush1.bf16.msra.mxu0 %v11229_v55  ;;  %v11309_v57 = vld [vmem:[%s15191_s9 + $0x5e4] ss:$24 sps:$4 sm:$0xff]   ;;  %v11304_v55 = vld [vmem:[%s15191_s9 + $0x5d8] ss:$24 sps:$4 sm:$0xff]  }
0x1b55   :  { %7589 = vmatprep.subr.bf16.mxu1 %v11234_v27  ;;  %7642 = vmatprep.subr.bf16.mxu0 %v11237_v35  ;;  %v11307_v27 = vld [vmem:[%s15191_s9 + $0x5e0] ss:$24 sps:$4 sm:$0xff]   ;;  %v11312_v35 = vld [vmem:[%s15192_s10 + $0x2c4] ss:$8 sps:$4 sm:$0xff]  }
0x1b58   :  { %7590 = vmatpush1.bf16.msra.mxu1 %v11232_v46  ;;  %7643 = vmatpush1.bf16.msra.mxu0 %v11235_v18  ;;  %v11310_v46 = vld [vmem:[%s15192_s10 + $0x2c0] ss:$8 sps:$4 sm:$0xff]   ;;  %v11315_v18 = vld [vmem:[%s15192_s10 + $0x2d4] ss:$8 sps:$4 sm:$0xff]  }
0x1b59   :  { %7591 = vmatprep.subr.bf16.mxu1 %v11240_v37  ;;  %7644 = vmatprep.subr.bf16.mxu0 %v11243_v42  ;;  %v11313_v37 = vld [vmem:[%s15192_s10 + $0x2d0] ss:$8 sps:$4 sm:$0xff]   ;;  %v11318_v42 = vld [vmem:[%s15192_s10 + $0x2e4] ss:$8 sps:$4 sm:$0xff]  }
0x1b5c   :  { %7592 = vmatpush1.bf16.msra.mxu1 %v11238_v41  ;;  %7645 = vmatpush1.bf16.msra.mxu0 %v11241_v44  ;;  %v11316_v41 = vld [vmem:[%s15192_s10 + $0x2e0] ss:$8 sps:$4 sm:$0xff]   ;;  %v11324_v44 = vld [vmem:[%s15192_s10 + $0x304] ss:$8 sps:$4 sm:$0xff]  }
0x1b5d   :  { %7593 = vmatprep.subr.bf16.mxu1 %v11246_v51  ;;  %7646 = vmatprep.subr.bf16.mxu0 %v11249_v9  ;;  %v11322_v51 = vld [vmem:[%s15192_s10 + $0x300] ss:$8 sps:$4 sm:$0xff]   ;;  %v11325_v9 = vld [vmem:[%s15192_s10 + $0x310] ss:$8 sps:$4 sm:$0xff]  }
0x1b60   :  { %7594 = vmatpush1.bf16.msra.mxu1 %v11244_v32  ;;  %7647 = vmatpush1.bf16.msra.mxu0 %v11247_v62  ;;  %v11330_v32 = vld [vmem:[%s15192_s10 + $0x324] ss:$8 sps:$4 sm:$0xff]   ;;  %v11328_v62 = vld [vmem:[%s15192_s10 + $0x320] ss:$8 sps:$4 sm:$0xff]  }
0x1b61   :  { %7595 = vmatprep.subr.bf16.mxu1 %v11252_v26  ;;  %7648 = vmatprep.subr.bf16.mxu0 %v11255_v49  ;;  %v11333_v26 = vld [vmem:[%s15192_s10 + $0x334] ss:$8 sps:$4 sm:$0xff]   ;;  %v11331_v49 = vld [vmem:[%s15192_s10 + $0x330] ss:$8 sps:$4 sm:$0xff]  }
0x1b64   :  { %7596 = vmatpush1.bf16.msra.mxu1 %v11250_v29  ;;  %7649 = vmatpush1.bf16.msra.mxu0 %v11253_v1  ;;  %v11336_v29 = vld [vmem:[%s15192_s10 + $0x344] ss:$8 sps:$4 sm:$0xff]   ;;  %v11334_v1 = vld [vmem:[%s15192_s10 + $0x340] ss:$8 sps:$4 sm:$0xff]  }
0x1b65   :  { %7597 = vmatprep.subr.bf16.mxu1 %v11258_v45  ;;  %7650 = vmatprep.subr.bf16.mxu0 %v11261_v19  ;;  %v11339_v45 = vld [vmem:[%s15192_s10 + $0x354] ss:$8 sps:$4 sm:$0xff]   ;;  %v11337_v19 = vld [vmem:[%s15192_s10 + $0x350] ss:$8 sps:$4 sm:$0xff]  }
0x1b68   :  { %7598 = vmatpush1.bf16.msra.mxu1 %v11256_v53  ;;  %7651 = vmatpush1.bf16.msra.mxu0 %v11259_v10  ;;  %v11342_v53 = vld [vmem:[%s15192_s10 + $0x364] ss:$8 sps:$4 sm:$0xff]   ;;  %v11340_v10 = vld [vmem:[%s15192_s10 + $0x360] ss:$8 sps:$4 sm:$0xff]  }
0x1b69   :  { %7599 = vmatprep.subr.bf16.mxu1 %v11264_v40  ;;  %7652 = vmatprep.subr.bf16.mxu0 %v11267_v17  ;;  %v11345_v40 = vld [vmem:[%s15192_s10 + $0x374] ss:$8 sps:$4 sm:$0xff]   ;;  %v11343_v17 = vld [vmem:[%s15192_s10 + $0x370] ss:$8 sps:$4 sm:$0xff]  }
0x1b6c   :  { %7600 = vmatpush1.bf16.msra.mxu1 %v11262_v16  ;;  %7653 = vmatpush1.bf16.msra.mxu0 %v11265_v56  ;;  %v11348_v16 = vld [vmem:[%s15192_s10 + $0x384] ss:$8 sps:$4 sm:$0xff]   ;;  %v11346_v56 = vld [vmem:[%s15192_s10 + $0x380] ss:$8 sps:$4 sm:$0xff]  }
0x1b6d   :  { %7601 = vmatprep.subr.bf16.mxu1 %v11270_v6  ;;  %7654 = vmatprep.subr.bf16.mxu0 %v11273_v25  ;;  %v11351_v6 = vld [vmem:[%s15192_s10 + $0x394] ss:$8 sps:$4 sm:$0xff]   ;;  %v11349_v25 = vld [vmem:[%s15192_s10 + $0x390] ss:$8 sps:$4 sm:$0xff]  }
0x1b70   :  { %7602 = vmatpush1.bf16.msra.mxu1 %v11268_v3  ;;  %7655 = vmatpush1.bf16.msra.mxu0 %v11271_v2  ;;  %v11354_v3 = vld [vmem:[%s15192_s10 + $0x3a4] ss:$8 sps:$4 sm:$0xff]   ;;  %v11352_v2 = vld [vmem:[%s15192_s10 + $0x3a0] ss:$8 sps:$4 sm:$0xff]  }
0x1b71   :  { %7603 = vmatprep.subr.bf16.mxu1 %v11276_v24  ;;  %7656 = vmatprep.subr.bf16.mxu0 %v11279_v61  ;;  %v11357_v24 = vld [vmem:[%s15192_s10 + $0x3b4] ss:$8 sps:$4 sm:$0xff]   ;;  %v11355_v61 = vld [vmem:[%s15192_s10 + $0x3b0] ss:$8 sps:$4 sm:$0xff]  }
0x1b74   :  { %7604 = vmatpush1.bf16.msra.mxu1 %v11274_v22  ;;  %7657 = vmatpush1.bf16.msra.mxu0 %v11277_v31  ;;  %v11360_v22 = vld [vmem:[%s15192_s10 + $0x3c4] ss:$8 sps:$4 sm:$0xff]  }
0x1b75   :  { %7605 = vmatprep.subr.bf16.mxu1 %v11282_v11  ;;  %7658 = vmatprep.subr.bf16.mxu0 %v11285_v7 }
0x1b78   :  { %7606 = vmatpush1.bf16.msra.mxu1 %v11280_v36  ;;  %7659 = vmatpush1.bf16.msra.mxu0 %v11283_v12 }
0x1b79   :  { %7607 = vmatprep.subr.bf16.mxu1 %v11288_v63  ;;  %7660 = vmatprep.subr.bf16.mxu0 %v11291_v13 }
0x1b7c   :  { %7608 = vmatpush1.bf16.msra.mxu1 %v11286_v60  ;;  %7661 = vmatpush1.bf16.msra.mxu0 %v11289_v28 }
0x1b7d   :  { %7609 = vmatprep.subr.bf16.mxu1 %v11294_v52  ;;  %7662 = vmatprep.subr.bf16.mxu0 %v11297_v34 }
0x1b80   :  { %7610 = vmatpush1.bf16.msra.mxu1 %v11292_v58  ;;  %7663 = vmatpush1.bf16.msra.mxu0 %v11295_v39 }
0x1b81   :  { %7611 = vmatprep.subr.bf16.mxu1 %v11300_v54  ;;  %7664 = vmatprep.subr.bf16.mxu0 %v11303_v48 }
0x1b84   :  { %7612 = vmatpush1.bf16.msra.mxu1 %v11298_v5  ;;  %7665 = vmatpush1.bf16.msra.mxu0 %v11301_v38 }
0x1b85   :  { %7613 = vmatprep.subr.bf16.mxu1 %v11306_v14  ;;  %7666 = vmatprep.subr.bf16.mxu0 %v11309_v57 }
0x1b88   :  { %7614 = vmatpush1.bf16.msra.mxu1 %v11304_v55  ;;  %7667 = vmatpush1.bf16.msra.mxu0 %v11307_v27 }
0x1b89   :  { %8428 = vmatprep.subr.bf16.mxu1 %v11312_v35 }
0x1b8b   :  { %7616 = vmatmul.mubr.bf16.vlgmr.msra.gmra.mrb[120].mxu1 %v14378_v59  ;;  %7669 = vmatmul.mubr.bf16.vlgmr.msra.gmra.mrb[104].mxu0 %v14378_v59  ;;  %v11321_v59 = vld [vmem:[%s15192_s10 + $0x2f4] ss:$8 sps:$4 sm:$0xff]  }
0x1b8c   :  { %7625 = vmatprep.mubr.bf16.mxu1 %v14416_v8  ;;  %7678 = vmatprep.mubr.bf16.mxu0 %v14416_v8  ;;  %v11319_v8 = vld [vmem:[%s15192_s10 + $0x2f0] ss:$8 sps:$4 sm:$0xff]  }
0x1b8d   :  { %8429 = vmatpush1.bf16.msra.mxu1 %v11310_v46 }
0x1b8e   :  { %8430 = vmatprep.subr.bf16.mxu1 %v11315_v18 }
0x1b91   :  { %8431 = vmatpush1.bf16.msra.mxu1 %v11313_v37 }
0x1b92   :  { %8432 = vmatprep.subr.bf16.mxu1 %v11318_v42 }
0x1b93   :  { %7626 = vmatmul.mubr.bf16.gmra.mrb[124].mxu1 %v14414_v43  ;;  %7679 = vmatmul.mubr.bf16.gmra.mrb[108].mxu0 %v14414_v43  ;;  %v11327_v43 = vld [vmem:[%s15192_s10 + $0x314] ss:$8 sps:$4 sm:$0xff]  }
0x1b95   :  { %8433 = vmatpush1.bf16.msra.mxu1 %v11316_v41 }
0x1b96   :  { %8434 = vmatprep.subr.bf16.mxu1 %v11321_v59 }
0x1b99   :  { %8435 = vmatpush1.bf16.msra.mxu1 %v11319_v8 }
0x1b9a   :  { %8436 = vmatprep.subr.bf16.mxu1 %v11324_v44 }
0x1b9d   :  { %8437 = vmatpush1.bf16.msra.mxu1 %v11322_v51 }
0x1b9e   :  { %8438 = vmatprep.subr.bf16.mxu1 %v11327_v43 }
0x1ba1   :  { %8439 = vmatpush1.bf16.msra.mxu1 %v11325_v9 }
0x1ba2   :  { %8440 = vmatprep.subr.bf16.mxu1 %v11330_v32 }
0x1ba5   :  { %8441 = vmatpush1.bf16.msra.mxu1 %v11328_v62 }
0x1ba6   :  { %8442 = vmatprep.subr.bf16.mxu1 %v11333_v26 }
0x1ba9   :  { %8443 = vmatpush1.bf16.msra.mxu1 %v11331_v49 }
0x1baa   :  { %8444 = vmatprep.subr.bf16.mxu1 %v11336_v29 }
0x1bad   :  { %8445 = vmatpush1.bf16.msra.mxu1 %v11334_v1 }
0x1bae   :  { %8446 = vmatprep.subr.bf16.mxu1 %v11339_v45 }
0x1bb1   :  { %8447 = vmatpush1.bf16.msra.mxu1 %v11337_v19 }
0x1bb2   :  { %8448 = vmatprep.subr.bf16.mxu1 %v11342_v53 }
0x1bb5   :  { %8449 = vmatpush1.bf16.msra.mxu1 %v11340_v10 }
0x1bb6   :  { %8450 = vmatprep.subr.bf16.mxu1 %v11345_v40 }
0x1bb9   :  { %8451 = vmatpush1.bf16.msra.mxu1 %v11343_v17 }
0x1bba   :  { %8452 = vmatprep.subr.bf16.mxu1 %v11348_v16 }
0x1bbd   :  { %8453 = vmatpush1.bf16.msra.mxu1 %v11346_v56 }
0x1bbe   :  { %8454 = vmatprep.subr.bf16.mxu1 %v11351_v6 }
0x1bc1   :  { %8455 = vmatpush1.bf16.msra.mxu1 %v11349_v25 }
0x1bc2   :  { %8456 = vmatprep.subr.bf16.mxu1 %v11354_v3 }
0x1bc5   :  { %8457 = vmatpush1.bf16.msra.mxu1 %v11352_v2 }
0x1bc6   :  { %8458 = vmatprep.subr.bf16.mxu1 %v11357_v24 }
0x1bc9   :  { %8459 = vmatpush1.bf16.msra.mxu1 %v11355_v61 }
0x1bca   :  { %8481 = vmatprep.subr.bf16.mxu1 %v11360_v22 }
0x1bdd   :  { %v6828_v31 = vpop.f32.mrb[104].mxu1  ;;  %v14891_v11 = vpop.f32.mrb[88].mxu0 }
0x1bde   :  { %v6830_v7 = vpop.f32.mrb[105].mxu1  ;;  %v14893_v36 = vpop.f32.mrb[89].mxu0  ;;  %v9739_v38 = vmul.f32 -1.442695, %v6828_v31 }
0x1bdf   :  { %v6832_v12 = vpop.f32.mrb[106].mxu1  ;;  %v14895_v63 = vpop.f32.mrb[90].mxu0  ;;  %v9740_v14 = vmul.f32 -1.442695, %v6830_v7 }
0x1be0   :  { %v14897_v13 = vpop.f32.mrb[107].mxu1  ;;  %v14899_v60 = vpop.f32.mrb[91].mxu0  ;;  %v9745_v57 = vmul.f32 -1.442695, %v6832_v12  ;;  %11698 = vpow2.f32 %v9739_v38 }
0x1be1   :  { %v9746_v55 = vmul.f32 -1.442695, %v14897_v13  ;;  %11700 = vpow2.f32 %v9740_v14 }
0x1be2   :  { %11702 = vpow2.f32 %v9745_v57 }
0x1be3   :  { %11704 = vpow2.f32 %v9746_v55 }
0x1be5   :  { %v14901_v28 = vpop.f32.mrb[108].mxu1  ;;  %v14903_v52 = vpop.f32.mrb[92].mxu0 }
0x1be6   :  { %v14905_v34 = vpop.f32.mrb[109].mxu1  ;;  %v14907_v58 = vpop.f32.mrb[93].mxu0  ;;  %v9751_v27 = vmul.f32 -1.442695, %v14901_v28 }
0x1be7   :  { %v14909_v39 = vpop.f32.mrb[110].mxu1  ;;  %v14911_v54 = vpop.f32.mrb[94].mxu0  ;;  %v9752_v35 = vmul.f32 -1.442695, %v14905_v34 }
0x1be8   :  { %v14913_v48 = vpop.f32.mrb[111].mxu1  ;;  %v14915_v5 = vpop.f32.mrb[95].mxu0  ;;  %v9757_v46 = vmul.f32 -1.442695, %v14909_v39  ;;  %11706 = vpow2.f32 %v9751_v27 }
0x1be9   :  { %v9758_v18 = vmul.f32 -1.442695, %v14913_v48  ;;  %11708 = vpow2.f32 %v9752_v35 }
0x1bea   :  { %v11699_v37 = vpop.eup %11698  ;;  %11710 = vpow2.f32 %v9757_v46 }
0x1beb   :  { %v11701_v42 = vpop.eup %11700  ;;  %11712 = vpow2.f32 %v9758_v18  ;;  %v7761_v8 = vadd.f32 1.0, %v11699_v37 }
0x1bec   :  { %v11703_v41 = vpop.eup %11702  ;;  %v7762_v44 = vadd.f32 1.0, %v11701_v42 }
0x1bed   :  { %v11705_v59 = vpop.eup %11704  ;;  %v7767_v51 = vadd.f32 1.0, %v11703_v41  ;;  %11714 = vrcp.f32 %v7761_v8 }
0x1bee   :  { %v7768_v43 = vadd.f32 1.0, %v11705_v59  ;;  %11716 = vrcp.f32 %v7762_v44  ;;  %v11363_v59 = vld [vmem:[%s15192_s10 + $0x3d4] ss:$8 sps:$4 sm:$0xff]  }
0x1bef   :  { %11718 = vrcp.f32 %v7767_v51 }
0x1bf0   :  { %11720 = vrcp.f32 %v7768_v43 }
0x1bf2   :  { %v11707_v9 = vpop.eup %11706 }
0x1bf3   :  { %v11709_v32 = vpop.eup %11708  ;;  %v7773_v49 = vadd.f32 1.0, %v11707_v9 }
0x1bf4   :  { %v11711_v62 = vpop.eup %11710  ;;  %v7774_v29 = vadd.f32 1.0, %v11709_v32 }
0x1bf5   :  { %v11713_v26 = vpop.eup %11712  ;;  %v7779_v1 = vadd.f32 1.0, %v11711_v62  ;;  %11722 = vrcp.f32 %v7773_v49 }
0x1bf6   :  { %v7780_v45 = vadd.f32 1.0, %v11713_v26  ;;  %11724 = vrcp.f32 %v7774_v29 }
0x1bf7   :  { %v11715_v19 = vpop.eup %11714  ;;  %11726 = vrcp.f32 %v7779_v1 }
0x1bf8   :  { %v11717_v53 = vpop.eup %11716  ;;  %11728 = vrcp.f32 %v7780_v45  ;;  %v7833_v17 = vmul.f32 %v11715_v19, %v6828_v31 }
0x1bf9   :  { %v11719_v10 = vpop.eup %11718  ;;  %v7834_v56 = vmul.f32 %v11717_v53, %v6830_v7 }
0x1bfa   :  { %v11721_v40 = vpop.eup %11720  ;;  %v7839_v3 = vmul.f32 %v11719_v10, %v6832_v12  ;;  %v11358_v12 = vld [vmem:[%s15192_s10 + $0x3c0] ss:$8 sps:$4 sm:$0xff]  }
0x1bfb   :  { %v7840_v22 = vmul.f32 %v11721_v40, %v14897_v13  ;;  %v11369_v40 = vld [vmem:[%s15192_s10 + $0x3f4] ss:$8 sps:$4 sm:$0xff]  }
0x1bff   :  { %v11723_v31 = vpop.eup %11722 }
0x1c00   :  { %v11725_v46 = vpop.eup %11724  ;;  %v7845_v41 = vmul.f32 %v11723_v31, %v14901_v28  ;;  %v11376_v31 = vld [vmem:[%s15192_s10 + $0x420] ss:$8 sps:$4 sm:$0xff]  }
0x1c01   :  { %v11727_v18 = vpop.eup %11726  ;;  %v7846_v8 = vmul.f32 %v11725_v46, %v14905_v34  ;;  %v11361_v34 = vld [vmem:[%s15192_s10 + $0x3d0] ss:$8 sps:$4 sm:$0xff]   ;;  %v11381_v46 = vld [vmem:[%s15192_s10 + $0x434] ss:$8 sps:$4 sm:$0xff]  }
0x1c02   :  { %v11729_v42 = vpop.eup %11728  ;;  %v7851_v43 = vmul.f32 %v11727_v18, %v14909_v39  ;;  %v11366_v39 = vld [vmem:[%s15192_s10 + $0x3e4] ss:$8 sps:$4 sm:$0xff]  }
0x1c03   :  { %v7852_v28 = vmul.f32 %v11729_v42, %v14913_v48  ;;  %v11364_v48 = vld [vmem:[%s15192_s10 + $0x3e0] ss:$8 sps:$4 sm:$0xff]   ;;  %v9754_v42 = vmul.f32 -1.442695, %v14907_v58 }
0x1c1d   :  { %v14922_v16 = vpop.f32.mrb[112].mxu1  ;;  %v7564_v6 = vpop.f32.mrb[96].mxu0 }
0x1c1e   :  { %v14924_v25 = vpop.f32.mrb[113].mxu1  ;;  %v7857_v2 = vmul.f32 %v7833_v17, %v7564_v6  ;;  %v7566_v24 = vpop.f32.mrb[97].mxu0  ;;  %v11367_v17 = vld [vmem:[%s15192_s10 + $0x3f0] ss:$8 sps:$4 sm:$0xff]   ;;  %v11370_v6 = vld [vmem:[%s15192_s10 + $0x400] ss:$8 sps:$4 sm:$0xff]  }
0x1c1f   :  { %v14926_v61 = vpop.f32.mrb[114].mxu1  ;;  %v7858_v38 = vmul.f32 %v7834_v56, %v7566_v24  ;;  %v7568_v14 = vpop.f32.mrb[98].mxu0  ;;  %v11372_v56 = vld [vmem:[%s15192_s10 + $0x404] ss:$8 sps:$4 sm:$0xff]   ;;  %v11373_v24 = vld [vmem:[%s15192_s10 + $0x410] ss:$8 sps:$4 sm:$0xff]  }
0x1c20   :  { %v14929_v57 = vpop.f32.mrb[115].mxu1  ;;  %v7863_v55 = vmul.f32 %v7839_v3, %v7568_v14  ;;  %v7570_v27 = vpop.f32.mrb[99].mxu0  ;;  %v11375_v3 = vld [vmem:[%s15192_s10 + $0x414] ss:$8 sps:$4 sm:$0xff]   ;;  %v9747_v14 = vmul.f32 -1.442695, %v14895_v63 }
0x1c21   :  { %v7864_v35 = vmul.f32 %v7840_v22, %v7570_v27  ;;  %v9742_v22 = vmul.f32 -1.442695, %v14893_v36  ;;  %v9743_v27 = vmul.f32 -1.442695, %v14922_v16  ;;  %v9750_v18 = vmul.f32 -1.442695, %v14929_v57 }
0x1c22   :  { %v7881_v7 = vpack.c.bf16 %v7863_v55, %v7857_v2  ;;  %v9741_v2 = vmul.f32 -1.442695, %v14891_v11  ;;  %v9748_v55 = vmul.f32 -1.442695, %v14899_v60 }
0x1c23   :  { %v7882_v37 = vpack.c.bf16 %v7864_v35, %v7858_v38  ;;  %v11378_v38 = vld [vmem:[%s15192_s10 + $0x424] ss:$8 sps:$4 sm:$0xff]   ;;  %v9744_v35 = vmul.f32 -1.442695, %v14924_v25 }
0x1c24   :  { %11730 = vpow2.f32 %v9741_v2 }
0x1c25   :  { %v14935_v13 = vpop.f32.mrb[116].mxu1  ;;  %v7574_v44 = vpop.f32.mrb[100].mxu0  ;;  %8460 = vmatprep.mubr.bf16.mxu1 %v7882_v37  ;;  %11732 = vpow2.f32 %v9742_v22  ;;  %v9753_v37 = vmul.f32 -1.442695, %v14903_v52  ;;  %v11393_v22 = vld [vmem:[%s15192_s10 + $0x474] ss:$8 sps:$4 sm:$0xff]  }
0x1c26   :  { %v14941_v51 = vpop.f32.mrb[117].mxu1  ;;  %v7869_v9 = vmul.f32 %v7845_v41, %v7574_v44  ;;  %v7576_v32 = vpop.f32.mrb[101].mxu0  ;;  %8461 = vmatmul.mubr.bf16.vlgmr.msra.gmra.mrb[128].mxu1 %v7881_v7  ;;  %11734 = vpow2.f32 %v9747_v14  ;;  %v9749_v7 = vmul.f32 -1.442695, %v14926_v61  ;;  %v11384_v41 = vld [vmem:[%s15192_s10 + $0x444] ss:$8 sps:$4 sm:$0xff]  }
0x1c27   :  { %v14944_v62 = vpop.f32.mrb[118].mxu1  ;;  %v7870_v26 = vmul.f32 %v7846_v8, %v7576_v32  ;;  %8482 = vmatpush1.bf16.msra.mxu1 %v11358_v12  ;;  %v7578_v49 = vpop.f32.mrb[102].mxu0  ;;  %11736 = vpow2.f32 %v9748_v55  ;;  %v11379_v12 = vld [vmem:[%s15192_s10 + $0x430] ss:$8 sps:$4 sm:$0xff]   ;;  %v9760_v8 = vmul.f32 -1.442695, %v14915_v5 }
0x1c28   :  { %v14947_v29 = vpop.f32.mrb[119].mxu1  ;;  %v7875_v1 = vmul.f32 %v7851_v43, %v7578_v49  ;;  %v7580_v45 = vpop.f32.mrb[103].mxu0  ;;  %8483 = vmatprep.subr.bf16.mxu1 %v11363_v59  ;;  %11738 = vpow2.f32 %v9743_v27  ;;  %v9759_v59 = vmul.f32 -1.442695, %v14911_v54  ;;  %v9755_v44 = vmul.f32 -1.442695, %v14935_v13 }
0x1c29   :  { %v7876_v19 = vmul.f32 %v7852_v28, %v7580_v45  ;;  %11740 = vpow2.f32 %v9744_v35  ;;  %v11382_v43 = vld [vmem:[%s15192_s10 + $0x440] ss:$8 sps:$4 sm:$0xff]   ;;  %v11387_v32 = vld [vmem:[%s15192_s10 + $0x454] ss:$8 sps:$4 sm:$0xff]   ;;  %v11385_v45 = vld [vmem:[%s15192_s10 + $0x450] ss:$8 sps:$4 sm:$0xff]  }
0x1c2a   :  { %v7887_v53 = vpack.c.bf16 %v7875_v1, %v7869_v9  ;;  %11742 = vpow2.f32 %v9749_v7  ;;  %v9756_v9 = vmul.f32 -1.442695, %v14941_v51 }
0x1c2b   :  { %v7888_v10 = vpack.c.bf16 %v7876_v19, %v7870_v26  ;;  %8484 = vmatpush1.bf16.msra.mxu1 %v11361_v34  ;;  %11744 = vpow2.f32 %v9750_v18  ;;  %v9761_v26 = vmul.f32 -1.442695, %v14944_v62  ;;  %v9762_v34 = vmul.f32 -1.442695, %v14947_v29 }
0x1c2c   :  { %8485 = vmatprep.subr.bf16.mxu1 %v11366_v39  ;;  %11746 = vpow2.f32 %v9753_v37  ;;  %v11396_v37 = vld [vmem:[%s15192_s10 + $0x484] ss:$8 sps:$4 sm:$0xff]  }
0x1c2d   :  { %8470 = vmatprep.mubr.bf16.mxu1 %v7888_v10  ;;  %11748 = vpow2.f32 %v9754_v42 }
0x1c2e   :  { %8471 = vmatmul.mubr.bf16.gmra.mrb[132].mxu1 %v7887_v53  ;;  %v11731_v28 = vpop.eup %11730  ;;  %11750 = vpow2.f32 %v9759_v59  ;;  %v11390_v53 = vld [vmem:[%s15192_s10 + $0x464] ss:$8 sps:$4 sm:$0xff]  }
0x1c2f   :  { %8486 = vmatpush1.bf16.msra.mxu1 %v11364_v48  ;;  %v11733_v49 = vpop.eup %11732  ;;  %11752 = vpow2.f32 %v9760_v8  ;;  %v7763_v19 = vadd.f32 1.0, %v11731_v28  ;;  %v11399_v28 = vld [vmem:[%s15192_s10 + $0x494] ss:$8 sps:$4 sm:$0xff]  }
0x1c30   :  { %8487 = vmatprep.subr.bf16.mxu1 %v11369_v40  ;;  %v11735_v1 = vpop.eup %11734  ;;  %11754 = vpow2.f32 %v9755_v44  ;;  %v7764_v48 = vadd.f32 1.0, %v11733_v49 }
0x1c31   :  { %v11737_v39 = vpop.eup %11736  ;;  %11756 = vpow2.f32 %v9756_v9 }
0x1c32   :  { %v11739_v10 = vpop.eup %11738  ;;  %11758 = vpow2.f32 %v9761_v26 }
0x1c33   :  { %8488 = vmatpush1.bf16.msra.mxu1 %v11367_v17  ;;  %v11741_v40 = vpop.eup %11740  ;;  %v7769_v17 = vadd.f32 1.0, %v11735_v1  ;;  %11760 = vpow2.f32 %v9762_v34 }
0x1c34   :  { %8489 = vmatprep.subr.bf16.mxu1 %v11372_v56  ;;  %v11743_v56 = vpop.eup %11742  ;;  %11762 = vrcp.f32 %v7763_v19  ;;  %v7766_v14 = vadd.f32 1.0, %v11741_v40 }
0x1c35   :  { %v11745_v2 = vpop.eup %11744  ;;  %11764 = vrcp.f32 %v7764_v48  ;;  %v7771_v27 = vadd.f32 1.0, %v11743_v56 }
0x1c36   :  { %11766 = vrcp.f32 %v7769_v17  ;;  %v7772_v35 = vadd.f32 1.0, %v11745_v2  ;;  %v11400_v17 = vld [vmem:[%s15192_s10 + $0x4a0] ss:$8 sps:$4 sm:$0xff]  }
0x1c37   :  { %8490 = vmatpush1.bf16.msra.mxu1 %v11370_v6  ;;  %v7770_v6 = vadd.f32 1.0, %v11737_v39  ;;  %v11397_v39 = vld [vmem:[%s15192_s10 + $0x490] ss:$8 sps:$4 sm:$0xff]  }
0x1c38   :  { %8491 = vmatprep.subr.bf16.mxu1 %v11375_v3  ;;  %v11388_v3 = vld [vmem:[%s15192_s10 + $0x460] ss:$8 sps:$4 sm:$0xff]  }
0x1c39   :  { %11768 = vrcp.f32 %v7770_v6 }
0x1c3b   :  { %8492 = vmatpush1.bf16.msra.mxu1 %v11373_v24  ;;  %v7765_v24 = vadd.f32 1.0, %v11739_v10 }
0x1c3c   :  { %8493 = vmatprep.subr.bf16.mxu1 %v11378_v38  ;;  %v11747_v38 = vpop.eup %11746 }
0x1c3d   :  { %v11749_v55 = vpop.eup %11748  ;;  %v7775_v18 = vadd.f32 1.0, %v11747_v38  ;;  %11770 = vrcp.f32 %v7765_v24 }
0x1c3e   :  { %v7776_v42 = vadd.f32 1.0, %v11749_v55  ;;  %11772 = vrcp.f32 %v7766_v14 }
0x1c3f   :  { %8494 = vmatpush1.bf16.msra.mxu1 %v11376_v31  ;;  %v11751_v31 = vpop.eup %11750  ;;  %11774 = vrcp.f32 %v7771_v27 }
0x1c40   :  { %8495 = vmatprep.subr.bf16.mxu1 %v11381_v46  ;;  %v11391_v46 = vld [vmem:[%s15192_s10 + $0x470] ss:$8 sps:$4 sm:$0xff]   ;;  %v11753_v7 = vpop.eup %11752  ;;  %v7781_v59 = vadd.f32 1.0, %v11751_v31  ;;  %11776 = vrcp.f32 %v7772_v35 }
0x1c41   :  { %v7782_v44 = vadd.f32 1.0, %v11753_v7  ;;  %11778 = vrcp.f32 %v7775_v18 }
0x1c42   :  { %11780 = vrcp.f32 %v7776_v42 }
0x1c43   :  { %8496 = vmatpush1.bf16.msra.mxu1 %v11379_v12  ;;  %v11755_v12 = vpop.eup %11754  ;;  %11782 = vrcp.f32 %v7781_v59 }
0x1c44   :  { %8497 = vmatprep.subr.bf16.mxu1 %v11384_v41  ;;  %v11757_v41 = vpop.eup %11756  ;;  %11784 = vrcp.f32 %v7782_v44 }
0x1c45   :  { %v11759_v8 = vpop.eup %11758  ;;  %v7778_v26 = vadd.f32 1.0, %v11757_v41 }
0x1c46   :  { %v11761_v9 = vpop.eup %11760  ;;  %v7783_v34 = vadd.f32 1.0, %v11759_v8 }
0x1c47   :  { %8498 = vmatpush1.bf16.msra.mxu1 %v11382_v43  ;;  %v11394_v43 = vld [vmem:[%s15192_s10 + $0x480] ss:$8 sps:$4 sm:$0xff]   ;;  %v11763_v49 = vpop.eup %11762 }
0x1c48   :  { %8499 = vmatprep.subr.bf16.mxu1 %v11387_v32  ;;  %v7777_v32 = vadd.f32 1.0, %v11755_v12  ;;  %v11765_v1 = vpop.eup %11764  ;;  %v7835_v6 = vmul.f32 %v11763_v49, %v14891_v11 }
0x1c49   :  { %v11767_v19 = vpop.eup %11766  ;;  %v7836_v24 = vmul.f32 %v11765_v1, %v14893_v36 }
0x1c4a   :  { %11786 = vrcp.f32 %v7777_v32  ;;  %v11769_v10 = vpop.eup %11768  ;;  %v7841_v55 = vmul.f32 %v11767_v19, %v14895_v63  ;;  %v11403_v63 = vld [vmem:[%s15192_s10 + $0x4b0] ss:$8 sps:$4 sm:$0xff]  }
0x1c4b   :  { %8500 = vmatpush1.bf16.msra.mxu1 %v11385_v45  ;;  %v7784_v45 = vadd.f32 1.0, %v11761_v9  ;;  %11788 = vrcp.f32 %v7778_v26  ;;  %v11771_v48 = vpop.eup %11770  ;;  %v7842_v7 = vmul.f32 %v11769_v10, %v14899_v60  ;;  %v11411_v10 = vld [vmem:[%s15192_s10 + $0x4d4] ss:$8 sps:$4 sm:$0xff]  }
0x1c4c   :  { %8501 = vmatprep.subr.bf16.mxu1 %v11390_v53  ;;  %v11402_v53 = vld [vmem:[%s15192_s10 + $0x4a4] ss:$8 sps:$4 sm:$0xff]   ;;  %11790 = vrcp.f32 %v7783_v34  ;;  %v11773_v40 = vpop.eup %11772 }
0x1c4d   :  { %11792 = vrcp.f32 %v7784_v45  ;;  %v11775_v56 = vpop.eup %11774  ;;  %v7838_v27 = vmul.f32 %v11773_v40, %v14924_v25  ;;  %v11406_v45 = vld [vmem:[%s15192_s10 + $0x4c0] ss:$8 sps:$4 sm:$0xff]  }
0x1c4e   :  { %v11777_v2 = vpop.eup %11776  ;;  %v7843_v18 = vmul.f32 %v11775_v56, %v14926_v61  ;;  %v11408_v61 = vld [vmem:[%s15192_s10 + $0x4c4] ss:$8 sps:$4 sm:$0xff]  }
0x1c4f   :  { %8502 = vmatpush1.bf16.msra.mxu1 %v11388_v3  ;;  %v11405_v3 = vld [vmem:[%s15192_s10 + $0x4b4] ss:$8 sps:$4 sm:$0xff]   ;;  %v11779_v14 = vpop.eup %11778  ;;  %v7844_v25 = vmul.f32 %v11777_v2, %v14929_v57 }
0x1c50   :  { %8503 = vmatprep.subr.bf16.mxu1 %v11393_v22  ;;  %v7837_v22 = vmul.f32 %v11771_v48, %v14922_v16  ;;  %v11781_v11 = vpop.eup %11780  ;;  %v7847_v19 = vmul.f32 %v11779_v14, %v14903_v52 }
0x1c51   :  { %v11783_v42 = vpop.eup %11782  ;;  %v7848_v40 = vmul.f32 %v11781_v11, %v14907_v58 }
0x1c52   :  { %v11785_v44 = vpop.eup %11784 }
0x1c53   :  { %8504 = vmatpush1.bf16.msra.mxu1 %v11391_v46 }
0x1c54   :  { %8505 = vmatprep.subr.bf16.mxu1 %v11396_v37 }
0x1c57   :  { %8506 = vmatpush1.bf16.msra.mxu1 %v11394_v43 }
0x1c58   :  { %8507 = vmatprep.subr.bf16.mxu1 %v11399_v28  ;;  %v11787_v28 = vpop.eup %11786 }
0x1c59   :  { %v11789_v34 = vpop.eup %11788 }
0x1c5b   :  { %8508 = vmatpush1.bf16.msra.mxu1 %v11397_v39  ;;  %v11791_v39 = vpop.eup %11790 }
0x1c5c   :  { %8509 = vmatprep.subr.bf16.mxu1 %v11402_v53  ;;  %v11793_v48 = vpop.eup %11792 }
0x1c5e   :  { %v7617_v38 = vpop.f32.mrb[120].mxu1  ;;  %v7670_v35 = vpop.f32.mrb[104].mxu0 }
0x1c5f   :  { %v7859_v31 = vmul.f32 %v7835_v6, %v7617_v38  ;;  %v7619_v46 = vpop.f32.mrb[121].mxu1  ;;  %v15056_v37 = vmul.f32 %v7837_v22, %v7670_v35  ;;  %v7672_v36 = vpop.f32.mrb[105].mxu0  ;;  %8510 = vmatpush1.bf16.msra.mxu1 %v11400_v17  ;;  %v7849_v17 = vmul.f32 %v11787_v28, %v14935_v13  ;;  %v7853_v6 = vmul.f32 %v11783_v42, %v14911_v54  ;;  %v11409_v54 = vld [vmem:[%s15192_s10 + $0x4d0] ss:$8 sps:$4 sm:$0xff]   ;;  %v11417_v42 = vld [vmem:[%s15192_s10 + $0x4f4] ss:$8 sps:$4 sm:$0xff]  }
0x1c60   :  { %v7860_v12 = vmul.f32 %v7836_v24, %v7619_v46  ;;  %v7621_v16 = vpop.f32.mrb[122].mxu1  ;;  %v15062_v41 = vmul.f32 %v7838_v27, %v7672_v36  ;;  %v7674_v8 = vpop.f32.mrb[106].mxu0  ;;  %8511 = vmatprep.subr.bf16.mxu1 %v11405_v3  ;;  %v7850_v3 = vmul.f32 %v11789_v34, %v14941_v51  ;;  %v7854_v22 = vmul.f32 %v11785_v44, %v14915_v5  ;;  %v11414_v5 = vld [vmem:[%s15192_s10 + $0x4e4] ss:$8 sps:$4 sm:$0xff]   ;;  %v11424_v44 = vld [vmem:[%s15192_s10 + $0x520] ss:$8 sps:$4 sm:$0xff]  }
0x1c61   :  { %v7865_v59 = vmul.f32 %v7841_v55, %v7621_v16  ;;  %v7623_v60 = vpop.f32.mrb[123].mxu1  ;;  %v15067_v43 = vmul.f32 %v7843_v18, %v7674_v8  ;;  %v7676_v32 = vpop.f32.mrb[107].mxu0  ;;  %v7855_v38 = vmul.f32 %v11791_v39, %v14944_v62  ;;  %v7856_v51 = vmul.f32 %v11793_v48, %v14947_v29  ;;  %v11412_v29 = vld [vmem:[%s15192_s10 + $0x4e0] ss:$8 sps:$4 sm:$0xff]   ;;  %v11423_v8 = vld [vmem:[%s15192_s10 + $0x514] ss:$8 sps:$4 sm:$0xff]  }
0x1c62   :  { %v7866_v9 = vmul.f32 %v7842_v7, %v7623_v60  ;;  %v7868_v49 = vmul.f32 %v7844_v25, %v7676_v32  ;;  %v11415_v25 = vld [vmem:[%s15192_s10 + $0x4f0] ss:$8 sps:$4 sm:$0xff]   ;;  %v11432_v28 = vld [vmem:[%s15192_s10 + $0x544] ss:$8 sps:$4 sm:$0xff]   ;;  %v11441_v39 = vld [vmem:[%s15192_s10 + $0x574] ss:$8 sps:$4 sm:$0xff]  }
0x1c63   :  { %v7883_v26 = vpack.c.bf16 %v7865_v59, %v7859_v31  ;;  %v7885_v57 = vpack.c.bf16 %v15067_v43, %v15056_v37  ;;  %8512 = vmatpush1.bf16.msra.mxu1 %v11403_v63  ;;  %v11418_v59 = vld [vmem:[%s15192_s10 + $0x500] ss:$8 sps:$4 sm:$0xff]   ;;  %v11421_v60 = vld [vmem:[%s15192_s10 + $0x510] ss:$8 sps:$4 sm:$0xff]  }
0x1c64   :  { %v7884_v1 = vpack.c.bf16 %v7866_v9, %v7860_v12  ;;  %v7886_v53 = vpack.c.bf16 %v7868_v49, %v15062_v41  ;;  %8534 = vmatprep.subr.bf16.mxu1 %v11408_v61  ;;  %v11420_v41 = vld [vmem:[%s15192_s10 + $0x504] ss:$8 sps:$4 sm:$0xff]   ;;  %v11429_v9 = vld [vmem:[%s15192_s10 + $0x534] ss:$8 sps:$4 sm:$0xff]   ;;  %v11427_v32 = vld [vmem:[%s15192_s10 + $0x530] ss:$8 sps:$4 sm:$0xff]  }
0x1c65   :  { %v11426_v61 = vld [vmem:[%s15192_s10 + $0x524] ss:$8 sps:$4 sm:$0xff]   ;;  %v11435_v49 = vld [vmem:[%s15192_s10 + $0x554] ss:$8 sps:$4 sm:$0xff]   ;;  %v11433_v34 = vld [vmem:[%s15192_s10 + $0x550] ss:$8 sps:$4 sm:$0xff]  }
0x1c66   :  { %v7627_v56 = vpop.f32.mrb[124].mxu1  ;;  %8513 = vmatprep.mubr.bf16.mxu1 %v7884_v1  ;;  %v7680_v52 = vpop.f32.mrb[108].mxu0  ;;  %v11438_v1 = vld [vmem:[%s15192_s10 + $0x564] ss:$8 sps:$4 sm:$0xff]  }
0x1c67   :  { %v7871_v2 = vmul.f32 %v7847_v19, %v7627_v56  ;;  %v7629_v24 = vpop.f32.mrb[125].mxu1  ;;  %8514 = vmatmul.mubr.bf16.vlgmr.msra.gmra.mrb[128].mxu1 %v7883_v26  ;;  %v15085_v14 = vmul.f32 %v7849_v17, %v7680_v52  ;;  %v7682_v58 = vpop.f32.mrb[109].mxu0  ;;  %v11430_v26 = vld [vmem:[%s15192_s10 + $0x540] ss:$8 sps:$4 sm:$0xff]   ;;  %v11439_v19 = vld [vmem:[%s15192_s10 + $0x570] ss:$8 sps:$4 sm:$0xff]  }
0x1c68   :  { %v7872_v55 = vmul.f32 %v7848_v40, %v7629_v24  ;;  %8535 = vmatpush1.bf16.msra.mxu1 %v11406_v45  ;;  %v7631_v13 = vpop.f32.mrb[126].mxu1  ;;  %v7874_v27 = vmul.f32 %v7850_v3, %v7682_v58  ;;  %v7684_v35 = vpop.f32.mrb[110].mxu0  ;;  %v11436_v45 = vld [vmem:[%s15192_s10 + $0x560] ss:$8 sps:$4 sm:$0xff]  }
0x1c69   :  { %v7877_v31 = vmul.f32 %v7853_v6, %v7631_v13  ;;  %v7633_v46 = vpop.f32.mrb[127].mxu1  ;;  %8536 = vmatprep.subr.bf16.mxu1 %v11411_v10  ;;  %v7879_v62 = vmul.f32 %v7855_v38, %v7684_v35  ;;  %v7686_v7 = vpop.f32.mrb[111].mxu0 }
0x1c6a   :  { %v7878_v11 = vmul.f32 %v7854_v22, %v7633_v46  ;;  %v7880_v12 = vmul.f32 %v7856_v51, %v7686_v7 }
0x1c6b   :  { %v7889_v18 = vpack.c.bf16 %v7877_v31, %v7871_v2  ;;  %v7891_v36 = vpack.c.bf16 %v7879_v62, %v15085_v14 }
0x1c6c   :  { %v7890_v16 = vpack.c.bf16 %v7878_v11, %v7872_v55  ;;  %8537 = vmatpush1.bf16.msra.mxu1 %v11409_v54  ;;  %v7892_v63 = vpack.c.bf16 %v7880_v12, %v7874_v27 }
0x1c6d   :  { %8538 = vmatprep.subr.bf16.mxu1 %v11414_v5 }
0x1c6e   :  { %8523 = vmatprep.mubr.bf16.mxu1 %v7890_v16 }
0x1c6f   :  { %8524 = vmatmul.mubr.bf16.gmra.mrb[132].mxu1 %v7889_v18 }
0x1c70   :  { %8539 = vmatpush1.bf16.msra.mxu1 %v11412_v29  ;;  %9939 = vmatprep.mubr.msk.bf16.mxu1 %vm759_vm0, %v7886_v53 }
0x1c71   :  { %8540 = vmatprep.subr.bf16.mxu1 %v11417_v42 }
0x1c74   :  { %8541 = vmatpush1.bf16.msra.mxu1 %v11415_v25 }
0x1c75   :  { %8542 = vmatprep.subr.bf16.mxu1 %v11420_v41 }
0x1c78   :  { %8543 = vmatpush1.bf16.msra.mxu1 %v11418_v59 }
0x1c79   :  { %8544 = vmatprep.subr.bf16.mxu1 %v11423_v8 }
0x1c7c   :  { %8545 = vmatpush1.bf16.msra.mxu1 %v11421_v60 }
0x1c7d   :  { %8546 = vmatprep.subr.bf16.mxu1 %v11426_v61 }
0x1c80   :  { %8547 = vmatpush1.bf16.msra.mxu1 %v11424_v44 }
0x1c81   :  { %8548 = vmatprep.subr.bf16.mxu1 %v11429_v9 }
0x1c84   :  { %8549 = vmatpush1.bf16.msra.mxu1 %v11427_v32 }
0x1c85   :  { %8550 = vmatprep.subr.bf16.mxu1 %v11432_v28 }
0x1c88   :  { %8551 = vmatpush1.bf16.msra.mxu1 %v11430_v26 }
0x1c89   :  { %8552 = vmatprep.subr.bf16.mxu1 %v11435_v49 }
0x1c8c   :  { %8553 = vmatpush1.bf16.msra.mxu1 %v11433_v34 }
0x1c8d   :  { %8554 = vmatprep.subr.bf16.mxu1 %v11438_v1 }
0x1c90   :  { %8555 = vmatpush1.bf16.msra.mxu1 %v11436_v45 }
0x1c91   :  { %8556 = vmatprep.subr.bf16.mxu1 %v11441_v39 }
0x1c94   :  { %8557 = vmatpush1.bf16.msra.mxu1 %v11439_v19 }
0x1c97   :  { %8567 = vmatmul.mubr.bf16.vlgmr.msra.gmra.mrb[128].mxu1 %v7885_v57 }
0x1c98   :  { %9940 = vmatprep.mubr.msk.bf16.mxu1 %vm759_vm0, %v7892_v63 }
0x1c9f   :  { %8577 = vmatmul.mubr.bf16.gmra.mrb[132].mxu1 %v7891_v36 }
0x1d6a   :  { %v8568_v53 = vpop.f32.mrb[128].mxu1 }
0x1d6b   :  { %v8587_v10 = vadd.f32 %v8568_v53, %v14264_v0  ;;  %v8570_v48 = vpop.f32.mrb[129].mxu1 }
0x1d6c   :  { %v8588_v40 = vadd.f32 %v8570_v48, %v14267_v15  ;;  %v8572_v17 = vpop.f32.mrb[130].mxu1 }
0x1d6d   :  { %v8596_v56 = vmul.f32 %v8587_v10, %v8587_v10  ;;  %v8589_v6 = vadd.f32 %v8572_v17, %v14270_v4  ;;  %v8574_v3 = vpop.f32.mrb[131].mxu1 }
0x1d6e   :  { %v8597_v2 = vmul.f32 %v8588_v40, %v8588_v40  ;;  %v8590_v52 = vadd.f32 %v8574_v3, %v14275_v47 }
0x1d6f   :  { %v8598_v24 = vmul.f32 %v8589_v6, %v8589_v6 }
0x1d70   :  { %v8599_v37 = vmul.f32 %v8590_v52, %v8590_v52  ;;  %v8604_v43 = vadd.f32 %v8597_v2, %v8596_v56 }
0x1d72   :  { %8605 = vadd.xlane.f32.xlu0 %v8604_v43  ;;  %v8578_v57 = vpop.f32.mrb[132].mxu1  ;;  %v8607_v22 = vadd.f32 %v8599_v37, %v8598_v24 }
0x1d73   :  { %v8591_v38 = vadd.f32 %v8578_v57, %v14284_v50  ;;  %v8580_v0 = vpop.f32.mrb[133].mxu1 }
0x1d74   :  { %v8592_v14 = vadd.f32 %v8580_v0, %v14287_v23  ;;  %8608 = vadd.xlane.f32.xlu1 %v8607_v22  ;;  %v8582_v15 = vpop.f32.mrb[134].mxu1 }
0x1d75   :  { %v8600_v55 = vmul.f32 %v8591_v38, %v8591_v38  ;;  %v8593_v4 = vadd.f32 %v8582_v15, %v14290_v33  ;;  %v8584_v58 = vpop.f32.mrb[135].mxu1 }
0x1d76   :  { %v8601_v13 = vmul.f32 %v8592_v14, %v8592_v14  ;;  %v8594_v47 = vadd.f32 %v8584_v58, %v14295_v30  ;;  %v8595_v30 = vld [vmem:[%s15193_s11] sm:$0x3]  ;;  %s11848_s11 = smov [#allocation2]  }
0x1d77   :  { %v8602_v54 = vmul.f32 %v8593_v4, %v8593_v4  ;;  %v8640_v16 = vrot.slane %v8595_v30, %v12092_v21  ;;  %v8644_v29 = vrot.slane %v8595_v30, %v12090_v20  ;;  %s8668_s30 = sshll.u32 %s11848_s11, 4  ;;  %s8669_s30 = int_to_ptr.vmem [resolvable:$true] %s8668_s30 }
0x1d78   :  { %v8603_v51 = vmul.f32 %v8594_v47, %v8594_v47  ;;  %v8610_v27 = vadd.f32 %v8601_v13, %v8600_v55  ;;  %s11822_s13 = scalar_lea.vmem %s8669_s30, 1024  ;;  %p11827_p1 = scmp.lt.s32.totalorder %s8669_s30, %s8669_s30 }
0x1d79   :  { %p11823_p0 = scmp.ne.s32.totalorder %s8669_s30, %s11822_s13  ;;  %p11828_p2 = scmp.lt.s32.totalorder %s11822_s13, %s11822_s13 }
0x1d7a   :  { %8611 = vadd.xlane.f32.xlu0 %v8610_v27  ;;  %v8613_v31 = vadd.f32 %v8603_v51, %v8602_v54 }
0x1d7b   :  { %p11829_p3 = por %p11828_p2, %p11827_p1 }
0x1d7c   :  { %8614 = vadd.xlane.f32.xlu1 %v8613_v31 }
0x1d7d   :  { %p11830_p4 = pnand %p11829_p3, %p11823_p0 }
0x1dff   :  { %v8606_v35 = vpop.xlane.xlu0 %8605 }
0x1e00   :  { %v8616_v50 = vmul.f32 0.00390625, %v8606_v35 }
0x1e01   :  { %v8609_v46 = vpop.xlane.xlu1 %8608 }
0x1e02   :  { %v8620_v5 = vadd.f32 1e-05, %v8616_v50  ;;  %v8617_v23 = vmul.f32 0.00390625, %v8609_v46 }
0x1e04   :  { %11794 = vrsqrt.f32 %v8620_v5  ;;  %v8621_v62 = vadd.f32 1e-05, %v8617_v23 }
0x1e06   :  { %11796 = vrsqrt.f32 %v8621_v62 }
0x1e07   :  { %v8612_v11 = vpop.xlane.xlu0 %8611 }
0x1e08   :  { %v8618_v33 = vmul.f32 0.00390625, %v8612_v11 }
0x1e09   :  { %v8615_v7 = vpop.xlane.xlu1 %8614 }
0x1e0a   :  { %v8622_v18 = vadd.f32 1e-05, %v8618_v33  ;;  %v8619_v12 = vmul.f32 0.00390625, %v8615_v7 }
0x1e0c   :  { %11798 = vrsqrt.f32 %v8622_v18  ;;  %v8623_v36 = vadd.f32 1e-05, %v8619_v12 }
0x1e0e   :  { %v11795_v63 = vpop.eup %11794  ;;  %11800 = vrsqrt.f32 %v8623_v36 }
0x1e0f   :  { %v8628_v42 = vmul.f32 %v11795_v63, %v8587_v10  ;;  %v8629_v25 = vmul.f32 %v11795_v63, %v8588_v40 }
0x1e10   :  { %v11797_v41 = vpop.eup %11796 }
0x1e11   :  { %v8647_v59 = vmul.f32 %v8640_v16, %v8628_v42  ;;  %v8648_v8 = vmul.f32 %v8644_v29, %v8629_v25  ;;  %v8630_v60 = vmul.f32 %v11797_v41, %v8589_v6  ;;  %v8631_v61 = vmul.f32 %v11797_v41, %v8590_v52 }
0x1e13   :  { %8655 = vst [vmem:[#allocation2] sm:$0xff] %v8647_v59  ;;  %8656 = vst [vmem:[#allocation2 + $0x8] sm:$0xff] %v8648_v8  ;;  %v8649_v44 = vmul.f32 %v8640_v16, %v8630_v60  ;;  %v8650_v9 = vmul.f32 %v8644_v29, %v8631_v61 }
0x1e15   :  { %8657 = vst [vmem:[#allocation2 + $0x10] sm:$0xff] %v8649_v44  ;;  %8658 = vst [vmem:[#allocation2 + $0x18] sm:$0xff] %v8650_v9 }
0x1e16   :  { %v11799_v32 = vpop.eup %11798 }
0x1e17   :  { %v8632_v28 = vmul.f32 %v11799_v32, %v8591_v38  ;;  %v8633_v21 = vmul.f32 %v11799_v32, %v8592_v14 }
0x1e18   :  { %v11801_v26 = vpop.eup %11800 }
0x1e19   :  { %v8651_v20 = vmul.f32 %v8640_v16, %v8632_v28  ;;  %v8652_v49 = vmul.f32 %v8644_v29, %v8633_v21  ;;  %v8634_v34 = vmul.f32 %v11801_v26, %v8593_v4  ;;  %v8635_v1 = vmul.f32 %v11801_v26, %v8594_v47 }
0x1e1b   :  { %8659 = vst [vmem:[#allocation2 + $0x20] sm:$0xff] %v8651_v20  ;;  %8660 = vst [vmem:[#allocation2 + $0x28] sm:$0xff] %v8652_v49  ;;  %v8653_v45 = vmul.f32 %v8640_v16, %v8634_v34  ;;  %v8654_v39 = vmul.f32 %v8644_v29, %v8635_v1 }
0x1e1d   :  { %8661 = vst [vmem:[#allocation2 + $0x30] sm:$0xff] %v8653_v45  ;;  %8662 = vst [vmem:[#allocation2 + $0x38] sm:$0xff] %v8654_v39 }
0x1e1e   :  { %11833 = shalt.err (!%p11830_p4)
}
0x1e1f   :  { %s11834_s0 = scalar_lea.hbm %s15194_s12, 1024 }
0x1e20   :  { %p11835_p5 = scmp.ne.s32.totalorder %s15194_s12, %s11834_s0  ;;  %p11838_p6 = scmp.lt.u32.totalorder %s11834_s0, %s15194_s12 }
0x1e22   :  { %p11840_p7 = pnand %p11838_p6, %p11835_p5 }
0x1e24   :  { %11843 = shalt.err (!%p11840_p7)
}
0x1e25   :  { %s11849_s18 = smov 256   ;;  %s11850_s19 = smov 16  }
0x1e26   :  { %8674 = dma.vmem_to_hbm [thread:$0]  %s8669_s30, 1024, %s15194_s12, [#allocation3], %s11849_s18, %s11849_s18, %s11850_s19  }
0x1e27   :  { %11844 = dma.done.wait [#allocation3], 1024  }
0x1e28   :  { %11845 = vsyncadd [#allocation3], 4294966272 }
0x1e29   :  { %8678 = vsyncpa [#allocation3], 1 }

</bundles_post_ra>
